<compile_context>
chip_gen: v5e
topology: v5e:2x2
jax: 0.10.0
libtpu: 0.0.40
codegen_flags: <defaults>
</compile_context>

<pallas_src>
import math

import jax
import jax.numpy as jnp
from jax.experimental import pallas as pl
from jax.experimental.pallas import tpu as pltpu

# ----------------------------- model config ---------------------------------
B = 2            # batch
S = 8            # sequence length
H = 32           # hidden size
NH = 2           # attention heads
DH = H // NH     # head dim
FF = 64          # intermediate (FFN) size
V = 128          # vocab size
NLAYERS = 2      # encoder layers
EPS = 1e-12      # BERT layernorm eps
T = B * S        # flattened tokens

F32 = jnp.float32
MM_DTYPE = jnp.bfloat16   # matmul operand dtype (f32 accumulation everywhere)


# ------------------------------ helpers -------------------------------------
def _mm(a, b):
    """Matmul with bf16 operands, f32 accumulation (cast only at the MXU boundary)."""
    return jnp.dot(a.astype(MM_DTYPE), b.astype(MM_DTYPE),
                   preferred_element_type=F32)


def _bmm(eq, a, b):
    """Batched matmul (einsum) with bf16 operands, f32 accumulation."""
    return jnp.einsum(eq, a.astype(MM_DTYPE), b.astype(MM_DTYPE),
                      preferred_element_type=F32)


def _layernorm(x, gamma, beta):
    # x: (T, D); gamma/beta: (1, D) — all f32 elementwise
    mean = jnp.mean(x, axis=-1, keepdims=True)
    xc = x - mean
    var = jnp.mean(xc * xc, axis=-1, keepdims=True)
    inv = jax.lax.rsqrt(var + EPS)
    return xc * inv * gamma + beta


def _gelu(x):
    # tanh approximation of GELU (f32 elementwise)
    c = math.sqrt(2.0 / math.pi)
    return 0.5 * x * (1.0 + jnp.tanh(c * (x + 0.044715 * x * x * x)))


# ----------------------------- fused kernel ----------------------------------
def pretrain_kernel(ids_ref, lab_ref,
                    wemb_ref, pemb_ref, tte_ref, eg_ref, eb_ref,
                    wq_ref, bq_ref, wk_ref, bk_ref, wv_ref, bv_ref,
                    wo_ref, bo_ref, g1_ref, b1_ref,
                    wi_ref, bi_ref, wo2_ref, bo2_ref, g2_ref, b2_ref,
                    wt_ref, bt_ref, hg_ref, hb_ref, dbias_ref,
                    logits_ref, loss_ref):
    # ---- embeddings ---------------------------------------------------------
    col = jax.lax.broadcasted_iota(jnp.int32, (T, V), 1)   # lane ids, reused by loss
    ids_col = ids_ref[...]                                 # (T, 1) int32 in VMEM
    onehot = (ids_col == col).astype(F32)                  # single vector compare
    wemb = wemb_ref[...]                                   # (V, H) — shared w/ decoder
    emb = _mm(onehot, wemb)                                # (T, H)

    # position embedding via (B, S, H) broadcast add (no concat), + token-type 0
    x = (emb.reshape(B, S, H) + pemb_ref[...]).reshape(T, H) + tte_ref[...]
    x = _layernorm(x, eg_ref[...], eb_ref[...])

    # ---- transformer encoder layers -----------------------------------------
    scale = 1.0 / math.sqrt(DH)
    for l in range(NLAYERS):                               # static layer loop
        ctx_heads = []
        for h in range(NH):                                # static head loop
            idx = l * NH + h
            # per-head projections: weights pre-split head-major, so no lane
            # slicing of a fused QKV output is ever needed.
            qh = (_mm(x, wq_ref[idx]) + bq_ref[idx]).reshape(B, S, DH)
            kh = (_mm(x, wk_ref[idx]) + bk_ref[idx]).reshape(B, S, DH)
            vh = (_mm(x, wv_ref[idx]) + bv_ref[idx]).reshape(B, S, DH)

            s = _bmm('bqd,bkd->bqk', qh, kh) * scale       # (B, S, S)
            s = s - jnp.max(s, axis=-1, keepdims=True)
            p = jnp.exp(s)
            p = p / jnp.sum(p, axis=-1, keepdims=True)     # exact softmax
            ctx_heads.append(_bmm('bqk,bkd->bqd', p, vh).reshape(T, DH))

        # rebuild (T, H) with heads contiguous in lanes; single output proj.
        ctx = jnp.concatenate(ctx_heads, axis=-1)          # (T, H)
        attn = _mm(ctx, wo_ref[l]) + bo_ref[l]

        x1 = _layernorm(x + attn, g1_ref[l], b1_ref[l])

        hdn = _gelu(_mm(x1, wi_ref[l]) + bi_ref[l])
        ffn = _mm(hdn, wo2_ref[l]) + bo2_ref[l]
        x = _layernorm(x1 + ffn, g2_ref[l], b2_ref[l])

    # ---- MLM head (tied decoder) --------------------------------------------
    hm = _gelu(_mm(x, wt_ref[...]) + bt_ref[...])
    hm = _layernorm(hm, hg_ref[...], hb_ref[...])
    # logits = hm @ word_emb^T, as a contraction of the two H axes (no .T copy)
    logits = jax.lax.dot_general(
        hm.astype(MM_DTYPE), wemb.astype(MM_DTYPE),
        dimension_numbers=(((1,), (1,)), ((), ())),
        preferred_element_type=F32) + dbias_ref[...]       # (T, V)
    logits_ref[...] = logits

    # ---- masked-LM loss ------------------------------------------------------
    m = jnp.max(logits, axis=-1, keepdims=True)
    lse = jnp.log(jnp.sum(jnp.exp(logits - m), axis=-1, keepdims=True)) + m
    logp = logits - lse                                    # (T, V)

    lab_col = lab_ref[...]                                 # (T, 1) int32 in VMEM
    picked = jnp.sum(jnp.where(lab_col == col, logp, 0.0),
                     axis=-1, keepdims=True)               # (T, 1)
    valid = (lab_col >= 0).astype(F32)                     # labels < 0 ignored
    nll_sum = jnp.sum(valid * (-picked), axis=0, keepdims=True)    # (1, 1)
    cnt = jnp.sum(valid, axis=0, keepdims=True)                    # (1, 1)
    # no clamp: 0/0 -> NaN matches torch CrossEntropyLoss(ignore_index=-100)
    loss = nll_sum / cnt
    loss_ref[...] = jnp.broadcast_to(loss, (1, 128))       # lane-dense scalar out


# ------------------------------ param init -----------------------------------
def init_params(key):
    std = 0.02

    def dense(k, shape):
        return jax.random.normal(k, shape, F32) * std

    keys = jax.random.split(key, 4 + NLAYERS)
    wq_l, wk_l, wv_l, wo_l, wi_l, wo2_l = [], [], [], [], [], []
    for i in range(NLAYERS):
        lk = jax.random.split(keys[4 + i], 6)
        # Q/K/V weights stored head-major, pre-split: (NH, H, DH)
        wq_l.append(dense(lk[0], (NH, H, DH)))
        wk_l.append(dense(lk[1], (NH, H, DH)))
        wv_l.append(dense(lk[2], (NH, H, DH)))
        wo_l.append(dense(lk[3], (H, H)))       # rows head-major (matches ctx concat)
        wi_l.append(dense(lk[4], (H, FF)))
        wo2_l.append(dense(lk[5], (FF, H)))

    return dict(
        wemb=dense(keys[0], (V, H)),
        pemb=dense(keys[1], (S, H)),
        tte0=dense(keys[2], (1, H)),
        emb_ln_g=jnp.ones((1, H), F32), emb_ln_b=jnp.zeros((1, H), F32),
        wq=jnp.stack(wq_l).reshape(NLAYERS * NH, H, DH),
        wk=jnp.stack(wk_l).reshape(NLAYERS * NH, H, DH),
        wv=jnp.stack(wv_l).reshape(NLAYERS * NH, H, DH),
        bq=jnp.zeros((NLAYERS * NH, 1, DH), F32),
        bk=jnp.zeros((NLAYERS * NH, 1, DH), F32),
        bv=jnp.zeros((NLAYERS * NH, 1, DH), F32),
        wo=jnp.stack(wo_l), bo=jnp.zeros((NLAYERS, 1, H), F32),
        ln1_g=jnp.ones((NLAYERS, 1, H), F32), ln1_b=jnp.zeros((NLAYERS, 1, H), F32),
        wi=jnp.stack(wi_l), bi=jnp.zeros((NLAYERS, 1, FF), F32),
        wo2=jnp.stack(wo2_l), bo2=jnp.zeros((NLAYERS, 1, H), F32),
        ln2_g=jnp.ones((NLAYERS, 1, H), F32), ln2_b=jnp.zeros((NLAYERS, 1, H), F32),
        wt=dense(keys[3], (H, H)), bt=jnp.zeros((1, H), F32),
        head_ln_g=jnp.ones((1, H), F32), head_ln_b=jnp.zeros((1, H), F32),
        dbias=jnp.zeros((1, V), F32),
    )


# ------------------------------ full forward ----------------------------------
@jax.jit
def pretrain_forward(params, input_ids, labels):
    """PretrainModel.forward(batch) -> {'loss', 'prediction_scores'}."""
    ids = input_ids.reshape(T, 1).astype(jnp.int32)   # (T, 1) VMEM columns
    lab = labels.reshape(T, 1).astype(jnp.int32)

    args = (ids, lab,
            params["wemb"], params["pemb"], params["tte0"],
            params["emb_ln_g"], params["emb_ln_b"],
            params["wq"], params["bq"], params["wk"], params["bk"],
            params["wv"], params["bv"],
            params["wo"], params["bo"], params["ln1_g"], params["ln1_b"],
            params["wi"], params["bi"], params["wo2"], params["bo2"],
            params["ln2_g"], params["ln2_b"],
            params["wt"], params["bt"], params["head_ln_g"], params["head_ln_b"],
            params["dbias"])

    # advisory cost estimate for the XLA scheduler
    flops = (2 * T * V * H                                   # one-hot embedding gather
             + NLAYERS * (6 * T * H * H                      # Q/K/V projections
                          + 4 * NH * B * S * S * DH          # scores + context
                          + 2 * T * H * H                    # attention out-proj
                          + 4 * T * H * FF)                  # FFN in + out
             + 2 * T * H * H                                 # MLM head transform
             + 2 * T * H * V)                                # tied decoder
    transcendentals = (NLAYERS * (NH * B * S * S + T * FF)   # softmax exp + FFN gelu
                       + T * H + T * V + T)                  # head gelu + loss exp/log
    bytes_accessed = (sum(int(a.size) * a.dtype.itemsize for a in args)
                      + T * V * 4 + 128 * 4)

    vmem = pl.BlockSpec(memory_space=pltpu.MemorySpace.VMEM)

    logits_flat, loss_vec = pl.pallas_call(
        pretrain_kernel,
        out_shape=(jax.ShapeDtypeStruct((T, V), F32),        # prediction scores
                   jax.ShapeDtypeStruct((1, 128), F32)),     # lane-dense loss
        in_specs=[vmem] * len(args),
        out_specs=(vmem, vmem),
        cost_estimate=pl.CostEstimate(flops=int(flops),
                                      transcendentals=int(transcendentals),
                                      bytes_accessed=int(bytes_accessed)),
    )(*args)

    return {"loss": loss_vec[0, 0],
            "prediction_scores": logits_flat.reshape(B, S, V)}


# --------------------------------- main ----------------------------------------
if __name__ == "__main__":
    key = jax.random.PRNGKey(0)
    pkey, ikey, mkey = jax.random.split(key, 3)

    params = init_params(pkey)

    input_ids = jax.random.randint(ikey, (B, S), 0, V, dtype=jnp.int32)
    # mask ~25% of positions for MLM: labels = original id there, -100 elsewhere
    mask = jax.random.bernoulli(mkey, 0.25, (B, S))
    labels = jnp.where(mask, input_ids, jnp.full_like(input_ids, -100))

    batch = {"input_ids": input_ids, "labels": labels}
    results = pretrain_forward(params, batch["input_ids"], batch["labels"])
    jax.block_until_ready(results)

    assert results["prediction_scores"].shape == (B, S, V)
    assert results["loss"].shape == ()
    print("KERNEL_OK")
</pallas_src>

<mosaic_0001>
module attributes {stable_mosaic.version = 11 : i64} {
  func.func @pretrain_kernel(%arg0: memref<16x1xi32, #tpu.memory_space<vmem>>, %arg1: memref<16x1xi32, #tpu.memory_space<vmem>>, %arg2: memref<128x32xf32, #tpu.memory_space<vmem>>, %arg3: memref<8x32xf32, #tpu.memory_space<vmem>>, %arg4: memref<1x32xf32, #tpu.memory_space<vmem>>, %arg5: memref<1x32xf32, #tpu.memory_space<vmem>>, %arg6: memref<1x32xf32, #tpu.memory_space<vmem>>, %arg7: memref<4x32x16xf32, #tpu.memory_space<vmem>>, %arg8: memref<4x1x16xf32, #tpu.memory_space<vmem>>, %arg9: memref<4x32x16xf32, #tpu.memory_space<vmem>>, %arg10: memref<4x1x16xf32, #tpu.memory_space<vmem>>, %arg11: memref<4x32x16xf32, #tpu.memory_space<vmem>>, %arg12: memref<4x1x16xf32, #tpu.memory_space<vmem>>, %arg13: memref<2x32x32xf32, #tpu.memory_space<vmem>>, %arg14: memref<2x1x32xf32, #tpu.memory_space<vmem>>, %arg15: memref<2x1x32xf32, #tpu.memory_space<vmem>>, %arg16: memref<2x1x32xf32, #tpu.memory_space<vmem>>, %arg17: memref<2x32x64xf32, #tpu.memory_space<vmem>>, %arg18: memref<2x1x64xf32, #tpu.memory_space<vmem>>, %arg19: memref<2x64x32xf32, #tpu.memory_space<vmem>>, %arg20: memref<2x1x32xf32, #tpu.memory_space<vmem>>, %arg21: memref<2x1x32xf32, #tpu.memory_space<vmem>>, %arg22: memref<2x1x32xf32, #tpu.memory_space<vmem>>, %arg23: memref<32x32xf32, #tpu.memory_space<vmem>>, %arg24: memref<1x32xf32, #tpu.memory_space<vmem>>, %arg25: memref<1x32xf32, #tpu.memory_space<vmem>>, %arg26: memref<1x32xf32, #tpu.memory_space<vmem>>, %arg27: memref<1x128xf32, #tpu.memory_space<vmem>>, %arg28: memref<16x128xf32, #tpu.memory_space<vmem>>, %arg29: memref<1x128xf32, #tpu.memory_space<vmem>>) attributes {dimension_semantics = [], scalar_prefetch = 0 : i64, scratch_operands = 0 : i64, tpu.core_type = #tpu.core_type<tc>} {
    %0 = tpu.iota {dimensions = array<i32: 1>} : vector<16x128xi32>
    %c0 = arith.constant 0 : index
    %c0_0 = arith.constant 0 : index
    %1 = vector.load %arg0[%c0, %c0_0] : memref<16x1xi32, #tpu.memory_space<vmem>>, vector<16x1xi32>
    %2 = vector.broadcast %1 : vector<16x1xi32> to vector<16x128xi32>
    %3 = arith.cmpi eq, %2, %0 : vector<16x128xi32>
    %4 = arith.extui %3 : vector<16x128xi1> to vector<16x128xi32>
    %5 = arith.sitofp %4 : vector<16x128xi32> to vector<16x128xf32>
    %c0_1 = arith.constant 0 : index
    %c0_2 = arith.constant 0 : index
    %6 = vector.load %arg2[%c0_1, %c0_2] : memref<128x32xf32, #tpu.memory_space<vmem>>, vector<128x32xf32>
    %7 = arith.truncf %5 : vector<16x128xf32> to vector<16x128xbf16>
    %8 = arith.truncf %6 : vector<128x32xf32> to vector<128x32xbf16>
    %cst = arith.constant dense<0.000000e+00> : vector<16x32xf32>
    %9 = tpu.matmul %7, %8, %cst {dimension_numbers = #tpu.dot_dimension_numbers<[1], [0], [0], [1], [0, 0, 1, 1], [], []>} : vector<16x128xbf16>, vector<128x32xbf16>, vector<16x32xf32> -> vector<16x32xf32>
    %10 = vector.shape_cast %9 : vector<16x32xf32> to vector<2x8x32xf32>
    %c0_3 = arith.constant 0 : index
    %c0_4 = arith.constant 0 : index
    %11 = vector.load %arg3[%c0_3, %c0_4] : memref<8x32xf32, #tpu.memory_space<vmem>>, vector<8x32xf32>
    %12 = vector.shape_cast %11 : vector<8x32xf32> to vector<1x8x32xf32>
    %13 = vector.broadcast %12 : vector<1x8x32xf32> to vector<2x8x32xf32>
    %14 = arith.addf %10, %13 : vector<2x8x32xf32>
    %15 = vector.shape_cast %14 : vector<2x8x32xf32> to vector<16x32xf32>
    %c0_5 = arith.constant 0 : index
    %c0_6 = arith.constant 0 : index
    %16 = vector.load %arg4[%c0_5, %c0_6] : memref<1x32xf32, #tpu.memory_space<vmem>>, vector<1x32xf32>
    %17 = vector.broadcast %16 : vector<1x32xf32> to vector<16x32xf32>
    %18 = arith.addf %15, %17 : vector<16x32xf32>
    %c0_7 = arith.constant 0 : index
    %c0_8 = arith.constant 0 : index
    %19 = vector.load %arg5[%c0_7, %c0_8] : memref<1x32xf32, #tpu.memory_space<vmem>>, vector<1x32xf32>
    %c0_9 = arith.constant 0 : index
    %c0_10 = arith.constant 0 : index
    %20 = vector.load %arg6[%c0_9, %c0_10] : memref<1x32xf32, #tpu.memory_space<vmem>>, vector<1x32xf32>
    %cst_11 = arith.constant dense<0.000000e+00> : vector<16xf32>
    %21 = vector.multi_reduction <add>, %18, %cst_11 [1] : vector<16x32xf32> to vector<16xf32>
    %22 = vector.shape_cast %21 : vector<16xf32> to vector<16x1xf32>
    %cst_12 = arith.constant 3.200000e+01 : f32
    %23 = vector.broadcast %cst_12 : f32 to vector<16x1xf32>
    %24 = arith.divf %22, %23 : vector<16x1xf32>
    %25 = vector.broadcast %24 : vector<16x1xf32> to vector<16x32xf32>
    %26 = arith.subf %18, %25 : vector<16x32xf32>
    %27 = arith.mulf %26, %26 : vector<16x32xf32>
    %cst_13 = arith.constant dense<0.000000e+00> : vector<16xf32>
    %28 = vector.multi_reduction <add>, %27, %cst_13 [1] : vector<16x32xf32> to vector<16xf32>
    %29 = vector.shape_cast %28 : vector<16xf32> to vector<16x1xf32>
    %cst_14 = arith.constant 3.200000e+01 : f32
    %30 = vector.broadcast %cst_14 : f32 to vector<16x1xf32>
    %31 = arith.divf %29, %30 : vector<16x1xf32>
    %cst_15 = arith.constant 9.99999996E-13 : f32
    %32 = vector.broadcast %cst_15 : f32 to vector<16x1xf32>
    %33 = arith.addf %31, %32 : vector<16x1xf32>
    %34 = math.rsqrt %33 : vector<16x1xf32>
    %35 = vector.broadcast %34 : vector<16x1xf32> to vector<16x32xf32>
    %36 = arith.mulf %26, %35 : vector<16x32xf32>
    %37 = vector.broadcast %19 : vector<1x32xf32> to vector<16x32xf32>
    %38 = arith.mulf %36, %37 : vector<16x32xf32>
    %39 = vector.broadcast %20 : vector<1x32xf32> to vector<16x32xf32>
    %40 = arith.addf %38, %39 : vector<16x32xf32>
    %c0_16 = arith.constant 0 : index
    %c0_17 = arith.constant 0 : index
    %c0_18 = arith.constant 0 : index
    %41 = vector.load %arg7[%c0_16, %c0_17, %c0_18] : memref<4x32x16xf32, #tpu.memory_space<vmem>>, vector<1x32x16xf32>
    %42 = vector.shape_cast %41 : vector<1x32x16xf32> to vector<32x16xf32>
    %43 = arith.truncf %40 : vector<16x32xf32> to vector<16x32xbf16>
    %44 = arith.truncf %42 : vector<32x16xf32> to vector<32x16xbf16>
    %cst_19 = arith.constant dense<0.000000e+00> : vector<16x16xf32>
    %45 = tpu.matmul %43, %44, %cst_19 {dimension_numbers = #tpu.dot_dimension_numbers<[1], [0], [0], [1], [0, 0, 1, 1], [], []>} : vector<16x32xbf16>, vector<32x16xbf16>, vector<16x16xf32> -> vector<16x16xf32>
    %c0_20 = arith.constant 0 : index
    %c0_21 = arith.constant 0 : index
    %c0_22 = arith.constant 0 : index
    %46 = vector.load %arg8[%c0_20, %c0_21, %c0_22] : memref<4x1x16xf32, #tpu.memory_space<vmem>>, vector<1x1x16xf32>
    %47 = vector.shape_cast %46 : vector<1x1x16xf32> to vector<1x16xf32>
    %48 = vector.broadcast %47 : vector<1x16xf32> to vector<16x16xf32>
    %49 = arith.addf %45, %48 : vector<16x16xf32>
    %50 = vector.shape_cast %49 : vector<16x16xf32> to vector<2x8x16xf32>
    %c0_23 = arith.constant 0 : index
    %c0_24 = arith.constant 0 : index
    %c0_25 = arith.constant 0 : index
    %51 = vector.load %arg9[%c0_23, %c0_24, %c0_25] : memref<4x32x16xf32, #tpu.memory_space<vmem>>, vector<1x32x16xf32>
    %52 = vector.shape_cast %51 : vector<1x32x16xf32> to vector<32x16xf32>
    %53 = arith.truncf %40 : vector<16x32xf32> to vector<16x32xbf16>
    %54 = arith.truncf %52 : vector<32x16xf32> to vector<32x16xbf16>
    %cst_26 = arith.constant dense<0.000000e+00> : vector<16x16xf32>
    %55 = tpu.matmul %53, %54, %cst_26 {dimension_numbers = #tpu.dot_dimension_numbers<[1], [0], [0], [1], [0, 0, 1, 1], [], []>} : vector<16x32xbf16>, vector<32x16xbf16>, vector<16x16xf32> -> vector<16x16xf32>
    %c0_27 = arith.constant 0 : index
    %c0_28 = arith.constant 0 : index
    %c0_29 = arith.constant 0 : index
    %56 = vector.load %arg10[%c0_27, %c0_28, %c0_29] : memref<4x1x16xf32, #tpu.memory_space<vmem>>, vector<1x1x16xf32>
    %57 = vector.shape_cast %56 : vector<1x1x16xf32> to vector<1x16xf32>
    %58 = vector.broadcast %57 : vector<1x16xf32> to vector<16x16xf32>
    %59 = arith.addf %55, %58 : vector<16x16xf32>
    %60 = vector.shape_cast %59 : vector<16x16xf32> to vector<2x8x16xf32>
    %c0_30 = arith.constant 0 : index
    %c0_31 = arith.constant 0 : index
    %c0_32 = arith.constant 0 : index
    %61 = vector.load %arg11[%c0_30, %c0_31, %c0_32] : memref<4x32x16xf32, #tpu.memory_space<vmem>>, vector<1x32x16xf32>
    %62 = vector.shape_cast %61 : vector<1x32x16xf32> to vector<32x16xf32>
    %63 = arith.truncf %40 : vector<16x32xf32> to vector<16x32xbf16>
    %64 = arith.truncf %62 : vector<32x16xf32> to vector<32x16xbf16>
    %cst_33 = arith.constant dense<0.000000e+00> : vector<16x16xf32>
    %65 = tpu.matmul %63, %64, %cst_33 {dimension_numbers = #tpu.dot_dimension_numbers<[1], [0], [0], [1], [0, 0, 1, 1], [], []>} : vector<16x32xbf16>, vector<32x16xbf16>, vector<16x16xf32> -> vector<16x16xf32>
    %c0_34 = arith.constant 0 : index
    %c0_35 = arith.constant 0 : index
    %c0_36 = arith.constant 0 : index
    %66 = vector.load %arg12[%c0_34, %c0_35, %c0_36] : memref<4x1x16xf32, #tpu.memory_space<vmem>>, vector<1x1x16xf32>
    %67 = vector.shape_cast %66 : vector<1x1x16xf32> to vector<1x16xf32>
    %68 = vector.broadcast %67 : vector<1x16xf32> to vector<16x16xf32>
    %69 = arith.addf %65, %68 : vector<16x16xf32>
    %70 = vector.shape_cast %69 : vector<16x16xf32> to vector<2x8x16xf32>
    %71 = arith.truncf %50 : vector<2x8x16xf32> to vector<2x8x16xbf16>
    %72 = arith.truncf %60 : vector<2x8x16xf32> to vector<2x8x16xbf16>
    "tpu.trace_start"() <{level = 10 : i32, message = "bqd,bkd->bqk"}> : () -> ()
    %cst_37 = arith.constant dense<0.000000e+00> : vector<2x8x8xf32>
    %73 = tpu.matmul %71, %72, %cst_37 {dimension_numbers = #tpu.dot_dimension_numbers<[2], [2], [1], [1], [0, 0, 0, 1, 1, 1], [0], [0]>} : vector<2x8x16xbf16>, vector<2x8x16xbf16>, vector<2x8x8xf32> -> vector<2x8x8xf32>
    "tpu.trace_stop"() : () -> ()
    %cst_38 = arith.constant 2.500000e-01 : f32
    %74 = vector.broadcast %cst_38 : f32 to vector<2x8x8xf32>
    %75 = arith.mulf %73, %74 : vector<2x8x8xf32>
    %cst_39 = arith.constant dense<0xFF800000> : vector<2x8xf32>
    %76 = vector.multi_reduction <maximumf>, %75, %cst_39 [2] : vector<2x8x8xf32> to vector<2x8xf32>
    %77 = vector.shape_cast %76 : vector<2x8xf32> to vector<2x8x1xf32>
    %78 = vector.broadcast %77 : vector<2x8x1xf32> to vector<2x8x8xf32>
    %79 = arith.subf %75, %78 : vector<2x8x8xf32>
    %80 = math.exp %79 : vector<2x8x8xf32>
    %cst_40 = arith.constant dense<0.000000e+00> : vector<2x8xf32>
    %81 = vector.multi_reduction <add>, %80, %cst_40 [2] : vector<2x8x8xf32> to vector<2x8xf32>
    %82 = vector.shape_cast %81 : vector<2x8xf32> to vector<2x8x1xf32>
    %83 = vector.broadcast %82 : vector<2x8x1xf32> to vector<2x8x8xf32>
    %84 = arith.divf %80, %83 : vector<2x8x8xf32>
    %85 = arith.truncf %84 : vector<2x8x8xf32> to vector<2x8x8xbf16>
    %86 = arith.truncf %70 : vector<2x8x16xf32> to vector<2x8x16xbf16>
    "tpu.trace_start"() <{level = 10 : i32, message = "bqk,bkd->bqd"}> : () -> ()
    %cst_41 = arith.constant dense<0.000000e+00> : vector<2x8x16xf32>
    %87 = tpu.matmul %85, %86, %cst_41 {dimension_numbers = #tpu.dot_dimension_numbers<[2], [1], [1], [2], [0, 0, 0, 1, 1, 2], [0], [0]>} : vector<2x8x8xbf16>, vector<2x8x16xbf16>, vector<2x8x16xf32> -> vector<2x8x16xf32>
    "tpu.trace_stop"() : () -> ()
    %88 = vector.shape_cast %87 : vector<2x8x16xf32> to vector<16x16xf32>
    %c1 = arith.constant 1 : index
    %c0_42 = arith.constant 0 : index
    %c0_43 = arith.constant 0 : index
    %89 = vector.load %arg7[%c1, %c0_42, %c0_43] : memref<4x32x16xf32, #tpu.memory_space<vmem>>, vector<1x32x16xf32>
    %90 = vector.shape_cast %89 : vector<1x32x16xf32> to vector<32x16xf32>
    %91 = arith.truncf %40 : vector<16x32xf32> to vector<16x32xbf16>
    %92 = arith.truncf %90 : vector<32x16xf32> to vector<32x16xbf16>
    %cst_44 = arith.constant dense<0.000000e+00> : vector<16x16xf32>
    %93 = tpu.matmul %91, %92, %cst_44 {dimension_numbers = #tpu.dot_dimension_numbers<[1], [0], [0], [1], [0, 0, 1, 1], [], []>} : vector<16x32xbf16>, vector<32x16xbf16>, vector<16x16xf32> -> vector<16x16xf32>
    %c1_45 = arith.constant 1 : index
    %c0_46 = arith.constant 0 : index
    %c0_47 = arith.constant 0 : index
    %94 = vector.load %arg8[%c1_45, %c0_46, %c0_47] : memref<4x1x16xf32, #tpu.memory_space<vmem>>, vector<1x1x16xf32>
    %95 = vector.shape_cast %94 : vector<1x1x16xf32> to vector<1x16xf32>
    %96 = vector.broadcast %95 : vector<1x16xf32> to vector<16x16xf32>
    %97 = arith.addf %93, %96 : vector<16x16xf32>
    %98 = vector.shape_cast %97 : vector<16x16xf32> to vector<2x8x16xf32>
    %c1_48 = arith.constant 1 : index
    %c0_49 = arith.constant 0 : index
    %c0_50 = arith.constant 0 : index
    %99 = vector.load %arg9[%c1_48, %c0_49, %c0_50] : memref<4x32x16xf32, #tpu.memory_space<vmem>>, vector<1x32x16xf32>
    %100 = vector.shape_cast %99 : vector<1x32x16xf32> to vector<32x16xf32>
    %101 = arith.truncf %40 : vector<16x32xf32> to vector<16x32xbf16>
    %102 = arith.truncf %100 : vector<32x16xf32> to vector<32x16xbf16>
    %cst_51 = arith.constant dense<0.000000e+00> : vector<16x16xf32>
    %103 = tpu.matmul %101, %102, %cst_51 {dimension_numbers = #tpu.dot_dimension_numbers<[1], [0], [0], [1], [0, 0, 1, 1], [], []>} : vector<16x32xbf16>, vector<32x16xbf16>, vector<16x16xf32> -> vector<16x16xf32>
    %c1_52 = arith.constant 1 : index
    %c0_53 = arith.constant 0 : index
    %c0_54 = arith.constant 0 : index
    %104 = vector.load %arg10[%c1_52, %c0_53, %c0_54] : memref<4x1x16xf32, #tpu.memory_space<vmem>>, vector<1x1x16xf32>
    %105 = vector.shape_cast %104 : vector<1x1x16xf32> to vector<1x16xf32>
    %106 = vector.broadcast %105 : vector<1x16xf32> to vector<16x16xf32>
    %107 = arith.addf %103, %106 : vector<16x16xf32>
    %108 = vector.shape_cast %107 : vector<16x16xf32> to vector<2x8x16xf32>
    %c1_55 = arith.constant 1 : index
    %c0_56 = arith.constant 0 : index
    %c0_57 = arith.constant 0 : index
    %109 = vector.load %arg11[%c1_55, %c0_56, %c0_57] : memref<4x32x16xf32, #tpu.memory_space<vmem>>, vector<1x32x16xf32>
    %110 = vector.shape_cast %109 : vector<1x32x16xf32> to vector<32x16xf32>
    %111 = arith.truncf %40 : vector<16x32xf32> to vector<16x32xbf16>
    %112 = arith.truncf %110 : vector<32x16xf32> to vector<32x16xbf16>
    %cst_58 = arith.constant dense<0.000000e+00> : vector<16x16xf32>
    %113 = tpu.matmul %111, %112, %cst_58 {dimension_numbers = #tpu.dot_dimension_numbers<[1], [0], [0], [1], [0, 0, 1, 1], [], []>} : vector<16x32xbf16>, vector<32x16xbf16>, vector<16x16xf32> -> vector<16x16xf32>
    %c1_59 = arith.constant 1 : index
    %c0_60 = arith.constant 0 : index
    %c0_61 = arith.constant 0 : index
    %114 = vector.load %arg12[%c1_59, %c0_60, %c0_61] : memref<4x1x16xf32, #tpu.memory_space<vmem>>, vector<1x1x16xf32>
    %115 = vector.shape_cast %114 : vector<1x1x16xf32> to vector<1x16xf32>
    %116 = vector.broadcast %115 : vector<1x16xf32> to vector<16x16xf32>
    %117 = arith.addf %113, %116 : vector<16x16xf32>
    %118 = vector.shape_cast %117 : vector<16x16xf32> to vector<2x8x16xf32>
    %119 = arith.truncf %98 : vector<2x8x16xf32> to vector<2x8x16xbf16>
    %120 = arith.truncf %108 : vector<2x8x16xf32> to vector<2x8x16xbf16>
    "tpu.trace_start"() <{level = 10 : i32, message = "bqd,bkd->bqk"}> : () -> ()
    %cst_62 = arith.constant dense<0.000000e+00> : vector<2x8x8xf32>
    %121 = tpu.matmul %119, %120, %cst_62 {dimension_numbers = #tpu.dot_dimension_numbers<[2], [2], [1], [1], [0, 0, 0, 1, 1, 1], [0], [0]>} : vector<2x8x16xbf16>, vector<2x8x16xbf16>, vector<2x8x8xf32> -> vector<2x8x8xf32>
    "tpu.trace_stop"() : () -> ()
    %cst_63 = arith.constant 2.500000e-01 : f32
    %122 = vector.broadcast %cst_63 : f32 to vector<2x8x8xf32>
    %123 = arith.mulf %121, %122 : vector<2x8x8xf32>
    %cst_64 = arith.constant dense<0xFF800000> : vector<2x8xf32>
    %124 = vector.multi_reduction <maximumf>, %123, %cst_64 [2] : vector<2x8x8xf32> to vector<2x8xf32>
    %125 = vector.shape_cast %124 : vector<2x8xf32> to vector<2x8x1xf32>
    %126 = vector.broadcast %125 : vector<2x8x1xf32> to vector<2x8x8xf32>
    %127 = arith.subf %123, %126 : vector<2x8x8xf32>
    %128 = math.exp %127 : vector<2x8x8xf32>
    %cst_65 = arith.constant dense<0.000000e+00> : vector<2x8xf32>
    %129 = vector.multi_reduction <add>, %128, %cst_65 [2] : vector<2x8x8xf32> to vector<2x8xf32>
    %130 = vector.shape_cast %129 : vector<2x8xf32> to vector<2x8x1xf32>
    %131 = vector.broadcast %130 : vector<2x8x1xf32> to vector<2x8x8xf32>
    %132 = arith.divf %128, %131 : vector<2x8x8xf32>
    %133 = arith.truncf %132 : vector<2x8x8xf32> to vector<2x8x8xbf16>
    %134 = arith.truncf %118 : vector<2x8x16xf32> to vector<2x8x16xbf16>
    "tpu.trace_start"() <{level = 10 : i32, message = "bqk,bkd->bqd"}> : () -> ()
    %cst_66 = arith.constant dense<0.000000e+00> : vector<2x8x16xf32>
    %135 = tpu.matmul %133, %134, %cst_66 {dimension_numbers = #tpu.dot_dimension_numbers<[2], [1], [1], [2], [0, 0, 0, 1, 1, 2], [0], [0]>} : vector<2x8x8xbf16>, vector<2x8x16xbf16>, vector<2x8x16xf32> -> vector<2x8x16xf32>
    "tpu.trace_stop"() : () -> ()
    %136 = vector.shape_cast %135 : vector<2x8x16xf32> to vector<16x16xf32>
    %137 = tpu.concatenate %88, %136 in 1 : vector<16x16xf32>, vector<16x16xf32> -> vector<16x32xf32>
    %c0_67 = arith.constant 0 : index
    %c0_68 = arith.constant 0 : index
    %c0_69 = arith.constant 0 : index
    %138 = vector.load %arg13[%c0_67, %c0_68, %c0_69] : memref<2x32x32xf32, #tpu.memory_space<vmem>>, vector<1x32x32xf32>
    %139 = vector.shape_cast %138 : vector<1x32x32xf32> to vector<32x32xf32>
    %140 = arith.truncf %137 : vector<16x32xf32> to vector<16x32xbf16>
    %141 = arith.truncf %139 : vector<32x32xf32> to vector<32x32xbf16>
    %cst_70 = arith.constant dense<0.000000e+00> : vector<16x32xf32>
    %142 = tpu.matmul %140, %141, %cst_70 {dimension_numbers = #tpu.dot_dimension_numbers<[1], [0], [0], [1], [0, 0, 1, 1], [], []>} : vector<16x32xbf16>, vector<32x32xbf16>, vector<16x32xf32> -> vector<16x32xf32>
    %c0_71 = arith.constant 0 : index
    %c0_72 = arith.constant 0 : index
    %c0_73 = arith.constant 0 : index
    %143 = vector.load %arg14[%c0_71, %c0_72, %c0_73] : memref<2x1x32xf32, #tpu.memory_space<vmem>>, vector<1x1x32xf32>
    %144 = vector.shape_cast %143 : vector<1x1x32xf32> to vector<1x32xf32>
    %145 = vector.broadcast %144 : vector<1x32xf32> to vector<16x32xf32>
    %146 = arith.addf %142, %145 : vector<16x32xf32>
    %147 = arith.addf %40, %146 : vector<16x32xf32>
    %c0_74 = arith.constant 0 : index
    %c0_75 = arith.constant 0 : index
    %c0_76 = arith.constant 0 : index
    %148 = vector.load %arg15[%c0_74, %c0_75, %c0_76] : memref<2x1x32xf32, #tpu.memory_space<vmem>>, vector<1x1x32xf32>
    %149 = vector.shape_cast %148 : vector<1x1x32xf32> to vector<1x32xf32>
    %c0_77 = arith.constant 0 : index
    %c0_78 = arith.constant 0 : index
    %c0_79 = arith.constant 0 : index
    %150 = vector.load %arg16[%c0_77, %c0_78, %c0_79] : memref<2x1x32xf32, #tpu.memory_space<vmem>>, vector<1x1x32xf32>
    %151 = vector.shape_cast %150 : vector<1x1x32xf32> to vector<1x32xf32>
    %cst_80 = arith.constant dense<0.000000e+00> : vector<16xf32>
    %152 = vector.multi_reduction <add>, %147, %cst_80 [1] : vector<16x32xf32> to vector<16xf32>
    %153 = vector.shape_cast %152 : vector<16xf32> to vector<16x1xf32>
    %cst_81 = arith.constant 3.200000e+01 : f32
    %154 = vector.broadcast %cst_81 : f32 to vector<16x1xf32>
    %155 = arith.divf %153, %154 : vector<16x1xf32>
    %156 = vector.broadcast %155 : vector<16x1xf32> to vector<16x32xf32>
    %157 = arith.subf %147, %156 : vector<16x32xf32>
    %158 = arith.mulf %157, %157 : vector<16x32xf32>
    %cst_82 = arith.constant dense<0.000000e+00> : vector<16xf32>
    %159 = vector.multi_reduction <add>, %158, %cst_82 [1] : vector<16x32xf32> to vector<16xf32>
    %160 = vector.shape_cast %159 : vector<16xf32> to vector<16x1xf32>
    %cst_83 = arith.constant 3.200000e+01 : f32
    %161 = vector.broadcast %cst_83 : f32 to vector<16x1xf32>
    %162 = arith.divf %160, %161 : vector<16x1xf32>
    %cst_84 = arith.constant 9.99999996E-13 : f32
    %163 = vector.broadcast %cst_84 : f32 to vector<16x1xf32>
    %164 = arith.addf %162, %163 : vector<16x1xf32>
    %165 = math.rsqrt %164 : vector<16x1xf32>
    %166 = vector.broadcast %165 : vector<16x1xf32> to vector<16x32xf32>
    %167 = arith.mulf %157, %166 : vector<16x32xf32>
    %168 = vector.broadcast %149 : vector<1x32xf32> to vector<16x32xf32>
    %169 = arith.mulf %167, %168 : vector<16x32xf32>
    %170 = vector.broadcast %151 : vector<1x32xf32> to vector<16x32xf32>
    %171 = arith.addf %169, %170 : vector<16x32xf32>
    %c0_85 = arith.constant 0 : index
    %c0_86 = arith.constant 0 : index
    %c0_87 = arith.constant 0 : index
    %172 = vector.load %arg17[%c0_85, %c0_86, %c0_87] : memref<2x32x64xf32, #tpu.memory_space<vmem>>, vector<1x32x64xf32>
    %173 = vector.shape_cast %172 : vector<1x32x64xf32> to vector<32x64xf32>
    %174 = arith.truncf %171 : vector<16x32xf32> to vector<16x32xbf16>
    %175 = arith.truncf %173 : vector<32x64xf32> to vector<32x64xbf16>
    %cst_88 = arith.constant dense<0.000000e+00> : vector<16x64xf32>
    %176 = tpu.matmul %174, %175, %cst_88 {dimension_numbers = #tpu.dot_dimension_numbers<[1], [0], [0], [1], [0, 0, 1, 1], [], []>} : vector<16x32xbf16>, vector<32x64xbf16>, vector<16x64xf32> -> vector<16x64xf32>
    %c0_89 = arith.constant 0 : index
    %c0_90 = arith.constant 0 : index
    %c0_91 = arith.constant 0 : index
    %177 = vector.load %arg18[%c0_89, %c0_90, %c0_91] : memref<2x1x64xf32, #tpu.memory_space<vmem>>, vector<1x1x64xf32>
    %178 = vector.shape_cast %177 : vector<1x1x64xf32> to vector<1x64xf32>
    %179 = vector.broadcast %178 : vector<1x64xf32> to vector<16x64xf32>
    %180 = arith.addf %176, %179 : vector<16x64xf32>
    %cst_92 = arith.constant 5.000000e-01 : f32
    %181 = vector.broadcast %cst_92 : f32 to vector<16x64xf32>
    %182 = arith.mulf %181, %180 : vector<16x64xf32>
    %cst_93 = arith.constant 4.471500e-02 : f32
    %183 = vector.broadcast %cst_93 : f32 to vector<16x64xf32>
    %184 = arith.mulf %183, %180 : vector<16x64xf32>
    %185 = arith.mulf %184, %180 : vector<16x64xf32>
    %186 = arith.mulf %185, %180 : vector<16x64xf32>
    %187 = arith.addf %180, %186 : vector<16x64xf32>
    %cst_94 = arith.constant 0.797884583 : f32
    %188 = vector.broadcast %cst_94 : f32 to vector<16x64xf32>
    %189 = arith.mulf %188, %187 : vector<16x64xf32>
    %190 = math.tanh %189 : vector<16x64xf32>
    %cst_95 = arith.constant 1.000000e+00 : f32
    %191 = vector.broadcast %cst_95 : f32 to vector<16x64xf32>
    %192 = arith.addf %191, %190 : vector<16x64xf32>
    %193 = arith.mulf %182, %192 : vector<16x64xf32>
    %c0_96 = arith.constant 0 : index
    %c0_97 = arith.constant 0 : index
    %c0_98 = arith.constant 0 : index
    %194 = vector.load %arg19[%c0_96, %c0_97, %c0_98] : memref<2x64x32xf32, #tpu.memory_space<vmem>>, vector<1x64x32xf32>
    %195 = vector.shape_cast %194 : vector<1x64x32xf32> to vector<64x32xf32>
    %196 = arith.truncf %193 : vector<16x64xf32> to vector<16x64xbf16>
    %197 = arith.truncf %195 : vector<64x32xf32> to vector<64x32xbf16>
    %cst_99 = arith.constant dense<0.000000e+00> : vector<16x32xf32>
    %198 = tpu.matmul %196, %197, %cst_99 {dimension_numbers = #tpu.dot_dimension_numbers<[1], [0], [0], [1], [0, 0, 1, 1], [], []>} : vector<16x64xbf16>, vector<64x32xbf16>, vector<16x32xf32> -> vector<16x32xf32>
    %c0_100 = arith.constant 0 : index
    %c0_101 = arith.constant 0 : index
    %c0_102 = arith.constant 0 : index
    %199 = vector.load %arg20[%c0_100, %c0_101, %c0_102] : memref<2x1x32xf32, #tpu.memory_space<vmem>>, vector<1x1x32xf32>
    %200 = vector.shape_cast %199 : vector<1x1x32xf32> to vector<1x32xf32>
    %201 = vector.broadcast %200 : vector<1x32xf32> to vector<16x32xf32>
    %202 = arith.addf %198, %201 : vector<16x32xf32>
    %203 = arith.addf %171, %202 : vector<16x32xf32>
    %c0_103 = arith.constant 0 : index
    %c0_104 = arith.constant 0 : index
    %c0_105 = arith.constant 0 : index
    %204 = vector.load %arg21[%c0_103, %c0_104, %c0_105] : memref<2x1x32xf32, #tpu.memory_space<vmem>>, vector<1x1x32xf32>
    %205 = vector.shape_cast %204 : vector<1x1x32xf32> to vector<1x32xf32>
    %c0_106 = arith.constant 0 : index
    %c0_107 = arith.constant 0 : index
    %c0_108 = arith.constant 0 : index
    %206 = vector.load %arg22[%c0_106, %c0_107, %c0_108] : memref<2x1x32xf32, #tpu.memory_space<vmem>>, vector<1x1x32xf32>
    %207 = vector.shape_cast %206 : vector<1x1x32xf32> to vector<1x32xf32>
    %cst_109 = arith.constant dense<0.000000e+00> : vector<16xf32>
    %208 = vector.multi_reduction <add>, %203, %cst_109 [1] : vector<16x32xf32> to vector<16xf32>
    %209 = vector.shape_cast %208 : vector<16xf32> to vector<16x1xf32>
    %cst_110 = arith.constant 3.200000e+01 : f32
    %210 = vector.broadcast %cst_110 : f32 to vector<16x1xf32>
    %211 = arith.divf %209, %210 : vector<16x1xf32>
    %212 = vector.broadcast %211 : vector<16x1xf32> to vector<16x32xf32>
    %213 = arith.subf %203, %212 : vector<16x32xf32>
    %214 = arith.mulf %213, %213 : vector<16x32xf32>
    %cst_111 = arith.constant dense<0.000000e+00> : vector<16xf32>
    %215 = vector.multi_reduction <add>, %214, %cst_111 [1] : vector<16x32xf32> to vector<16xf32>
    %216 = vector.shape_cast %215 : vector<16xf32> to vector<16x1xf32>
    %cst_112 = arith.constant 3.200000e+01 : f32
    %217 = vector.broadcast %cst_112 : f32 to vector<16x1xf32>
    %218 = arith.divf %216, %217 : vector<16x1xf32>
    %cst_113 = arith.constant 9.99999996E-13 : f32
    %219 = vector.broadcast %cst_113 : f32 to vector<16x1xf32>
    %220 = arith.addf %218, %219 : vector<16x1xf32>
    %221 = math.rsqrt %220 : vector<16x1xf32>
    %222 = vector.broadcast %221 : vector<16x1xf32> to vector<16x32xf32>
    %223 = arith.mulf %213, %222 : vector<16x32xf32>
    %224 = vector.broadcast %205 : vector<1x32xf32> to vector<16x32xf32>
    %225 = arith.mulf %223, %224 : vector<16x32xf32>
    %226 = vector.broadcast %207 : vector<1x32xf32> to vector<16x32xf32>
    %227 = arith.addf %225, %226 : vector<16x32xf32>
    %c2 = arith.constant 2 : index
    %c0_114 = arith.constant 0 : index
    %c0_115 = arith.constant 0 : index
    %228 = vector.load %arg7[%c2, %c0_114, %c0_115] : memref<4x32x16xf32, #tpu.memory_space<vmem>>, vector<1x32x16xf32>
    %229 = vector.shape_cast %228 : vector<1x32x16xf32> to vector<32x16xf32>
    %230 = arith.truncf %227 : vector<16x32xf32> to vector<16x32xbf16>
    %231 = arith.truncf %229 : vector<32x16xf32> to vector<32x16xbf16>
    %cst_116 = arith.constant dense<0.000000e+00> : vector<16x16xf32>
    %232 = tpu.matmul %230, %231, %cst_116 {dimension_numbers = #tpu.dot_dimension_numbers<[1], [0], [0], [1], [0, 0, 1, 1], [], []>} : vector<16x32xbf16>, vector<32x16xbf16>, vector<16x16xf32> -> vector<16x16xf32>
    %c2_117 = arith.constant 2 : index
    %c0_118 = arith.constant 0 : index
    %c0_119 = arith.constant 0 : index
    %233 = vector.load %arg8[%c2_117, %c0_118, %c0_119] : memref<4x1x16xf32, #tpu.memory_space<vmem>>, vector<1x1x16xf32>
    %234 = vector.shape_cast %233 : vector<1x1x16xf32> to vector<1x16xf32>
    %235 = vector.broadcast %234 : vector<1x16xf32> to vector<16x16xf32>
    %236 = arith.addf %232, %235 : vector<16x16xf32>
    %237 = vector.shape_cast %236 : vector<16x16xf32> to vector<2x8x16xf32>
    %c2_120 = arith.constant 2 : index
    %c0_121 = arith.constant 0 : index
    %c0_122 = arith.constant 0 : index
    %238 = vector.load %arg9[%c2_120, %c0_121, %c0_122] : memref<4x32x16xf32, #tpu.memory_space<vmem>>, vector<1x32x16xf32>
    %239 = vector.shape_cast %238 : vector<1x32x16xf32> to vector<32x16xf32>
    %240 = arith.truncf %227 : vector<16x32xf32> to vector<16x32xbf16>
    %241 = arith.truncf %239 : vector<32x16xf32> to vector<32x16xbf16>
    %cst_123 = arith.constant dense<0.000000e+00> : vector<16x16xf32>
    %242 = tpu.matmul %240, %241, %cst_123 {dimension_numbers = #tpu.dot_dimension_numbers<[1], [0], [0], [1], [0, 0, 1, 1], [], []>} : vector<16x32xbf16>, vector<32x16xbf16>, vector<16x16xf32> -> vector<16x16xf32>
    %c2_124 = arith.constant 2 : index
    %c0_125 = arith.constant 0 : index
    %c0_126 = arith.constant 0 : index
    %243 = vector.load %arg10[%c2_124, %c0_125, %c0_126] : memref<4x1x16xf32, #tpu.memory_space<vmem>>, vector<1x1x16xf32>
    %244 = vector.shape_cast %243 : vector<1x1x16xf32> to vector<1x16xf32>
    %245 = vector.broadcast %244 : vector<1x16xf32> to vector<16x16xf32>
    %246 = arith.addf %242, %245 : vector<16x16xf32>
    %247 = vector.shape_cast %246 : vector<16x16xf32> to vector<2x8x16xf32>
    %c2_127 = arith.constant 2 : index
    %c0_128 = arith.constant 0 : index
    %c0_129 = arith.constant 0 : index
    %248 = vector.load %arg11[%c2_127, %c0_128, %c0_129] : memref<4x32x16xf32, #tpu.memory_space<vmem>>, vector<1x32x16xf32>
    %249 = vector.shape_cast %248 : vector<1x32x16xf32> to vector<32x16xf32>
    %250 = arith.truncf %227 : vector<16x32xf32> to vector<16x32xbf16>
    %251 = arith.truncf %249 : vector<32x16xf32> to vector<32x16xbf16>
    %cst_130 = arith.constant dense<0.000000e+00> : vector<16x16xf32>
    %252 = tpu.matmul %250, %251, %cst_130 {dimension_numbers = #tpu.dot_dimension_numbers<[1], [0], [0], [1], [0, 0, 1, 1], [], []>} : vector<16x32xbf16>, vector<32x16xbf16>, vector<16x16xf32> -> vector<16x16xf32>
    %c2_131 = arith.constant 2 : index
    %c0_132 = arith.constant 0 : index
    %c0_133 = arith.constant 0 : index
    %253 = vector.load %arg12[%c2_131, %c0_132, %c0_133] : memref<4x1x16xf32, #tpu.memory_space<vmem>>, vector<1x1x16xf32>
    %254 = vector.shape_cast %253 : vector<1x1x16xf32> to vector<1x16xf32>
    %255 = vector.broadcast %254 : vector<1x16xf32> to vector<16x16xf32>
    %256 = arith.addf %252, %255 : vector<16x16xf32>
    %257 = vector.shape_cast %256 : vector<16x16xf32> to vector<2x8x16xf32>
    %258 = arith.truncf %237 : vector<2x8x16xf32> to vector<2x8x16xbf16>
    %259 = arith.truncf %247 : vector<2x8x16xf32> to vector<2x8x16xbf16>
    "tpu.trace_start"() <{level = 10 : i32, message = "bqd,bkd->bqk"}> : () -> ()
    %cst_134 = arith.constant dense<0.000000e+00> : vector<2x8x8xf32>
    %260 = tpu.matmul %258, %259, %cst_134 {dimension_numbers = #tpu.dot_dimension_numbers<[2], [2], [1], [1], [0, 0, 0, 1, 1, 1], [0], [0]>} : vector<2x8x16xbf16>, vector<2x8x16xbf16>, vector<2x8x8xf32> -> vector<2x8x8xf32>
    "tpu.trace_stop"() : () -> ()
    %cst_135 = arith.constant 2.500000e-01 : f32
    %261 = vector.broadcast %cst_135 : f32 to vector<2x8x8xf32>
    %262 = arith.mulf %260, %261 : vector<2x8x8xf32>
    %cst_136 = arith.constant dense<0xFF800000> : vector<2x8xf32>
    %263 = vector.multi_reduction <maximumf>, %262, %cst_136 [2] : vector<2x8x8xf32> to vector<2x8xf32>
    %264 = vector.shape_cast %263 : vector<2x8xf32> to vector<2x8x1xf32>
    %265 = vector.broadcast %264 : vector<2x8x1xf32> to vector<2x8x8xf32>
    %266 = arith.subf %262, %265 : vector<2x8x8xf32>
    %267 = math.exp %266 : vector<2x8x8xf32>
    %cst_137 = arith.constant dense<0.000000e+00> : vector<2x8xf32>
    %268 = vector.multi_reduction <add>, %267, %cst_137 [2] : vector<2x8x8xf32> to vector<2x8xf32>
    %269 = vector.shape_cast %268 : vector<2x8xf32> to vector<2x8x1xf32>
    %270 = vector.broadcast %269 : vector<2x8x1xf32> to vector<2x8x8xf32>
    %271 = arith.divf %267, %270 : vector<2x8x8xf32>
    %272 = arith.truncf %271 : vector<2x8x8xf32> to vector<2x8x8xbf16>
    %273 = arith.truncf %257 : vector<2x8x16xf32> to vector<2x8x16xbf16>
    "tpu.trace_start"() <{level = 10 : i32, message = "bqk,bkd->bqd"}> : () -> ()
    %cst_138 = arith.constant dense<0.000000e+00> : vector<2x8x16xf32>
    %274 = tpu.matmul %272, %273, %cst_138 {dimension_numbers = #tpu.dot_dimension_numbers<[2], [1], [1], [2], [0, 0, 0, 1, 1, 2], [0], [0]>} : vector<2x8x8xbf16>, vector<2x8x16xbf16>, vector<2x8x16xf32> -> vector<2x8x16xf32>
    "tpu.trace_stop"() : () -> ()
    %275 = vector.shape_cast %274 : vector<2x8x16xf32> to vector<16x16xf32>
    %c3 = arith.constant 3 : index
    %c0_139 = arith.constant 0 : index
    %c0_140 = arith.constant 0 : index
    %276 = vector.load %arg7[%c3, %c0_139, %c0_140] : memref<4x32x16xf32, #tpu.memory_space<vmem>>, vector<1x32x16xf32>
    %277 = vector.shape_cast %276 : vector<1x32x16xf32> to vector<32x16xf32>
    %278 = arith.truncf %227 : vector<16x32xf32> to vector<16x32xbf16>
    %279 = arith.truncf %277 : vector<32x16xf32> to vector<32x16xbf16>
    %cst_141 = arith.constant dense<0.000000e+00> : vector<16x16xf32>
    %280 = tpu.matmul %278, %279, %cst_141 {dimension_numbers = #tpu.dot_dimension_numbers<[1], [0], [0], [1], [0, 0, 1, 1], [], []>} : vector<16x32xbf16>, vector<32x16xbf16>, vector<16x16xf32> -> vector<16x16xf32>
    %c3_142 = arith.constant 3 : index
    %c0_143 = arith.constant 0 : index
    %c0_144 = arith.constant 0 : index
    %281 = vector.load %arg8[%c3_142, %c0_143, %c0_144] : memref<4x1x16xf32, #tpu.memory_space<vmem>>, vector<1x1x16xf32>
    %282 = vector.shape_cast %281 : vector<1x1x16xf32> to vector<1x16xf32>
    %283 = vector.broadcast %282 : vector<1x16xf32> to vector<16x16xf32>
    %284 = arith.addf %280, %283 : vector<16x16xf32>
    %285 = vector.shape_cast %284 : vector<16x16xf32> to vector<2x8x16xf32>
    %c3_145 = arith.constant 3 : index
    %c0_146 = arith.constant 0 : index
    %c0_147 = arith.constant 0 : index
    %286 = vector.load %arg9[%c3_145, %c0_146, %c0_147] : memref<4x32x16xf32, #tpu.memory_space<vmem>>, vector<1x32x16xf32>
    %287 = vector.shape_cast %286 : vector<1x32x16xf32> to vector<32x16xf32>
    %288 = arith.truncf %227 : vector<16x32xf32> to vector<16x32xbf16>
    %289 = arith.truncf %287 : vector<32x16xf32> to vector<32x16xbf16>
    %cst_148 = arith.constant dense<0.000000e+00> : vector<16x16xf32>
    %290 = tpu.matmul %288, %289, %cst_148 {dimension_numbers = #tpu.dot_dimension_numbers<[1], [0], [0], [1], [0, 0, 1, 1], [], []>} : vector<16x32xbf16>, vector<32x16xbf16>, vector<16x16xf32> -> vector<16x16xf32>
    %c3_149 = arith.constant 3 : index
    %c0_150 = arith.constant 0 : index
    %c0_151 = arith.constant 0 : index
    %291 = vector.load %arg10[%c3_149, %c0_150, %c0_151] : memref<4x1x16xf32, #tpu.memory_space<vmem>>, vector<1x1x16xf32>
    %292 = vector.shape_cast %291 : vector<1x1x16xf32> to vector<1x16xf32>
    %293 = vector.broadcast %292 : vector<1x16xf32> to vector<16x16xf32>
    %294 = arith.addf %290, %293 : vector<16x16xf32>
    %295 = vector.shape_cast %294 : vector<16x16xf32> to vector<2x8x16xf32>
    %c3_152 = arith.constant 3 : index
    %c0_153 = arith.constant 0 : index
    %c0_154 = arith.constant 0 : index
    %296 = vector.load %arg11[%c3_152, %c0_153, %c0_154] : memref<4x32x16xf32, #tpu.memory_space<vmem>>, vector<1x32x16xf32>
    %297 = vector.shape_cast %296 : vector<1x32x16xf32> to vector<32x16xf32>
    %298 = arith.truncf %227 : vector<16x32xf32> to vector<16x32xbf16>
    %299 = arith.truncf %297 : vector<32x16xf32> to vector<32x16xbf16>
    %cst_155 = arith.constant dense<0.000000e+00> : vector<16x16xf32>
    %300 = tpu.matmul %298, %299, %cst_155 {dimension_numbers = #tpu.dot_dimension_numbers<[1], [0], [0], [1], [0, 0, 1, 1], [], []>} : vector<16x32xbf16>, vector<32x16xbf16>, vector<16x16xf32> -> vector<16x16xf32>
    %c3_156 = arith.constant 3 : index
    %c0_157 = arith.constant 0 : index
    %c0_158 = arith.constant 0 : index
    %301 = vector.load %arg12[%c3_156, %c0_157, %c0_158] : memref<4x1x16xf32, #tpu.memory_space<vmem>>, vector<1x1x16xf32>
    %302 = vector.shape_cast %301 : vector<1x1x16xf32> to vector<1x16xf32>
    %303 = vector.broadcast %302 : vector<1x16xf32> to vector<16x16xf32>
    %304 = arith.addf %300, %303 : vector<16x16xf32>
    %305 = vector.shape_cast %304 : vector<16x16xf32> to vector<2x8x16xf32>
    %306 = arith.truncf %285 : vector<2x8x16xf32> to vector<2x8x16xbf16>
    %307 = arith.truncf %295 : vector<2x8x16xf32> to vector<2x8x16xbf16>
    "tpu.trace_start"() <{level = 10 : i32, message = "bqd,bkd->bqk"}> : () -> ()
    %cst_159 = arith.constant dense<0.000000e+00> : vector<2x8x8xf32>
    %308 = tpu.matmul %306, %307, %cst_159 {dimension_numbers = #tpu.dot_dimension_numbers<[2], [2], [1], [1], [0, 0, 0, 1, 1, 1], [0], [0]>} : vector<2x8x16xbf16>, vector<2x8x16xbf16>, vector<2x8x8xf32> -> vector<2x8x8xf32>
    "tpu.trace_stop"() : () -> ()
    %cst_160 = arith.constant 2.500000e-01 : f32
    %309 = vector.broadcast %cst_160 : f32 to vector<2x8x8xf32>
    %310 = arith.mulf %308, %309 : vector<2x8x8xf32>
    %cst_161 = arith.constant dense<0xFF800000> : vector<2x8xf32>
    %311 = vector.multi_reduction <maximumf>, %310, %cst_161 [2] : vector<2x8x8xf32> to vector<2x8xf32>
    %312 = vector.shape_cast %311 : vector<2x8xf32> to vector<2x8x1xf32>
    %313 = vector.broadcast %312 : vector<2x8x1xf32> to vector<2x8x8xf32>
    %314 = arith.subf %310, %313 : vector<2x8x8xf32>
    %315 = math.exp %314 : vector<2x8x8xf32>
    %cst_162 = arith.constant dense<0.000000e+00> : vector<2x8xf32>
    %316 = vector.multi_reduction <add>, %315, %cst_162 [2] : vector<2x8x8xf32> to vector<2x8xf32>
    %317 = vector.shape_cast %316 : vector<2x8xf32> to vector<2x8x1xf32>
    %318 = vector.broadcast %317 : vector<2x8x1xf32> to vector<2x8x8xf32>
    %319 = arith.divf %315, %318 : vector<2x8x8xf32>
    %320 = arith.truncf %319 : vector<2x8x8xf32> to vector<2x8x8xbf16>
    %321 = arith.truncf %305 : vector<2x8x16xf32> to vector<2x8x16xbf16>
    "tpu.trace_start"() <{level = 10 : i32, message = "bqk,bkd->bqd"}> : () -> ()
    %cst_163 = arith.constant dense<0.000000e+00> : vector<2x8x16xf32>
    %322 = tpu.matmul %320, %321, %cst_163 {dimension_numbers = #tpu.dot_dimension_numbers<[2], [1], [1], [2], [0, 0, 0, 1, 1, 2], [0], [0]>} : vector<2x8x8xbf16>, vector<2x8x16xbf16>, vector<2x8x16xf32> -> vector<2x8x16xf32>
    "tpu.trace_stop"() : () -> ()
    %323 = vector.shape_cast %322 : vector<2x8x16xf32> to vector<16x16xf32>
    %324 = tpu.concatenate %275, %323 in 1 : vector<16x16xf32>, vector<16x16xf32> -> vector<16x32xf32>
    %c1_164 = arith.constant 1 : index
    %c0_165 = arith.constant 0 : index
    %c0_166 = arith.constant 0 : index
    %325 = vector.load %arg13[%c1_164, %c0_165, %c0_166] : memref<2x32x32xf32, #tpu.memory_space<vmem>>, vector<1x32x32xf32>
    %326 = vector.shape_cast %325 : vector<1x32x32xf32> to vector<32x32xf32>
    %327 = arith.truncf %324 : vector<16x32xf32> to vector<16x32xbf16>
    %328 = arith.truncf %326 : vector<32x32xf32> to vector<32x32xbf16>
    %cst_167 = arith.constant dense<0.000000e+00> : vector<16x32xf32>
    %329 = tpu.matmul %327, %328, %cst_167 {dimension_numbers = #tpu.dot_dimension_numbers<[1], [0], [0], [1], [0, 0, 1, 1], [], []>} : vector<16x32xbf16>, vector<32x32xbf16>, vector<16x32xf32> -> vector<16x32xf32>
    %c1_168 = arith.constant 1 : index
    %c0_169 = arith.constant 0 : index
    %c0_170 = arith.constant 0 : index
    %330 = vector.load %arg14[%c1_168, %c0_169, %c0_170] : memref<2x1x32xf32, #tpu.memory_space<vmem>>, vector<1x1x32xf32>
    %331 = vector.shape_cast %330 : vector<1x1x32xf32> to vector<1x32xf32>
    %332 = vector.broadcast %331 : vector<1x32xf32> to vector<16x32xf32>
    %333 = arith.addf %329, %332 : vector<16x32xf32>
    %334 = arith.addf %227, %333 : vector<16x32xf32>
    %c1_171 = arith.constant 1 : index
    %c0_172 = arith.constant 0 : index
    %c0_173 = arith.constant 0 : index
    %335 = vector.load %arg15[%c1_171, %c0_172, %c0_173] : memref<2x1x32xf32, #tpu.memory_space<vmem>>, vector<1x1x32xf32>
    %336 = vector.shape_cast %335 : vector<1x1x32xf32> to vector<1x32xf32>
    %c1_174 = arith.constant 1 : index
    %c0_175 = arith.constant 0 : index
    %c0_176 = arith.constant 0 : index
    %337 = vector.load %arg16[%c1_174, %c0_175, %c0_176] : memref<2x1x32xf32, #tpu.memory_space<vmem>>, vector<1x1x32xf32>
    %338 = vector.shape_cast %337 : vector<1x1x32xf32> to vector<1x32xf32>
    %cst_177 = arith.constant dense<0.000000e+00> : vector<16xf32>
    %339 = vector.multi_reduction <add>, %334, %cst_177 [1] : vector<16x32xf32> to vector<16xf32>
    %340 = vector.shape_cast %339 : vector<16xf32> to vector<16x1xf32>
    %cst_178 = arith.constant 3.200000e+01 : f32
    %341 = vector.broadcast %cst_178 : f32 to vector<16x1xf32>
    %342 = arith.divf %340, %341 : vector<16x1xf32>
    %343 = vector.broadcast %342 : vector<16x1xf32> to vector<16x32xf32>
    %344 = arith.subf %334, %343 : vector<16x32xf32>
    %345 = arith.mulf %344, %344 : vector<16x32xf32>
    %cst_179 = arith.constant dense<0.000000e+00> : vector<16xf32>
    %346 = vector.multi_reduction <add>, %345, %cst_179 [1] : vector<16x32xf32> to vector<16xf32>
    %347 = vector.shape_cast %346 : vector<16xf32> to vector<16x1xf32>
    %cst_180 = arith.constant 3.200000e+01 : f32
    %348 = vector.broadcast %cst_180 : f32 to vector<16x1xf32>
    %349 = arith.divf %347, %348 : vector<16x1xf32>
    %cst_181 = arith.constant 9.99999996E-13 : f32
    %350 = vector.broadcast %cst_181 : f32 to vector<16x1xf32>
    %351 = arith.addf %349, %350 : vector<16x1xf32>
    %352 = math.rsqrt %351 : vector<16x1xf32>
    %353 = vector.broadcast %352 : vector<16x1xf32> to vector<16x32xf32>
    %354 = arith.mulf %344, %353 : vector<16x32xf32>
    %355 = vector.broadcast %336 : vector<1x32xf32> to vector<16x32xf32>
    %356 = arith.mulf %354, %355 : vector<16x32xf32>
    %357 = vector.broadcast %338 : vector<1x32xf32> to vector<16x32xf32>
    %358 = arith.addf %356, %357 : vector<16x32xf32>
    %c1_182 = arith.constant 1 : index
    %c0_183 = arith.constant 0 : index
    %c0_184 = arith.constant 0 : index
    %359 = vector.load %arg17[%c1_182, %c0_183, %c0_184] : memref<2x32x64xf32, #tpu.memory_space<vmem>>, vector<1x32x64xf32>
    %360 = vector.shape_cast %359 : vector<1x32x64xf32> to vector<32x64xf32>
    %361 = arith.truncf %358 : vector<16x32xf32> to vector<16x32xbf16>
    %362 = arith.truncf %360 : vector<32x64xf32> to vector<32x64xbf16>
    %cst_185 = arith.constant dense<0.000000e+00> : vector<16x64xf32>
    %363 = tpu.matmul %361, %362, %cst_185 {dimension_numbers = #tpu.dot_dimension_numbers<[1], [0], [0], [1], [0, 0, 1, 1], [], []>} : vector<16x32xbf16>, vector<32x64xbf16>, vector<16x64xf32> -> vector<16x64xf32>
    %c1_186 = arith.constant 1 : index
    %c0_187 = arith.constant 0 : index
    %c0_188 = arith.constant 0 : index
    %364 = vector.load %arg18[%c1_186, %c0_187, %c0_188] : memref<2x1x64xf32, #tpu.memory_space<vmem>>, vector<1x1x64xf32>
    %365 = vector.shape_cast %364 : vector<1x1x64xf32> to vector<1x64xf32>
    %366 = vector.broadcast %365 : vector<1x64xf32> to vector<16x64xf32>
    %367 = arith.addf %363, %366 : vector<16x64xf32>
    %cst_189 = arith.constant 5.000000e-01 : f32
    %368 = vector.broadcast %cst_189 : f32 to vector<16x64xf32>
    %369 = arith.mulf %368, %367 : vector<16x64xf32>
    %cst_190 = arith.constant 4.471500e-02 : f32
    %370 = vector.broadcast %cst_190 : f32 to vector<16x64xf32>
    %371 = arith.mulf %370, %367 : vector<16x64xf32>
    %372 = arith.mulf %371, %367 : vector<16x64xf32>
    %373 = arith.mulf %372, %367 : vector<16x64xf32>
    %374 = arith.addf %367, %373 : vector<16x64xf32>
    %cst_191 = arith.constant 0.797884583 : f32
    %375 = vector.broadcast %cst_191 : f32 to vector<16x64xf32>
    %376 = arith.mulf %375, %374 : vector<16x64xf32>
    %377 = math.tanh %376 : vector<16x64xf32>
    %cst_192 = arith.constant 1.000000e+00 : f32
    %378 = vector.broadcast %cst_192 : f32 to vector<16x64xf32>
    %379 = arith.addf %378, %377 : vector<16x64xf32>
    %380 = arith.mulf %369, %379 : vector<16x64xf32>
    %c1_193 = arith.constant 1 : index
    %c0_194 = arith.constant 0 : index
    %c0_195 = arith.constant 0 : index
    %381 = vector.load %arg19[%c1_193, %c0_194, %c0_195] : memref<2x64x32xf32, #tpu.memory_space<vmem>>, vector<1x64x32xf32>
    %382 = vector.shape_cast %381 : vector<1x64x32xf32> to vector<64x32xf32>
    %383 = arith.truncf %380 : vector<16x64xf32> to vector<16x64xbf16>
    %384 = arith.truncf %382 : vector<64x32xf32> to vector<64x32xbf16>
    %cst_196 = arith.constant dense<0.000000e+00> : vector<16x32xf32>
    %385 = tpu.matmul %383, %384, %cst_196 {dimension_numbers = #tpu.dot_dimension_numbers<[1], [0], [0], [1], [0, 0, 1, 1], [], []>} : vector<16x64xbf16>, vector<64x32xbf16>, vector<16x32xf32> -> vector<16x32xf32>
    %c1_197 = arith.constant 1 : index
    %c0_198 = arith.constant 0 : index
    %c0_199 = arith.constant 0 : index
    %386 = vector.load %arg20[%c1_197, %c0_198, %c0_199] : memref<2x1x32xf32, #tpu.memory_space<vmem>>, vector<1x1x32xf32>
    %387 = vector.shape_cast %386 : vector<1x1x32xf32> to vector<1x32xf32>
    %388 = vector.broadcast %387 : vector<1x32xf32> to vector<16x32xf32>
    %389 = arith.addf %385, %388 : vector<16x32xf32>
    %390 = arith.addf %358, %389 : vector<16x32xf32>
    %c1_200 = arith.constant 1 : index
    %c0_201 = arith.constant 0 : index
    %c0_202 = arith.constant 0 : index
    %391 = vector.load %arg21[%c1_200, %c0_201, %c0_202] : memref<2x1x32xf32, #tpu.memory_space<vmem>>, vector<1x1x32xf32>
    %392 = vector.shape_cast %391 : vector<1x1x32xf32> to vector<1x32xf32>
    %c1_203 = arith.constant 1 : index
    %c0_204 = arith.constant 0 : index
    %c0_205 = arith.constant 0 : index
    %393 = vector.load %arg22[%c1_203, %c0_204, %c0_205] : memref<2x1x32xf32, #tpu.memory_space<vmem>>, vector<1x1x32xf32>
    %394 = vector.shape_cast %393 : vector<1x1x32xf32> to vector<1x32xf32>
    %cst_206 = arith.constant dense<0.000000e+00> : vector<16xf32>
    %395 = vector.multi_reduction <add>, %390, %cst_206 [1] : vector<16x32xf32> to vector<16xf32>
    %396 = vector.shape_cast %395 : vector<16xf32> to vector<16x1xf32>
    %cst_207 = arith.constant 3.200000e+01 : f32
    %397 = vector.broadcast %cst_207 : f32 to vector<16x1xf32>
    %398 = arith.divf %396, %397 : vector<16x1xf32>
    %399 = vector.broadcast %398 : vector<16x1xf32> to vector<16x32xf32>
    %400 = arith.subf %390, %399 : vector<16x32xf32>
    %401 = arith.mulf %400, %400 : vector<16x32xf32>
    %cst_208 = arith.constant dense<0.000000e+00> : vector<16xf32>
    %402 = vector.multi_reduction <add>, %401, %cst_208 [1] : vector<16x32xf32> to vector<16xf32>
    %403 = vector.shape_cast %402 : vector<16xf32> to vector<16x1xf32>
    %cst_209 = arith.constant 3.200000e+01 : f32
    %404 = vector.broadcast %cst_209 : f32 to vector<16x1xf32>
    %405 = arith.divf %403, %404 : vector<16x1xf32>
    %cst_210 = arith.constant 9.99999996E-13 : f32
    %406 = vector.broadcast %cst_210 : f32 to vector<16x1xf32>
    %407 = arith.addf %405, %406 : vector<16x1xf32>
    %408 = math.rsqrt %407 : vector<16x1xf32>
    %409 = vector.broadcast %408 : vector<16x1xf32> to vector<16x32xf32>
    %410 = arith.mulf %400, %409 : vector<16x32xf32>
    %411 = vector.broadcast %392 : vector<1x32xf32> to vector<16x32xf32>
    %412 = arith.mulf %410, %411 : vector<16x32xf32>
    %413 = vector.broadcast %394 : vector<1x32xf32> to vector<16x32xf32>
    %414 = arith.addf %412, %413 : vector<16x32xf32>
    %c0_211 = arith.constant 0 : index
    %c0_212 = arith.constant 0 : index
    %415 = vector.load %arg23[%c0_211, %c0_212] : memref<32x32xf32, #tpu.memory_space<vmem>>, vector<32x32xf32>
    %416 = arith.truncf %414 : vector<16x32xf32> to vector<16x32xbf16>
    %417 = arith.truncf %415 : vector<32x32xf32> to vector<32x32xbf16>
    %cst_213 = arith.constant dense<0.000000e+00> : vector<16x32xf32>
    %418 = tpu.matmul %416, %417, %cst_213 {dimension_numbers = #tpu.dot_dimension_numbers<[1], [0], [0], [1], [0, 0, 1, 1], [], []>} : vector<16x32xbf16>, vector<32x32xbf16>, vector<16x32xf32> -> vector<16x32xf32>
    %c0_214 = arith.constant 0 : index
    %c0_215 = arith.constant 0 : index
    %419 = vector.load %arg24[%c0_214, %c0_215] : memref<1x32xf32, #tpu.memory_space<vmem>>, vector<1x32xf32>
    %420 = vector.broadcast %419 : vector<1x32xf32> to vector<16x32xf32>
    %421 = arith.addf %418, %420 : vector<16x32xf32>
    %cst_216 = arith.constant 5.000000e-01 : f32
    %422 = vector.broadcast %cst_216 : f32 to vector<16x32xf32>
    %423 = arith.mulf %422, %421 : vector<16x32xf32>
    %cst_217 = arith.constant 4.471500e-02 : f32
    %424 = vector.broadcast %cst_217 : f32 to vector<16x32xf32>
    %425 = arith.mulf %424, %421 : vector<16x32xf32>
    %426 = arith.mulf %425, %421 : vector<16x32xf32>
    %427 = arith.mulf %426, %421 : vector<16x32xf32>
    %428 = arith.addf %421, %427 : vector<16x32xf32>
    %cst_218 = arith.constant 0.797884583 : f32
    %429 = vector.broadcast %cst_218 : f32 to vector<16x32xf32>
    %430 = arith.mulf %429, %428 : vector<16x32xf32>
    %431 = math.tanh %430 : vector<16x32xf32>
    %cst_219 = arith.constant 1.000000e+00 : f32
    %432 = vector.broadcast %cst_219 : f32 to vector<16x32xf32>
    %433 = arith.addf %432, %431 : vector<16x32xf32>
    %434 = arith.mulf %423, %433 : vector<16x32xf32>
    %c0_220 = arith.constant 0 : index
    %c0_221 = arith.constant 0 : index
    %435 = vector.load %arg25[%c0_220, %c0_221] : memref<1x32xf32, #tpu.memory_space<vmem>>, vector<1x32xf32>
    %c0_222 = arith.constant 0 : index
    %c0_223 = arith.constant 0 : index
    %436 = vector.load %arg26[%c0_222, %c0_223] : memref<1x32xf32, #tpu.memory_space<vmem>>, vector<1x32xf32>
    %cst_224 = arith.constant dense<0.000000e+00> : vector<16xf32>
    %437 = vector.multi_reduction <add>, %434, %cst_224 [1] : vector<16x32xf32> to vector<16xf32>
    %438 = vector.shape_cast %437 : vector<16xf32> to vector<16x1xf32>
    %cst_225 = arith.constant 3.200000e+01 : f32
    %439 = vector.broadcast %cst_225 : f32 to vector<16x1xf32>
    %440 = arith.divf %438, %439 : vector<16x1xf32>
    %441 = vector.broadcast %440 : vector<16x1xf32> to vector<16x32xf32>
    %442 = arith.subf %434, %441 : vector<16x32xf32>
    %443 = arith.mulf %442, %442 : vector<16x32xf32>
    %cst_226 = arith.constant dense<0.000000e+00> : vector<16xf32>
    %444 = vector.multi_reduction <add>, %443, %cst_226 [1] : vector<16x32xf32> to vector<16xf32>
    %445 = vector.shape_cast %444 : vector<16xf32> to vector<16x1xf32>
    %cst_227 = arith.constant 3.200000e+01 : f32
    %446 = vector.broadcast %cst_227 : f32 to vector<16x1xf32>
    %447 = arith.divf %445, %446 : vector<16x1xf32>
    %cst_228 = arith.constant 9.99999996E-13 : f32
    %448 = vector.broadcast %cst_228 : f32 to vector<16x1xf32>
    %449 = arith.addf %447, %448 : vector<16x1xf32>
    %450 = math.rsqrt %449 : vector<16x1xf32>
    %451 = vector.broadcast %450 : vector<16x1xf32> to vector<16x32xf32>
    %452 = arith.mulf %442, %451 : vector<16x32xf32>
    %453 = vector.broadcast %435 : vector<1x32xf32> to vector<16x32xf32>
    %454 = arith.mulf %452, %453 : vector<16x32xf32>
    %455 = vector.broadcast %436 : vector<1x32xf32> to vector<16x32xf32>
    %456 = arith.addf %454, %455 : vector<16x32xf32>
    %457 = arith.truncf %456 : vector<16x32xf32> to vector<16x32xbf16>
    %458 = arith.truncf %6 : vector<128x32xf32> to vector<128x32xbf16>
    %cst_229 = arith.constant dense<0.000000e+00> : vector<16x128xf32>
    %459 = tpu.matmul %457, %458, %cst_229 {dimension_numbers = #tpu.dot_dimension_numbers<[1], [1], [0], [0], [0, 0, 1, 0], [], []>} : vector<16x32xbf16>, vector<128x32xbf16>, vector<16x128xf32> -> vector<16x128xf32>
    %c0_230 = arith.constant 0 : index
    %c0_231 = arith.constant 0 : index
    %460 = vector.load %arg27[%c0_230, %c0_231] : memref<1x128xf32, #tpu.memory_space<vmem>>, vector<1x128xf32>
    %461 = vector.broadcast %460 : vector<1x128xf32> to vector<16x128xf32>
    %462 = arith.addf %459, %461 : vector<16x128xf32>
    %c0_232 = arith.constant 0 : index
    %c0_233 = arith.constant 0 : index
    %463 = vector.load %arg28[%c0_232, %c0_233] : memref<16x128xf32, #tpu.memory_space<vmem>>, vector<16x128xf32>
    tpu.vector_store %arg28[%c0_232, %c0_233], %462 {strides = array<i32>} : memref<16x128xf32, #tpu.memory_space<vmem>>, vector<16x128xf32>,
    %cst_234 = arith.constant dense<0xFF800000> : vector<16xf32>
    %464 = vector.multi_reduction <maximumf>, %462, %cst_234 [1] : vector<16x128xf32> to vector<16xf32>
    %465 = vector.shape_cast %464 : vector<16xf32> to vector<16x1xf32>
    %466 = vector.broadcast %465 : vector<16x1xf32> to vector<16x128xf32>
    %467 = arith.subf %462, %466 : vector<16x128xf32>
    %468 = math.exp %467 : vector<16x128xf32>
    %cst_235 = arith.constant dense<0.000000e+00> : vector<16xf32>
    %469 = vector.multi_reduction <add>, %468, %cst_235 [1] : vector<16x128xf32> to vector<16xf32>
    %470 = vector.shape_cast %469 : vector<16xf32> to vector<16x1xf32>
    %471 = math.log %470 : vector<16x1xf32>
    %472 = arith.addf %471, %465 : vector<16x1xf32>
    %473 = vector.broadcast %472 : vector<16x1xf32> to vector<16x128xf32>
    %474 = arith.subf %462, %473 : vector<16x128xf32>
    %c0_236 = arith.constant 0 : index
    %c0_237 = arith.constant 0 : index
    %475 = vector.load %arg1[%c0_236, %c0_237] : memref<16x1xi32, #tpu.memory_space<vmem>>, vector<16x1xi32>
    %476 = vector.broadcast %475 : vector<16x1xi32> to vector<16x128xi32>
    %477 = arith.cmpi eq, %476, %0 : vector<16x128xi32>
    %cst_238 = arith.constant 0.000000e+00 : f32
    %478 = vector.broadcast %cst_238 : f32 to vector<16x128xf32>
    %479 = arith.select %477, %474, %478 : vector<16x128xi1>, vector<16x128xf32>
    %cst_239 = arith.constant dense<0.000000e+00> : vector<16xf32>
    %480 = vector.multi_reduction <add>, %479, %cst_239 [1] : vector<16x128xf32> to vector<16xf32>
    %481 = vector.shape_cast %480 : vector<16xf32> to vector<16x1xf32>
    %c0_i32 = arith.constant 0 : i32
    %482 = vector.broadcast %c0_i32 : i32 to vector<16x1xi32>
    %483 = arith.cmpi sge, %475, %482 : vector<16x1xi32>
    %484 = arith.extui %483 : vector<16x1xi1> to vector<16x1xi32>
    %485 = arith.sitofp %484 : vector<16x1xi32> to vector<16x1xf32>
    %cst_240 = arith.constant 0.000000e+00 : f32
    %486 = vector.broadcast %cst_240 : f32 to vector<16x1xf32>
    %487 = arith.subf %486, %481 : vector<16x1xf32>
    %488 = arith.mulf %485, %487 : vector<16x1xf32>
    %cst_241 = arith.constant dense<0.000000e+00> : vector<1xf32>
    %489 = vector.multi_reduction <add>, %488, %cst_241 [0] : vector<16x1xf32> to vector<1xf32>
    %490 = vector.shape_cast %489 : vector<1xf32> to vector<1x1xf32>
    %cst_242 = arith.constant dense<0.000000e+00> : vector<1xf32>
    %491 = vector.multi_reduction <add>, %485, %cst_242 [0] : vector<16x1xf32> to vector<1xf32>
    %492 = vector.shape_cast %491 : vector<1xf32> to vector<1x1xf32>
    %493 = arith.divf %490, %492 : vector<1x1xf32>
    %494 = vector.shape_cast %493 : vector<1x1xf32> to vector<1x1xf32>
    %495 = vector.broadcast %494 : vector<1x1xf32> to vector<1x128xf32>
    %c0_243 = arith.constant 0 : index
    %c0_244 = arith.constant 0 : index
    %496 = vector.load %arg29[%c0_243, %c0_244] : memref<1x128xf32, #tpu.memory_space<vmem>>, vector<1x128xf32>
    tpu.vector_store %arg29[%c0_243, %c0_244], %495 {strides = array<i32>} : memref<1x128xf32, #tpu.memory_space<vmem>>, vector<1x128xf32>,
    return
  }
}

</mosaic_0001>

<bundles_post_ra>
// kernel: pretrain_forward.1
= control target key start
LH: loop header
LB: loop body
LE: loop exit
PB: predicated region body
PF: predicated region fallthrough
CT: control target
= control target key end

     0   :  { %s2211_s6 = smov 1   ;;  %s2212_s10 = smov 2   ;;  %s2786_s0 = inlined_call_operand.smem [shape: u32[30], index: -1, kind: input, shape index: {}] }
   0x1   :  { %s2257_s5 = sld [smem:[%s2786_s0]]   ;;  %s2213_s14 = smov 3  }
   0x2   :  { %s2262_s9 = sld [smem:[%s2786_s0 + %s2211_s6]]   ;;  %s2214_s18 = smov 4  }
   0x3   :  { %s2267_s13 = sld [smem:[%s2786_s0 + %s2212_s10]]   ;;  %s2215_s22 = smov 5  }
   0x4   :  { %s2272_s17 = sld [smem:[%s2786_s0 + %s2213_s14]]   ;;  %s2216_s26 = smov 6  }
   0x5   :  { %s2277_s21 = sld [smem:[%s2786_s0 + %s2214_s18]]   ;;  %s2217_s30 = smov 7  }
   0x6   :  { %s2282_s25 = sld [smem:[%s2786_s0 + %s2215_s22]]   ;;  %s2218_s4 = smov 8  }
   0x7   :  { %s2287_s29 = sld [smem:[%s2786_s0 + %s2216_s26]]   ;;  %s2219_s10 = smov 9  }
   0x8   :  { %2797 = sst [smem:[#allocation8_spill]] %s2262_s9  ;;  %s2220_s15 = smov 10  }
   0x9   :  { %s2292_s3 = sld [smem:[%s2786_s0 + %s2217_s30]]   ;;  %s2221_s20 = smov 11  }
   0xa   :  { %s2297_s8 = sld [smem:[%s2786_s0 + %s2218_s4]]   ;;  %s2222_s26 = smov 12  }
   0xb   :  { %s2302_s14 = sld [smem:[%s2786_s0 + %s2219_s10]]   ;;  %s2223_s1 = smov 13  }
   0xc   :  { %s2307_s19 = sld [smem:[%s2786_s0 + %s2220_s15]]   ;;  %s2224_s7 = smov 14  }
   0xd   :  { %s2312_s24 = sld [smem:[%s2786_s0 + %s2221_s20]]   ;;  %s2225_s15 = smov 15  }
   0xe   :  { %s2317_s30 = sld [smem:[%s2786_s0 + %s2222_s26]]   ;;  %s2226_s22 = smov 16  }
   0xf   :  { %s2322_s6 = sld [smem:[%s2786_s0 + %s2223_s1]]   ;;  %s2227_s28 = smov 17  }
  0x10   :  { %s2327_s12 = sld [smem:[%s2786_s0 + %s2224_s7]]   ;;  %s2228_s7 = smov 18  }
  0x11   :  { %s2332_s20 = sld [smem:[%s2786_s0 + %s2225_s15]]   ;;  %s2229_s15 = smov 19  }
  0x12   :  { %s2337_s27 = sld [smem:[%s2786_s0 + %s2226_s22]]   ;;  %s2230_s22 = smov 20  }
  0x13   :  { %s2342_s4 = sld [smem:[%s2786_s0 + %s2227_s28]]   ;;  %s2231_s28 = smov 21  }
  0x14   :  { %s2347_s9 = sld [smem:[%s2786_s0 + %s2228_s7]]   ;;  %s2232_s7 = smov 22  }
  0x17   :  { %2798 = sst [smem:[#allocation9_spill]] %s2332_s20 }
  0x18   :  { %2799 = sst [smem:[#allocation10_spill]] %s2337_s27 }
  0x19   :  { %2800 = sst [smem:[#allocation11_spill]] %s2342_s4 }
  0x1a   :  { %2801 = sst [smem:[#allocation12_spill]] %s2347_s9 }
  0x1b   :  { %s2352_s20 = sld [smem:[%s2786_s0 + %s2229_s15]]   ;;  %s2233_s15 = smov 23  }
  0x1c   :  { %s2357_s27 = sld [smem:[%s2786_s0 + %s2230_s22]]   ;;  %s2234_s22 = smov 24  }
  0x1d   :  { %s2362_s4 = sld [smem:[%s2786_s0 + %s2231_s28]]   ;;  %s2235_s28 = smov 25  }
  0x1e   :  { %s2367_s9 = sld [smem:[%s2786_s0 + %s2232_s7]]   ;;  %s2236_s7 = smov 26  }
  0x21   :  { %2802 = sst [smem:[#allocation13_spill]] %s2352_s20 }
  0x22   :  { %2803 = sst [smem:[#allocation14_spill]] %s2357_s27 }
  0x23   :  { %2804 = sst [smem:[#allocation15_spill]] %s2362_s4 }
  0x24   :  { %2805 = sst [smem:[#allocation16_spill]] %s2367_s9 }
  0x25   :  { %s2372_s20 = sld [smem:[%s2786_s0 + %s2233_s15]]   ;;  %s2237_s15 = smov 27  }
  0x26   :  { %s2377_s27 = sld [smem:[%s2786_s0 + %s2234_s22]]   ;;  %s2238_s22 = smov 28  }
  0x27   :  { %s2382_s4 = sld [smem:[%s2786_s0 + %s2235_s28]]   ;;  %s2239_s28 = smov 29  }
  0x28   :  { %s2387_s9 = sld [smem:[%s2786_s0 + %s2236_s7]]  }
  0x2b   :  { %2806 = sst [smem:[#allocation17_spill]] %s2372_s20 }
  0x2c   :  { %2807 = sst [smem:[#allocation18_spill]] %s2377_s27 }
  0x2d   :  { %2808 = sst [smem:[#allocation19_spill]] %s2382_s4 }
  0x2e   :  { %s2392_s20 = sld [smem:[%s2786_s0 + %s2237_s15]]  }
  0x2f   :  { %s2397_s27 = sld [smem:[%s2786_s0 + %s2238_s22]]  }
  0x30   :  { %s2402_s4 = sld [smem:[%s2786_s0 + %s2239_s28]]  }
  0x31   :  { %65 = vsyncpa [#allocation3], 0  ;;  %v126_v0 = vld [vmem:[%s2257_s5] sm:$0xff]  ;;  %v150_v1 = vld [vmem:[%s2267_s13 + $0x70] sm:$0xff]  ;;  %v2240_v2 = vmov 0  }
  0x32   :  { %2033 = vset.pattern.permute.xlu0 %v2240_v2  ;;  %v151_v3 = vld [vmem:[%s2267_s13 + $0x78] sm:$0xff]  ;;  %v148_v4 = vld [vmem:[%s2267_s13 + $0x60] sm:$0xff]  ;;  %v149_v5 = vld [vmem:[%s2267_s13 + $0x68] sm:$0xff]  ;;  %2044 = vset.pattern.permute.xlu1 %v2240_v2 }
  0x33   :  { %129 = vperm.xlu0 %2033, %v126_v0   ;;  %v2409_v6 = vpack.c.bf16 %v151_v3, %v150_v1  ;;  %2045 = vset.pattern.permute.xlu2 %v2240_v2  ;;  %v2412_v7 = vpack.c.bf16 %v149_v5, %v148_v4  ;;  %v146_v8 = vld [vmem:[%s2267_s13 + $0x50] sm:$0xff]  ;;  %v147_v9 = vld [vmem:[%s2267_s13 + $0x58] sm:$0xff]  ;;  %v127_v10 = vld [vmem:[%s2257_s5 + $0x8] sm:$0xff] }
  0x34   :  { %v144_v11 = vld [vmem:[%s2267_s13 + $0x40] sm:$0xff]  ;;  %v145_v12 = vld [vmem:[%s2267_s13 + $0x48] sm:$0xff]  ;;  %v2420_v13 = vpack.c.bf16 %v147_v9, %v146_v8  ;;  %v142_v14 = vld [vmem:[%s2267_s13 + $0x30] sm:$0xff] }
  0x35   :  { %165 = vmatpush.bf16.msra.mxu0 %v2409_v6  ;;  %v143_v15 = vld [vmem:[%s2267_s13 + $0x38] sm:$0xff]  ;;  %v2425_v16 = vpack.c.bf16 %v145_v12, %v144_v11 }
  0x39   :  { %166 = vmatpush.bf16.msra.mxu0 %v2412_v7 }
  0x3b   :  { %132 = vperm.xlu0 %2033, %v127_v10  }
  0x3d   :  { %167 = vmatpush.bf16.msra.mxu0 %v2420_v13 }
  0x3e   :  { %66 = vsyncpa [#allocation5], 0  ;;  %v2428_v17 = vpack.c.bf16 %v143_v15, %v142_v14  ;;  %v140_v18 = vld [vmem:[%s2267_s13 + $0x20] sm:$0xff]  ;;  %v141_v19 = vld [vmem:[%s2267_s13 + $0x28] sm:$0xff]  ;;  %v124_v28 = vlaneseq  ;;  %v2241_v31 = vmov 1.0|1.0  }
  0x3f   :  { %v2433_v20 = vpack.c.bf16 %v141_v19, %v140_v18  ;;  %v138_v21 = vld [vmem:[%s2267_s13 + $0x10] sm:$0xff]  ;;  %v139_v22 = vld [vmem:[%s2267_s13 + $0x18] sm:$0xff]  ;;  %v136_v23 = vld [vmem:[%s2267_s13] sm:$0xff]  ;;  %vm190_vm3 = vcmask 261120   ;;  %v2242_v42 = vmov 32.0   ;;  %vm332_vm11 = vcmask 130048  }
  0x40   :  { %v2439_v24 = vpack.c.bf16 %v139_v22, %v138_v21  ;;  %v137_v25 = vld [vmem:[%s2267_s13 + $0x8] sm:$0xff]  ;;  %v2446_v29 = vand.u32 127, %v124_v28  ;;  %v179_v32 = vld [vmem:[%s2272_s17] sm:$0xff]  ;;  %2079 = vrcp.f32 %v2242_v42  ;;  %v254_v59 = vld [vmem:[%s2292_s3 + $0x10] sm:$0xff]  ;;  %vm429_vm12 = vcmask 1043456   ;;  %s2243_s0 = smov 16  }
  0x41   :  { %168 = vmatpush.bf16.msra.mxu0 %v2425_v16  ;;  %v2443_v26 = vpack.c.bf16 %v137_v25, %v136_v23  ;;  %v2046_v33 = vld [vmem:[%s2277_s21] ss:$0 sm:$0xff]  ;;  %v255_v60 = vld [vmem:[%s2292_s3 + $0x18] sm:$0xff]  ;;  %v282_v61 = vld [vmem:[%s2302_s14 + $0x10] sm:$0xff]  ;;  %vm373_vm13 = vcmask 64512   ;;  %s2809_s5 = sld [smem:[#allocation11_spill]] }
  0x42   :  { %v258_v62 = vpack.c.bf16 %v255_v60, %v254_v59  ;;  %v283_v63 = vld [vmem:[%s2302_s14 + $0x18] sm:$0xff]  ;;  %v1898_v0 = vld [vmem:[%s2292_s3 + $0x30] sm:$0xff]  ;;  %v252_v8 = vld [vmem:[%s2292_s3] sm:$0xff]  ;;  %s2810_s13 = sld [smem:[#allocation9_spill]] }
  0x43   :  { %v1899_v1 = vld [vmem:[%s2292_s3 + $0x38] sm:$0xff]  ;;  %v285_v2 = vpack.c.bf16 %v283_v63, %v282_v61  ;;  %v253_v9 = vld [vmem:[%s2292_s3 + $0x8] sm:$0xff]  ;;  %v280_v10 = vld [vmem:[%s2302_s14] sm:$0xff]  ;;  %s2811_s17 = sld [smem:[#allocation10_spill]] }
  0x44   :  { %v471_v3 = vpack.c.bf16 %v1899_v1, %v1898_v0  ;;  %272 = vmatpush.bf16.msra.mxu1 %v258_v62  ;;  %v257_v11 = vpack.c.bf16 %v253_v9, %v252_v8  ;;  %v281_v12 = vld [vmem:[%s2302_s14 + $0x8] sm:$0xff]  ;;  %v1896_v14 = vld [vmem:[%s2292_s3 + $0x20] sm:$0xff]  ;;  %v306_v23 = vld [vmem:[%s2312_s24 + $0x10] sm:$0xff]  ;;  %s2812_s21 = sld [smem:[#allocation13_spill]] }
  0x45   :  { %169 = vmatpush.bf16.msra.mxu0 %v2428_v17  ;;  %296 = vmatpush.bf16.msra.mxu3 %v285_v2  ;;  %v1897_v15 = vld [vmem:[%s2292_s3 + $0x28] sm:$0xff]  ;;  %v284_v19 = vpack.c.bf16 %v281_v12, %v280_v10  ;;  %v307_v25 = vld [vmem:[%s2312_s24 + $0x18] sm:$0xff]  ;;  %v2049_v62 = vld [vmem:[%s2297_s8] ss:$0 sm:$0xff]  ;;  %s2815_s7 = sld [smem:[#allocation15_spill]] }
  0x46   :  { %v2080_v43 = vpop.eup %2079  ;;  %483 = vmatpush.bf16.msra.mxu2 %v471_v3  ;;  %v470_v21 = vpack.c.bf16 %v1897_v15, %v1896_v14  ;;  %v1910_v3 = vld [vmem:[%s2312_s24 + $0x30] sm:$0xff]  ;;  %v1908_v12 = vld [vmem:[%s2312_s24 + $0x20] sm:$0xff]  ;;  %v1909_v14 = vld [vmem:[%s2312_s24 + $0x28] sm:$0xff]  ;;  %s2816_s10 = sld [smem:[#allocation16_spill]] }
  0x47   :  { %v198_v44 = vmul.f32 32.0, %v2080_v43  ;;  %vm202_vm4 = vweird.f32 %v2080_v43 }
  0x48   :  { %273 = vmatpush.bf16.msra.mxu1 %v257_v11 }
  0x49   :  { %170 = vmatpush.bf16.msra.mxu0 %v2433_v20  ;;  %v199_v45 = vsub.f32 1.0, %v198_v44  ;;  %297 = vmatpush.bf16.msra.mxu3 %v284_v19 }
  0x4a   :  { %484 = vmatpush.bf16.msra.mxu2 %v470_v21  ;;  %v522_v21 = vpack.c.bf16 %v1909_v14, %v1908_v12 }
  0x4b   :  { %v200_v46 = vmul.f32 %v2080_v43, %v199_v45 }
  0x4d   :  { %171 = vmatpush.bf16.msra.mxu0 %v2439_v24  ;;  %v201_v47 = vadd.f32 %v2080_v43, %v200_v46  ;;  %v2047_v46 = vld [vmem:[%s2282_s25] ss:$0 sm:$0xff]  ;;  %s2813_s25 = sld [smem:[#allocation12_spill]] }
  0x4f   :  { %v2454_v48 = vsel %vm202_vm4, %v2080_v43, %v201_v47 }
  0x51   :  { %172 = vmatpush.bf16.msra.mxu0 %v2443_v26 }
  0xa5   :  { %v130_v27 = vpop.permute.xlu0 %129 }
  0xa6   :  { %vm134_vm0 = vcmp.eq.s32.totalorder %v130_v27, %v2446_v29  ;;  %v304_v27 = vld [vmem:[%s2312_s24] sm:$0xff] }
  0xad   :  { %v133_v30 = vpop.permute.xlu0 %132 }
  0xae   :  { %vm135_vm1 = vcmp.eq.s32.totalorder %v133_v30, %v2446_v29  ;;  %v309_v30 = vpack.c.bf16 %v307_v25, %v306_v23 }
  0xaf   :  { %vm1887_vm2 = vmpackc.low %vm135_vm1, %vm134_vm0 }
  0xb0   :  { %1888 = vmatmul.msk.bf16.vlgmr.msra.gmra.mxu0 %vm1887_vm2, %v2241_v31  ;;  %v305_v31 = vld [vmem:[%s2312_s24 + $0x8] sm:$0xff]  ;;  %320 = vmatpush.bf16.msrb.mxu3 %v309_v30 }
 0x12d   :  { %v174_v34 = vpop.f32.mrf.mxu0 }
 0x12e   :  { %v180_v35 = vadd.f32 %v179_v32, %v174_v34  ;;  %v308_v34 = vpack.c.bf16 %v305_v31, %v304_v27 }
 0x130   :  { %v186_v36 = vadd.f32 %v2046_v33, %v180_v35  ;;  %321 = vmatpush.bf16.msrb.mxu3 %v308_v34 }
 0x132   :  { %v191_v37 = vsel %vm190_vm3, %v186_v36, 0.0 }
 0x133   :  { %192 = vadd.xlane.f32.xlu1 %v191_v37 }
 0x135   :  { %v176_v38 = vpop.f32.mrf.mxu0 }
 0x136   :  { %v181_v39 = vadd.f32 %v179_v32, %v176_v38 }
 0x138   :  { %v187_v40 = vadd.f32 %v2046_v33, %v181_v39 }
 0x13a   :  { %v194_v41 = vsel %vm190_vm3, %v187_v40, 0.0 }
 0x13b   :  { %195 = vadd.xlane.f32.xlu1 %v194_v41 }
 0x1a6   :  { %v193_v49 = vpop.xlane.xlu1 %192 }
 0x1a7   :  { %v204_v50 = vmul.f32 %v2454_v48, %v193_v49 }
 0x1a9   :  { %v2457_v51 = vsub.f32 %v186_v36, %v204_v50 }
 0x1ab   :  { %v208_v52 = vmul.f32 %v2457_v51, %v2457_v51 }
 0x1ad   :  { %v210_v53 = vsel %vm190_vm3, %v208_v52, 0.0  ;;  %v2048_v52 = vld [vmem:[%s2287_s29] ss:$0 sm:$0xff]  ;;  %s2814_s29 = sld [smem:[#allocation14_spill]] }
 0x1ae   :  { %211 = vadd.xlane.f32.xlu2 %v210_v53  ;;  %v196_v54 = vpop.xlane.xlu1 %195 }
 0x1af   :  { %v205_v55 = vmul.f32 %v2454_v48, %v196_v54 }
 0x1b1   :  { %v2463_v56 = vsub.f32 %v187_v40, %v205_v55 }
 0x1b3   :  { %v209_v57 = vmul.f32 %v2463_v56, %v2463_v56 }
 0x1b5   :  { %v213_v58 = vsel %vm190_vm3, %v209_v57, 0.0 }
 0x1b6   :  { %214 = vadd.xlane.f32.xlu2 %v213_v58 }
 0x221   :  { %v212_v4 = vpop.xlane.xlu2 %211 }
 0x222   :  { %v216_v5 = vmul.f32 %v212_v4, %v2454_v48  ;;  %v1911_v4 = vld [vmem:[%s2312_s24 + $0x38] sm:$0xff] }
 0x223   :  { %v523_v10 = vpack.c.bf16 %v1911_v4, %v1910_v3  ;;  %v1903_v3 = vld [vmem:[%s2302_s14 + $0x28] sm:$0xff] }
 0x224   :  { %v218_v18 = vadd.f32 1e-12, %v216_v5 }
 0x226   :  { %2081 = vrsqrt.f32 %v218_v18  ;;  %vm226_vm6 = vweird.f32 %v218_v18 }
 0x229   :  { %v215_v22 = vpop.xlane.xlu2 %214 }
 0x22a   :  { %v217_v28 = vmul.f32 %v215_v22, %v2454_v48 }
 0x22c   :  { %v2082_v32 = vpop.eup %2081  ;;  %v219_v33 = vadd.f32 1e-12, %v217_v28 }
 0x22d   :  { %v221_v35 = vmul.f32 %v2082_v32, %v218_v18  ;;  %vm227_vm5 = vweird.f32 %v2082_v32  ;;  %v2052_v18 = vld [vmem:[%s2317_s30] ss:$0 sm:$0xff] }
 0x22e   :  { %2083 = vrsqrt.f32 %v219_v33  ;;  %vm228_vm7 = vmor %vm226_vm6, %vm227_vm5  ;;  %vm236_vm9 = vweird.f32 %v219_v33 }
 0x22f   :  { %v222_v36 = vmul.f32 %v2082_v32, %v221_v35 }
 0x231   :  { %v223_v37 = vmul.f32 0.5, %v222_v36 }
 0x233   :  { %v224_v38 = vsub.f32 1.5, %v223_v37 }
 0x234   :  { %v2084_v39 = vpop.eup %2083 }
 0x235   :  { %v225_v40 = vmul.f32 %v2082_v32, %v224_v38  ;;  %v231_v41 = vmul.f32 %v2084_v39, %v219_v33  ;;  %vm237_vm8 = vweird.f32 %v2084_v39 }
 0x236   :  { %vm238_vm10 = vmor %vm236_vm9, %vm237_vm8 }
 0x237   :  { %v232_v42 = vmul.f32 %v2084_v39, %v231_v41  ;;  %v229_v43 = vsel %vm228_vm7, %v2082_v32, %v225_v40 }
 0x238   :  { %v240_v47 = vmul.f32 %v229_v43, %v2457_v51  ;;  %v2050_v51 = vld [vmem:[%s2307_s19] ss:$0 sm:$0xff] }
 0x239   :  { %v233_v44 = vmul.f32 0.5, %v232_v42  ;;  %v2053_v42 = vld [vmem:[%s2317_s30 + $0x1] ss:$0 sm:$0xff] }
 0x23a   :  { %v245_v53 = vmul.f32 %v2047_v46, %v240_v47 }
 0x23b   :  { %v234_v45 = vsub.f32 1.5, %v233_v44 }
 0x23c   :  { %v2490_v57 = vadd.f32 %v2048_v52, %v245_v53 }
 0x23d   :  { %v235_v49 = vmul.f32 %v2084_v39, %v234_v45 }
 0x23f   :  { %v239_v50 = vsel %vm238_vm10, %v2084_v39, %v235_v49 }
 0x240   :  { %v241_v54 = vmul.f32 %v239_v50, %v2463_v56 }
 0x242   :  { %v246_v55 = vmul.f32 %v2047_v46, %v241_v54 }
 0x244   :  { %v2492_v58 = vadd.f32 %v2048_v52, %v246_v55 }
 0x246   :  { %v2496_v59 = vpack.c.bf16 %v2492_v58, %v2490_v57 }
 0x248   :  { %1889 = vmatmul.msk.bf16.vlgmr.msra.gmra.mxu1 %vm190_vm3, %v2496_v59  ;;  %1890 = vmatmul.msk.bf16.vlgmr.msra.gmra.mxu3 %vm190_vm3, %v2496_v59 }
 0x249   :  { %1901 = vmatmul.msk.bf16.vlgmr.msra.gmra.mxu2 %vm190_vm3, %v2496_v59 }
 0x258   :  { %1891 = vmatmul.msk.bf16.vlgmr.msrb.gmra.mxu3 %vm190_vm3, %v2496_v59 }
 0x2c5   :  { %v275_v61 = vpop.f32.mrf.mxu1 }
 0x2c6   :  { %v276_v1 = vadd.f32 %v2049_v62, %v275_v61 }
 0x2c8   :  { %v328_v8 = vpack.c.bf16 %v276_v1, %v276_v1 }
 0x2cb   :  { %v299_v56 = vpop.f32.mrf.mxu3 }
 0x2cc   :  { %v300_v60 = vadd.f32 %v2050_v51, %v299_v56 }
 0x2cd   :  { %v277_v11 = vpop.f32.mrf.mxu1 }
 0x2ce   :  { %v330_v63 = vpack.c.bf16 %v300_v60, %v300_v60  ;;  %v278_v19 = vadd.f32 %v2049_v62, %v277_v11 }
 0x2d0   :  { %v337_v0 = vsel %vm332_vm11, %v330_v63, 0  ;;  %v329_v25 = vpack.c.bf16 %v278_v19, %v278_v19  ;;  %v1904_v63 = vld [vmem:[%s2302_s14 + $0x30] sm:$0xff] }
 0x2d1   :  { %346 = vmatpush.bf16.xpose.msrb.mxu1 %v337_v0  ;;  %v1905_v0 = vld [vmem:[%s2302_s14 + $0x38] sm:$0xff] }
 0x2d2   :  { %v497_v1 = vpack.c.bf16 %v1905_v0, %v1904_v63 }
 0x2d3   :  { %v301_v2 = vpop.f32.mrf.mxu3 }
 0x2d4   :  { %v302_v5 = vadd.f32 %v2050_v51, %v301_v2  ;;  %v1902_v2 = vld [vmem:[%s2302_s14 + $0x20] sm:$0xff] }
 0x2d5   :  { %v496_v4 = vpack.c.bf16 %v1903_v3, %v1902_v2 }
 0x2d6   :  { %v331_v9 = vpack.c.bf16 %v302_v5, %v302_v5 }
 0x2d8   :  { %1892 = vmatmul.msk.bf16.vlgmr.msrb.gmra.mxu1 %vm332_vm11, %v328_v8  ;;  %v356_v15 = vsel %vm332_vm11, %v331_v9, 0 }
 0x2d9   :  { %365 = vmatpush.bf16.xpose.msrb.mxu0 %v356_v15 }
 0x2db   :  { %v323_v22 = vpop.f32.mrf.mxu3 }
 0x2dc   :  { %v324_v23 = vadd.f32 %v2052_v18, %v323_v22 }
 0x2de   :  { %v424_v27 = vpack.c.bf16 %v324_v23, %v324_v23 }
 0x2e0   :  { %v431_v28 = vsel %vm429_vm12, %v424_v27, 0  ;;  %1893 = vmatmul.msk.bf16.vlgmr.msrb.gmra.mxu0 %vm332_vm11, %v329_v25 }
 0x2e1   :  { %535 = vmatpush.bf16.msra.mxu0 %v523_v10  ;;  %440 = vmatpush.bf16.msra.mxu3 %v431_v28 }
 0x2e3   :  { %v325_v30 = vpop.f32.mrf.mxu3 }
 0x2e4   :  { %v326_v31 = vadd.f32 %v2052_v18, %v325_v30 }
 0x2e5   :  { %536 = vmatpush.bf16.msra.mxu0 %v522_v21  ;;  %509 = vmatpush.bf16.msrb.mxu3 %v497_v1 }
 0x2e6   :  { %v425_v32 = vpack.c.bf16 %v326_v31, %v326_v31 }
 0x2e8   :  { %v450_v33 = vsel %vm429_vm12, %v425_v32, 0 }
 0x2e9   :  { %459 = vmatpush.bf16.msra.mxu1 %v450_v33  ;;  %510 = vmatpush.bf16.msrb.mxu3 %v496_v4 }
 0x2f0   :  { %1913 = vmatmul.msk.bf16.vlgmr.msra.gmra.mxu0 %vm190_vm3, %v2496_v59 }
 0x355   :  { %v348_v34 = vpop.f32.mrf.mxu1 }
 0x356   :  { %v371_v35 = vmul.f32 0.25, %v348_v34 }
 0x358   :  { %v374_v36 = vsel %vm373_vm13, %v371_v35, -inf }
 0x359   :  { %375 = vmax.xlane.f32.xlu0 %v374_v36 }
 0x35d   :  { %v350_v37 = vpop.f32.mrf.mxu1  ;;  %v367_v38 = vpop.f32.mrf.mxu0 }
 0x35e   :  { %v372_v39 = vmul.f32 0.25, %v367_v38 }
 0x360   :  { %v377_v40 = vsel %vm373_vm13, %v372_v39, -inf }
 0x361   :  { %378 = vmax.xlane.f32.xlu2 %v377_v40 }
 0x365   :  { %v369_v41 = vpop.f32.mrf.mxu0 }
 0x36d   :  { %v538_v43 = vpop.f32.mrf.mxu0 }
 0x36e   :  { %v539_v44 = vadd.f32 %v2053_v42, %v538_v43 }
 0x370   :  { %v637_v27 = vpack.c.bf16 %v539_v44, %v539_v44 }
 0x375   :  { %v540_v45 = vpop.f32.mrf.mxu0 }
 0x376   :  { %v541_v46 = vadd.f32 %v2053_v42, %v540_v45 }
 0x378   :  { %v638_v47 = vpack.c.bf16 %v541_v46, %v541_v46  ;;  %v2054_v46 = vld [vmem:[%s2307_s19 + $0x1] ss:$0 sm:$0xff] }
 0x37a   :  { %v662_v49 = vsel %vm429_vm12, %v638_v47, 0 }
 0x37b   :  { %671 = vmatpush.bf16.msrb.mxu0 %v662_v49 }
 0x3cc   :  { %v376_v50 = vpop.xlane.xlu0 %375 }
 0x3cd   :  { %v380_v52 = vsub.f32 %v371_v35, %v376_v50  ;;  %v643_v35 = vsel %vm429_vm12, %v637_v27, 0  ;;  %v486_v50 = vpop.f32.mrf.mxu2 }
 0x3cf   :  { %v382_v53 = vmul.f32 1.442695, %v380_v52  ;;  %v2051_v52 = vld [vmem:[%s2297_s8 + $0x1] ss:$0 sm:$0xff] }
 0x3d1   :  { %2085 = vpow2.f32 %v382_v53 }
 0x3d4   :  { %v379_v54 = vpop.xlane.xlu2 %378 }
 0x3d5   :  { %v381_v55 = vsub.f32 %v372_v39, %v379_v54 }
 0x3d7   :  { %v2086_v51 = vpop.eup %2085  ;;  %v384_v56 = vmul.f32 1.442695, %v381_v55  ;;  %v487_v55 = vadd.f32 %v2051_v52, %v486_v50 }
 0x3d8   :  { %v386_v60 = vsel %vm373_vm13, %v2086_v51, 0.0 }
 0x3d9   :  { %2087 = vpow2.f32 %v384_v56  ;;  %387 = vadd.xlane.f32.xlu1 %v386_v60  ;;  %v543_v60 = vpack.c.bf16 %v487_v55, %v487_v55 }
 0x3df   :  { %v2088_v61 = vpop.eup %2087 }
 0x3e0   :  { %v389_v62 = vsel %vm373_vm13, %v2088_v61, 0.0 }
 0x3e1   :  { %390 = vadd.xlane.f32.xlu1 %v389_v62 }
 0x44c   :  { %v388_v5 = vpop.xlane.xlu1 %387 }
 0x44d   :  { %2089 = vrcp.f32 %v388_v5  ;;  %v403_v12 = vand.u32 2147483648, %v388_v5  ;;  %v401_v15 = vand.u32 2147483647, %v388_v5  ;;  %vm397_vm15 = vweird.f32 %v388_v5 }
 0x44f   :  { %v404_v21 = vor.u32 1.1754944e-38, %v403_v12  ;;  %vm402_vm1 = vcmp.eq.f32.partialorder %v401_v15, 8.507059e+37 }
 0x453   :  { %v2090_v8 = vpop.eup %2089 }
 0x454   :  { %v393_v9 = vmul.f32 %v2090_v8, %v388_v5  ;;  %v391_v10 = vpop.xlane.xlu1 %390  ;;  %vm398_vm14 = vweird.f32 %v2090_v8 }
 0x455   :  { %2091 = vrcp.f32 %v391_v10  ;;  %vm399_vm0 = vmor %vm397_vm15, %vm398_vm14  ;;  %v418_v31 = vand.u32 2147483648, %v391_v10  ;;  %v416_v33 = vand.u32 2147483647, %v391_v10  ;;  %vm412_vm4 = vweird.f32 %v391_v10 }
 0x456   :  { %v394_v11 = vsub.f32 1.0, %v393_v9 }
 0x457   :  { %v419_v37 = vor.u32 1.1754944e-38, %v418_v31  ;;  %vm417_vm6 = vcmp.eq.f32.partialorder %v416_v33, 8.507059e+37 }
 0x458   :  { %v395_v14 = vmul.f32 %v2090_v8, %v394_v11 }
 0x45a   :  { %v396_v18 = vadd.f32 %v2090_v8, %v395_v14 }
 0x45b   :  { %v2092_v19 = vpop.eup %2091 }
 0x45c   :  { %v400_v22 = vsel %vm399_vm0, %v2090_v8, %v396_v18  ;;  %v408_v23 = vmul.f32 %v2092_v19, %v391_v10  ;;  %vm413_vm2 = vweird.f32 %v2092_v19 }
 0x45d   :  { %v405_v25 = vsel %vm402_vm1, %v404_v21, %v400_v22  ;;  %vm414_vm5 = vmor %vm412_vm4, %vm413_vm2 }
 0x45e   :  { %v406_v28 = vmul.f32 %v2086_v51, %v405_v25  ;;  %v409_v30 = vsub.f32 1.0, %v408_v23 }
 0x460   :  { %v410_v32 = vmul.f32 %v2092_v19, %v409_v30  ;;  %v422_v34 = vpack.c.bf16 %v406_v28, %v406_v28 }
 0x462   :  { %v411_v36 = vadd.f32 %v2092_v19, %v410_v32  ;;  %1894 = vmatmul.msk.bf16.vlgmr.msra.gmra.mxu3 %vm373_vm13, %v422_v34 }
 0x463   :  { %652 = vmatpush.bf16.msra.mxu3 %v643_v35 }
 0x464   :  { %v415_v38 = vsel %vm414_vm5, %v2092_v19, %v411_v36 }
 0x465   :  { %v420_v39 = vsel %vm417_vm6, %v419_v37, %v415_v38 }
 0x466   :  { %v421_v40 = vmul.f32 %v2088_v61, %v420_v39  ;;  %v488_v61 = vpop.f32.mrf.mxu2 }
 0x467   :  { %v489_v63 = vadd.f32 %v2051_v52, %v488_v61 }
 0x468   :  { %v423_v41 = vpack.c.bf16 %v421_v40, %v421_v40 }
 0x469   :  { %v544_v0 = vpack.c.bf16 %v489_v63, %v489_v63 }
 0x46a   :  { %1895 = vmatmul.msk.bf16.vlgmr.msra.gmra.mxu1 %vm373_vm13, %v423_v41 }
 0x472   :  { %1907 = vmatmul.msk.bf16.vlgmr.msrb.gmra.mxu3 %vm190_vm3, %v2496_v59 }
 0x4e5   :  { %v2536_v42 = vpop.f32.mrf.mxu3 }
 0x4e7   :  { %v2538_v43 = vpop.f32.mrf.mxu1 }
 0x4ed   :  { %v444_v44 = vpop.f32.mrf.mxu3 }
 0x4ef   :  { %v463_v45 = vpop.f32.mrf.mxu1 }
 0x4f5   :  { %v512_v47 = vpop.f32.mrf.mxu3 }
 0x4f6   :  { %v513_v49 = vadd.f32 %v2054_v46, %v512_v47 }
 0x4f8   :  { %v545_v53 = vpack.c.bf16 %v513_v49, %v513_v49 }
 0x4fa   :  { %v551_v54 = vsel %vm332_vm11, %v545_v53, 0 }
 0x4fb   :  { %560 = vmatpush.bf16.xpose.msrb.mxu1 %v551_v54 }
 0x4fd   :  { %v514_v51 = vpop.f32.mrf.mxu3 }
 0x4fe   :  { %v515_v56 = vadd.f32 %v2054_v46, %v514_v51 }
 0x500   :  { %v546_v59 = vpack.c.bf16 %v515_v56, %v515_v56 }
 0x502   :  { %1914 = vmatmul.msk.bf16.vlgmr.msrb.gmra.mxu1 %vm332_vm11, %v543_v60  ;;  %v570_v62 = vsel %vm332_vm11, %v546_v59, 0  ;;  %v689_v60 = vld [vmem:[%s2322_s6 + $0x10] sm:$0xff]  ;;  %v690_v59 = vld [vmem:[%s2322_s6 + $0x18] sm:$0xff] }
 0x503   :  { %579 = vmatpush.bf16.xpose.msrb.mxu2 %v570_v62  ;;  %v693_v61 = vpack.c.bf16 %v690_v59, %v689_v60 }
 0x505   :  { %707 = vmatpush.bf16.msra.mxu1 %v693_v61 }
 0x50a   :  { %1915 = vmatmul.msk.bf16.vlgmr.msrb.gmra.mxu2 %vm332_vm11, %v544_v0 }
 0x57f   :  { %v562_v1 = vpop.f32.mrf.mxu1 }
 0x580   :  { %v585_v2 = vmul.f32 0.25, %v562_v1 }
 0x582   :  { %v587_v3 = vsel %vm373_vm13, %v585_v2, -inf }
 0x583   :  { %588 = vmax.xlane.f32.xlu2 %v587_v3  ;;  %v687_v3 = vld [vmem:[%s2322_s6] sm:$0xff] }
 0x587   :  { %v564_v4 = vpop.f32.mrf.mxu1 }
 0x588   :  { %v688_v4 = vld [vmem:[%s2322_s6 + $0x8] sm:$0xff] }
 0x58d   :  { %v581_v5 = vpop.f32.mrf.mxu2 }
 0x58e   :  { %v586_v8 = vmul.f32 0.25, %v581_v5  ;;  %v692_v5 = vpack.c.bf16 %v688_v4, %v687_v3 }
 0x590   :  { %v590_v9 = vsel %vm373_vm13, %v586_v8, -inf  ;;  %708 = vmatpush.bf16.msra.mxu1 %v692_v5  ;;  %v2057_v5 = vld [vmem:[%s2811_s17] ss:$0 sm:$0xff] }
 0x591   :  { %591 = vmax.xlane.f32.xlu1 %v590_v9 }
 0x595   :  { %v583_v10 = vpop.f32.mrf.mxu2 }
 0x5f6   :  { %v589_v11 = vpop.xlane.xlu2 %588 }
 0x5f7   :  { %v593_v12 = vsub.f32 %v585_v2, %v589_v11 }
 0x5f9   :  { %v595_v14 = vmul.f32 1.442695, %v593_v12 }
 0x5fb   :  { %2093 = vpow2.f32 %v595_v14 }
 0x601   :  { %v2094_v15 = vpop.eup %2093 }
 0x602   :  { %v599_v18 = vsel %vm373_vm13, %v2094_v15, 0.0 }
 0x603   :  { %600 = vadd.xlane.f32.xlu2 %v599_v18 }
 0x604   :  { %v592_v19 = vpop.xlane.xlu1 %591 }
 0x605   :  { %v594_v21 = vsub.f32 %v586_v8, %v592_v19 }
 0x607   :  { %v597_v22 = vmul.f32 1.442695, %v594_v21 }
 0x609   :  { %2095 = vpow2.f32 %v597_v22 }
 0x60f   :  { %v2096_v23 = vpop.eup %2095 }
 0x610   :  { %v602_v25 = vsel %vm373_vm13, %v2096_v23, 0.0 }
 0x611   :  { %603 = vadd.xlane.f32.xlu1 %v602_v25 }
 0x676   :  { %v601_v27 = vpop.xlane.xlu2 %600 }
 0x677   :  { %2097 = vrcp.f32 %v601_v27  ;;  %v616_v32 = vand.u32 2147483648, %v601_v27  ;;  %v614_v34 = vand.u32 2147483647, %v601_v27  ;;  %vm610_vm8 = vweird.f32 %v601_v27 }
 0x679   :  { %v617_v37 = vor.u32 1.1754944e-38, %v616_v32  ;;  %vm615_vm10 = vcmp.eq.f32.partialorder %v614_v34, 8.507059e+37 }
 0x67d   :  { %v2098_v28 = vpop.eup %2097 }
 0x67e   :  { %v606_v30 = vmul.f32 %v2098_v28, %v601_v27  ;;  %vm611_vm7 = vweird.f32 %v2098_v28 }
 0x67f   :  { %vm612_vm9 = vmor %vm610_vm8, %vm611_vm7 }
 0x680   :  { %v607_v31 = vsub.f32 1.0, %v606_v30 }
 0x682   :  { %v608_v33 = vmul.f32 %v2098_v28, %v607_v31 }
 0x684   :  { %v609_v35 = vadd.f32 %v2098_v28, %v608_v33  ;;  %v604_v36 = vpop.xlane.xlu1 %603 }
 0x685   :  { %2099 = vrcp.f32 %v604_v36  ;;  %v631_v47 = vand.u32 2147483648, %v604_v36  ;;  %v629_v50 = vand.u32 2147483647, %v604_v36  ;;  %vm625_vm15 = vweird.f32 %v604_v36 }
 0x686   :  { %v613_v38 = vsel %vm612_vm9, %v2098_v28, %v609_v35  ;;  %vm836_vm9 = vcmask 523264  }
 0x687   :  { %v618_v39 = vsel %vm615_vm10, %v617_v37, %v613_v38  ;;  %v632_v53 = vor.u32 1.1754944e-38, %v631_v47  ;;  %vm630_vm1 = vcmp.eq.f32.partialorder %v629_v50, 8.507059e+37  ;;  %v776_v37 = vld [vmem:[%s2809_s5 + $0x18] sm:$0xff] }
 0x688   :  { %v619_v40 = vmul.f32 %v2094_v15, %v618_v39  ;;  %v2055_v15 = vld [vmem:[%s2327_s12] ss:$0 sm:$0xff] }
 0x68a   :  { %v635_v41 = vpack.c.bf16 %v619_v40, %v619_v40 }
 0x68b   :  { %v2100_v44 = vpop.eup %2099 }
 0x68c   :  { %v621_v45 = vmul.f32 %v2100_v44, %v604_v36  ;;  %1916 = vmatmul.msk.bf16.vlgmr.msra.gmra.mxu3 %vm373_vm13, %v635_v41  ;;  %vm626_vm14 = vweird.f32 %v2100_v44  ;;  %v775_v36 = vld [vmem:[%s2809_s5 + $0x10] sm:$0xff]  ;;  %v773_v41 = vld [vmem:[%s2809_s5] sm:$0xff] }
 0x68d   :  { %vm627_vm0 = vmor %vm625_vm15, %vm626_vm14  ;;  %v779_v38 = vpack.c.bf16 %v776_v37, %v775_v36 }
 0x68e   :  { %v622_v46 = vsub.f32 1.0, %v621_v45 }
 0x68f   :  { %793 = vmatpush.bf16.msra.mxu2 %v779_v38 }
 0x690   :  { %v623_v49 = vmul.f32 %v2100_v44, %v622_v46 }
 0x692   :  { %v624_v52 = vadd.f32 %v2100_v44, %v623_v49 }
 0x694   :  { %v628_v54 = vsel %vm627_vm0, %v2100_v44, %v624_v52  ;;  %v774_v44 = vld [vmem:[%s2809_s5 + $0x8] sm:$0xff] }
 0x695   :  { %v633_v55 = vsel %vm630_vm1, %v632_v53, %v628_v54  ;;  %v778_v46 = vpack.c.bf16 %v774_v44, %v773_v41 }
 0x696   :  { %v634_v51 = vmul.f32 %v2096_v23, %v633_v55 }
 0x697   :  { %794 = vmatpush.bf16.msra.mxu2 %v778_v46 }
 0x698   :  { %v636_v56 = vpack.c.bf16 %v634_v51, %v634_v51 }
 0x69a   :  { %1917 = vmatmul.msk.bf16.vlgmr.msrb.gmra.mxu0 %vm373_vm13, %v636_v56 }
 0x70f   :  { %v654_v62 = vpop.f32.mrf.mxu3 }
 0x717   :  { %v656_v63 = vpop.f32.mrf.mxu3  ;;  %v673_v0 = vpop.f32.mrf.mxu0 }
 0x718   :  { %v2034_v1 = vpack.i.bf16 %v673_v0, %v654_v62 }
 0x71a   :  { %2035 = vrot.lane.b32.xlu2 %v2034_v1, %s2243_s0  ;;  %v2056_v1 = vld [vmem:[%s2810_s13] ss:$0 sm:$0xff] }
 0x71f   :  { %v675_v2 = vpop.f32.mrf.mxu0 }
 0x774   :  { %v2036_v8 = vpop.permute.xlu2 %2035 }
 0x775   :  { %v2038_v9 = vunpack.i.h.bf16 %v2036_v8  ;;  %v2037_v10 = vunpack.i.l.bf16 %v2036_v8 }
 0x777   :  { %v686_v11 = vsel %vm332_vm11, %v2538_v43, %v2038_v9  ;;  %v685_v12 = vsel %vm332_vm11, %v2536_v42, %v2037_v10 }
 0x778   :  { %v691_v14 = vpack.c.bf16 %v686_v11, %v685_v12 }
 0x77a   :  { %1918 = vmatmul.msk.bf16.vlgmr.msra.gmra.mxu1 %vm190_vm3, %v691_v14 }
 0x7f7   :  { %v710_v18 = vpop.f32.mrf.mxu1 }
 0x7f8   :  { %v711_v19 = vadd.f32 %v2055_v15, %v710_v18  ;;  %v826_v18 = vld [vmem:[%s2812_s21 + $0x38] sm:$0xff] }
 0x7fa   :  { %v715_v21 = vadd.f32 %v711_v19, %v2490_v57 }
 0x7fc   :  { %v719_v22 = vsel %vm190_vm3, %v715_v21, 0.0 }
 0x7fd   :  { %720 = vadd.xlane.f32.xlu1 %v719_v22  ;;  %v824_v22 = vld [vmem:[%s2812_s21 + $0x28] sm:$0xff] }
 0x7ff   :  { %v712_v23 = vpop.f32.mrf.mxu1 }
 0x800   :  { %v713_v25 = vadd.f32 %v2055_v15, %v712_v23  ;;  %v825_v15 = vld [vmem:[%s2812_s21 + $0x30] sm:$0xff] }
 0x801   :  { %v831_v19 = vpack.c.bf16 %v826_v18, %v825_v15  ;;  %v1923_v18 = vld [vmem:[%s2292_s3 + $0x50] sm:$0xff] }
 0x802   :  { %v716_v27 = vadd.f32 %v713_v25, %v2492_v58  ;;  %v821_v25 = vld [vmem:[%s2812_s21 + $0x10] sm:$0xff] }
 0x803   :  { %844 = vmatpush.bf16.msrb.mxu3 %v831_v19  ;;  %v1924_v19 = vld [vmem:[%s2292_s3 + $0x58] sm:$0xff] }
 0x804   :  { %v722_v43 = vsel %vm190_vm3, %v716_v27, 0.0 }
 0x805   :  { %723 = vadd.xlane.f32.xlu1 %v722_v43 }
 0x870   :  { %v721_v42 = vpop.xlane.xlu1 %720 }
 0x871   :  { %v725_v28 = vmul.f32 %v721_v42, %v2454_v48  ;;  %v819_v42 = vld [vmem:[%s2812_s21] sm:$0xff] }
 0x873   :  { %v727_v30 = vsub.f32 %v715_v21, %v725_v28  ;;  %v823_v21 = vld [vmem:[%s2812_s21 + $0x20] sm:$0xff]  ;;  %v820_v28 = vld [vmem:[%s2812_s21 + $0x8] sm:$0xff] }
 0x874   :  { %v830_v23 = vpack.c.bf16 %v824_v22, %v823_v21  ;;  %v1929_v21 = vld [vmem:[%s2302_s14 + $0x50] sm:$0xff]  ;;  %v919_v22 = vpack.c.bf16 %v1924_v19, %v1923_v18 }
 0x875   :  { %v729_v31 = vmul.f32 %v727_v30, %v727_v30 }
 0x876   :  { %845 = vmatpush.bf16.msrb.mxu3 %v830_v23  ;;  %v1930_v23 = vld [vmem:[%s2302_s14 + $0x58] sm:$0xff]  ;;  %934 = vmatpush.bf16.msra.mxu0 %v919_v22  ;;  %v1943_v22 = vld [vmem:[%s2292_s3 + $0x60] sm:$0xff] }
 0x877   :  { %v731_v57 = vsel %vm190_vm3, %v729_v31, 0.0  ;;  %v828_v31 = vpack.c.bf16 %v820_v28, %v819_v42  ;;  %v948_v42 = vpack.c.bf16 %v1930_v23, %v1929_v21  ;;  %v2064_v21 = vld [vmem:[%s2317_s30 + $0x2] ss:$0 sm:$0xff]  ;;  %v1944_v23 = vld [vmem:[%s2292_s3 + $0x68] sm:$0xff] }
 0x878   :  { %732 = vadd.xlane.f32.xlu0 %v731_v57  ;;  %v724_v32 = vpop.xlane.xlu1 %723 }
 0x879   :  { %v726_v33 = vmul.f32 %v724_v32, %v2454_v48  ;;  %960 = vmatpush.bf16.msrb.mxu1 %v948_v42  ;;  %v1133_v42 = vpack.c.bf16 %v1944_v23, %v1943_v22 }
 0x87b   :  { %v728_v34 = vsub.f32 %v716_v27, %v726_v33  ;;  %v822_v27 = vld [vmem:[%s2812_s21 + $0x18] sm:$0xff] }
 0x87c   :  { %v829_v43 = vpack.c.bf16 %v822_v27, %v821_v25  ;;  %v1935_v25 = vld [vmem:[%s2312_s24 + $0x50] sm:$0xff]  ;;  %v1936_v27 = vld [vmem:[%s2312_s24 + $0x58] sm:$0xff] }
 0x87d   :  { %v730_v35 = vmul.f32 %v728_v34, %v728_v34  ;;  %v974_v28 = vpack.c.bf16 %v1936_v27, %v1935_v25 }
 0x87e   :  { %846 = vmatpush.bf16.msrb.mxu3 %v829_v43 }
 0x87f   :  { %v734_v58 = vsel %vm190_vm3, %v730_v35, 0.0  ;;  %986 = vmatpush.bf16.msrb.mxu2 %v974_v28 }
 0x880   :  { %735 = vadd.xlane.f32.xlu1 %v734_v58 }
 0x882   :  { %847 = vmatpush.bf16.msrb.mxu3 %v828_v31  ;;  %v1921_v31 = vld [vmem:[%s2292_s3 + $0x40] sm:$0xff] }
 0x8eb   :  { %v733_v39 = vpop.xlane.xlu0 %732 }
 0x8ec   :  { %v737_v40 = vmul.f32 %v733_v39, %v2454_v48 }
 0x8ee   :  { %v739_v45 = vadd.f32 1e-12, %v737_v40 }
 0x8f0   :  { %2101 = vrsqrt.f32 %v739_v45  ;;  %vm747_vm4 = vweird.f32 %v739_v45 }
 0x8f3   :  { %v736_v47 = vpop.xlane.xlu1 %735 }
 0x8f4   :  { %v738_v49 = vmul.f32 %v736_v47, %v2454_v48 }
 0x8f6   :  { %v2102_v50 = vpop.eup %2101  ;;  %v740_v52 = vadd.f32 1e-12, %v738_v49 }
 0x8f7   :  { %v742_v53 = vmul.f32 %v2102_v50, %v739_v45  ;;  %vm748_vm2 = vweird.f32 %v2102_v50 }
 0x8f8   :  { %2103 = vrsqrt.f32 %v740_v52  ;;  %vm749_vm5 = vmor %vm747_vm4, %vm748_vm2  ;;  %vm757_vm7 = vweird.f32 %v740_v52 }
 0x8f9   :  { %v743_v54 = vmul.f32 %v2102_v50, %v742_v53 }
 0x8fb   :  { %v744_v55 = vmul.f32 0.5, %v743_v54 }
 0x8fd   :  { %v745_v51 = vsub.f32 1.5, %v744_v55 }
 0x8fe   :  { %v2104_v56 = vpop.eup %2103 }
 0x8ff   :  { %v746_v60 = vmul.f32 %v2102_v50, %v745_v51  ;;  %v752_v59 = vmul.f32 %v2104_v56, %v740_v52  ;;  %vm758_vm6 = vweird.f32 %v2104_v56 }
 0x900   :  { %vm759_vm8 = vmor %vm757_vm7, %vm758_vm6 }
 0x901   :  { %v753_v61 = vmul.f32 %v2104_v56, %v752_v59  ;;  %v750_v62 = vsel %vm749_vm5, %v2102_v50, %v746_v60 }
 0x902   :  { %v761_v2 = vmul.f32 %v750_v62, %v727_v30  ;;  %v2058_v30 = vld [vmem:[%s2813_s25] ss:$0 sm:$0xff] }
 0x903   :  { %v754_v63 = vmul.f32 0.5, %v753_v61 }
 0x904   :  { %v766_v8 = vmul.f32 %v2056_v1, %v761_v2 }
 0x905   :  { %v755_v0 = vsub.f32 1.5, %v754_v63 }
 0x906   :  { %v771_v11 = vadd.f32 %v2057_v5, %v766_v8 }
 0x907   :  { %v756_v3 = vmul.f32 %v2104_v56, %v755_v0 }
 0x909   :  { %v760_v4 = vsel %vm759_vm8, %v2104_v56, %v756_v3  ;;  %v2059_v56 = vld [vmem:[%s2814_s29] ss:$0 sm:$0xff] }
 0x90a   :  { %v762_v9 = vmul.f32 %v760_v4, %v728_v34 }
 0x90c   :  { %v767_v10 = vmul.f32 %v2056_v1, %v762_v9 }
 0x90e   :  { %v772_v12 = vadd.f32 %v2057_v5, %v767_v10 }
 0x910   :  { %v777_v14 = vpack.c.bf16 %v772_v12, %v771_v11 }
 0x912   :  { %1919 = vmatmul.msk.bf16.vlgmr.msra.gmra.mxu2 %vm190_vm3, %v777_v14 }
 0x995   :  { %v796_v57 = vpop.f32.mrf.mxu2 }
 0x996   :  { %v797_v32 = vadd.f32 %v2058_v30, %v796_v57  ;;  %v1922_v57 = vld [vmem:[%s2292_s3 + $0x48] sm:$0xff] }
 0x998   :  { %v803_v33 = vmul.f32 0.044715, %v797_v32  ;;  %v801_v50 = vmul.f32 0.5, %v797_v32 }
 0x99a   :  { %v805_v34 = vmul.f32 %v803_v33, %v797_v32 }
 0x99c   :  { %v807_v35 = vmul.f32 %v805_v34, %v797_v32  ;;  %v918_v34 = vpack.c.bf16 %v1922_v57, %v1921_v31  ;;  %v1951_v31 = vld [vmem:[%s2302_s14 + $0x70] sm:$0xff]  ;;  %v1952_v57 = vld [vmem:[%s2302_s14 + $0x78] sm:$0xff] }
 0x99d   :  { %v798_v58 = vpop.f32.mrf.mxu2 }
 0x99e   :  { %v809_v36 = vadd.f32 %v807_v35, %v797_v32  ;;  %v799_v37 = vadd.f32 %v2058_v30, %v798_v58  ;;  %v1927_v32 = vld [vmem:[%s2302_s14 + $0x40] sm:$0xff]  ;;  %v1928_v35 = vld [vmem:[%s2302_s14 + $0x48] sm:$0xff]  ;;  %935 = vmatpush.bf16.msra.mxu0 %v918_v34 }
 0x99f   :  { %v1933_v58 = vld [vmem:[%s2312_s24 + $0x40] sm:$0xff] }
 0x9a0   :  { %v804_v38 = vmul.f32 0.044715, %v799_v37  ;;  %v811_v39 = vmul.f32 0.7978846, %v809_v36  ;;  %v802_v52 = vmul.f32 0.5, %v799_v37  ;;  %v1934_v36 = vld [vmem:[%s2312_s24 + $0x48] sm:$0xff] }
 0x9a2   :  { %v806_v40 = vmul.f32 %v804_v38, %v799_v37  ;;  %2105 = vtanh.f32 %v811_v39  ;;  %v973_v38 = vpack.c.bf16 %v1934_v36, %v1933_v58  ;;  %v1160_v58 = vpack.c.bf16 %v1952_v57, %v1951_v31 }
 0x9a4   :  { %v808_v41 = vmul.f32 %v806_v40, %v799_v37  ;;  %987 = vmatpush.bf16.msrb.mxu2 %v973_v38  ;;  %v1949_v38 = vld [vmem:[%s2302_s14 + $0x60] sm:$0xff] }
 0x9a6   :  { %v810_v44 = vadd.f32 %v808_v41, %v799_v37  ;;  %v947_v37 = vpack.c.bf16 %v1928_v35, %v1927_v32 }
 0x9a8   :  { %v812_v45 = vmul.f32 0.7978846, %v810_v44  ;;  %v2106_v46 = vpop.eup %2105  ;;  %961 = vmatpush.bf16.msrb.mxu1 %v947_v37 }
 0x9a9   :  { %v815_v47 = vadd.f32 1.0, %v2106_v46 }
 0x9aa   :  { %2107 = vtanh.f32 %v812_v45 }
 0x9ab   :  { %v817_v54 = vmul.f32 %v815_v47, %v801_v50 }
 0x9b0   :  { %v2108_v49 = vpop.eup %2107 }
 0x9b1   :  { %v816_v53 = vadd.f32 1.0, %v2108_v49 }
 0x9b3   :  { %v818_v55 = vmul.f32 %v816_v53, %v802_v52 }
 0x9b5   :  { %v827_v51 = vpack.c.bf16 %v818_v55, %v817_v54 }
 0x9b7   :  { %1920 = vmatmul.msk.bf16.vlgmr.msrb.gmra.mxu3 %vm836_vm9, %v827_v51 }
 0xa3a   :  { %v849_v60 = vpop.f32.mrf.mxu3 }
 0xa3b   :  { %v850_v59 = vadd.f32 %v2059_v56, %v849_v60  ;;  %v2060_v60 = vld [vmem:[%s2815_s7] ss:$0 sm:$0xff] }
 0xa3d   :  { %v854_v61 = vadd.f32 %v850_v59, %v771_v11 }
 0xa3f   :  { %v858_v62 = vsel %vm190_vm3, %v854_v61, 0.0 }
 0xa40   :  { %859 = vadd.xlane.f32.xlu2 %v858_v62 }
 0xa42   :  { %v851_v63 = vpop.f32.mrf.mxu3 }
 0xa43   :  { %v852_v0 = vadd.f32 %v2059_v56, %v851_v63  ;;  %v2061_v63 = vld [vmem:[%s2816_s10] ss:$0 sm:$0xff] }
 0xa45   :  { %v855_v1 = vadd.f32 %v852_v0, %v772_v12 }
 0xa47   :  { %v861_v2 = vsel %vm190_vm3, %v855_v1, 0.0 }
 0xa48   :  { %862 = vadd.xlane.f32.xlu0 %v861_v2 }
 0xab3   :  { %v860_v3 = vpop.xlane.xlu2 %859 }
 0xab4   :  { %v864_v4 = vmul.f32 %v860_v3, %v2454_v48 }
 0xab6   :  { %v866_v5 = vsub.f32 %v854_v61, %v864_v4 }
 0xab8   :  { %v868_v8 = vmul.f32 %v866_v5, %v866_v5 }
 0xaba   :  { %v870_v9 = vsel %vm190_vm3, %v868_v8, 0.0  ;;  %v2063_v8 = vld [vmem:[%s2307_s19 + $0x2] ss:$0 sm:$0xff] }
 0xabb   :  { %v863_v10 = vpop.xlane.xlu0 %862  ;;  %871 = vadd.xlane.f32.xlu1 %v870_v9 }
 0xabc   :  { %v865_v11 = vmul.f32 %v863_v10, %v2454_v48  ;;  %v1945_v10 = vld [vmem:[%s2292_s3 + $0x70] sm:$0xff] }
 0xabe   :  { %v867_v12 = vsub.f32 %v855_v1, %v865_v11  ;;  %v1946_v11 = vld [vmem:[%s2292_s3 + $0x78] sm:$0xff]  ;;  %s2817_s3 = sld [smem:[#allocation17_spill]] }
 0xabf   :  { %v1134_v19 = vpack.c.bf16 %v1946_v11, %v1945_v10 }
 0xac0   :  { %v869_v14 = vmul.f32 %v867_v12, %v867_v12 }
 0xac2   :  { %v873_v15 = vsel %vm190_vm3, %v869_v14, 0.0 }
 0xac3   :  { %874 = vadd.xlane.f32.xlu0 %v873_v15  ;;  %v2062_v15 = vld [vmem:[%s2297_s8 + $0x2] ss:$0 sm:$0xff] }
 0xb2e   :  { %v872_v43 = vpop.xlane.xlu1 %871 }
 0xb2f   :  { %v876_v30 = vmul.f32 %v872_v43, %v2454_v48 }
 0xb31   :  { %v878_v33 = vadd.f32 1e-12, %v876_v30 }
 0xb33   :  { %2109 = vrsqrt.f32 %v878_v33  ;;  %vm886_vm14 = vweird.f32 %v878_v33 }
 0xb36   :  { %v875_v39 = vpop.xlane.xlu0 %874 }
 0xb37   :  { %v877_v40 = vmul.f32 %v875_v39, %v2454_v48  ;;  %v1950_v39 = vld [vmem:[%s2302_s14 + $0x68] sm:$0xff]  ;;  %s2819_s14 = sld [smem:[#allocation19_spill]] }
 0xb39   :  { %v2110_v41 = vpop.eup %2109  ;;  %v879_v44 = vadd.f32 1e-12, %v877_v40 }
 0xb3a   :  { %v881_v45 = vmul.f32 %v2110_v41, %v878_v33  ;;  %vm887_vm10 = vweird.f32 %v2110_v41 }
 0xb3b   :  { %2111 = vrsqrt.f32 %v879_v44  ;;  %vm888_vm15 = vmor %vm886_vm14, %vm887_vm10  ;;  %vm896_vm1 = vweird.f32 %v879_v44 }
 0xb3c   :  { %v882_v46 = vmul.f32 %v2110_v41, %v881_v45  ;;  %v1159_v45 = vpack.c.bf16 %v1950_v39, %v1949_v38 }
 0xb3e   :  { %v883_v47 = vmul.f32 0.5, %v882_v46 }
 0xb40   :  { %v884_v49 = vsub.f32 1.5, %v883_v47 }
 0xb41   :  { %v2112_v50 = vpop.eup %2111 }
 0xb42   :  { %v885_v52 = vmul.f32 %v2110_v41, %v884_v49  ;;  %v891_v53 = vmul.f32 %v2112_v50, %v879_v44  ;;  %vm897_vm0 = vweird.f32 %v2112_v50 }
 0xb43   :  { %vm898_vm2 = vmor %vm896_vm1, %vm897_vm0 }
 0xb44   :  { %v892_v54 = vmul.f32 %v2112_v50, %v891_v53  ;;  %v889_v55 = vsel %vm888_vm15, %v2110_v41, %v885_v52 }
 0xb45   :  { %v900_v59 = vmul.f32 %v889_v55, %v866_v5 }
 0xb46   :  { %v893_v51 = vmul.f32 0.5, %v892_v54 }
 0xb47   :  { %v905_v0 = vmul.f32 %v2060_v60, %v900_v59 }
 0xb48   :  { %v894_v56 = vsub.f32 1.5, %v893_v51 }
 0xb49   :  { %v2613_v3 = vadd.f32 %v2061_v63, %v905_v0 }
 0xb4a   :  { %v895_v61 = vmul.f32 %v2112_v50, %v894_v56 }
 0xb4c   :  { %v899_v62 = vsel %vm898_vm2, %v2112_v50, %v895_v61  ;;  %v2065_v61 = vld [vmem:[%s2297_s8 + $0x3] ss:$0 sm:$0xff]  ;;  %s2818_s8 = sld [smem:[#allocation18_spill]] }
 0xb4d   :  { %v901_v1 = vmul.f32 %v899_v62, %v867_v12  ;;  %v2066_v62 = vld [vmem:[%s2307_s19 + $0x3] ss:$0 sm:$0xff]  ;;  %s2820_s19 = sld [smem:[#allocation8_spill]] }
 0xb4f   :  { %v906_v2 = vmul.f32 %v2060_v60, %v901_v1 }
 0xb51   :  { %v2615_v4 = vadd.f32 %v2061_v63, %v906_v2 }
 0xb53   :  { %v2619_v5 = vpack.c.bf16 %v2615_v4, %v2613_v3 }
 0xb55   :  { %1926 = vmatmul.msk.bf16.vlgmr.msra.gmra.mxu0 %vm190_vm3, %v2619_v5  ;;  %1932 = vmatmul.msk.bf16.vlgmr.msrb.gmra.mxu1 %vm190_vm3, %v2619_v5 }
 0xb56   :  { %1938 = vmatmul.msk.bf16.vlgmr.msrb.gmra.mxu2 %vm190_vm3, %v2619_v5 }
 0xbd2   :  { %v963_v9 = vpop.f32.mrf.mxu1  ;;  %v937_v14 = vpop.f32.mrf.mxu0 }
 0xbd3   :  { %v964_v12 = vadd.f32 %v2063_v8, %v963_v9  ;;  %v938_v27 = vadd.f32 %v2062_v15, %v937_v14 }
 0xbd5   :  { %v996_v18 = vpack.c.bf16 %v964_v12, %v964_v12  ;;  %v994_v34 = vpack.c.bf16 %v938_v27, %v938_v27 }
 0xbd7   :  { %v1002_v25 = vsel %vm332_vm11, %v996_v18, 0 }
 0xbd8   :  { %1011 = vmatpush.bf16.xpose.msra.mxu3 %v1002_v25 }
 0xbd9   :  { %v989_v43 = vpop.f32.mrf.mxu2 }
 0xbda   :  { %v990_v28 = vadd.f32 %v2064_v21, %v989_v43  ;;  %v965_v30 = vpop.f32.mrf.mxu1  ;;  %v939_v37 = vpop.f32.mrf.mxu0 }
 0xbdb   :  { %v966_v32 = vadd.f32 %v2063_v8, %v965_v30  ;;  %v940_v41 = vadd.f32 %v2062_v15, %v939_v37 }
 0xbdc   :  { %v1088_v33 = vpack.c.bf16 %v990_v28, %v990_v28 }
 0xbdd   :  { %v997_v35 = vpack.c.bf16 %v966_v32, %v966_v32  ;;  %v995_v49 = vpack.c.bf16 %v940_v41, %v940_v41  ;;  %v1955_v41 = vld [vmem:[%s2312_s24 + $0x60] sm:$0xff] }
 0xbde   :  { %v1094_v36 = vsel %vm429_vm12, %v1088_v33, 0 }
 0xbdf   :  { %v1021_v40 = vsel %vm332_vm11, %v997_v35, 0  ;;  %1103 = vmatpush.bf16.msra.mxu1 %v1094_v36  ;;  %1939 = vmatmul.msk.bf16.vlgmr.msra.gmra.mxu3 %vm332_vm11, %v994_v34  ;;  %v1958_v36 = vld [vmem:[%s2312_s24 + $0x78] sm:$0xff] }
 0xbe0   :  { %1146 = vmatpush.bf16.msrb.mxu3 %v1134_v19  ;;  %1030 = vmatpush.bf16.xpose.msrb.mxu0 %v1021_v40 }
 0xbe1   :  { %v991_v44 = vpop.f32.mrf.mxu2 }
 0xbe2   :  { %v992_v46 = vadd.f32 %v2064_v21, %v991_v44  ;;  %v1956_v44 = vld [vmem:[%s2312_s24 + $0x68] sm:$0xff] }
 0xbe4   :  { %1147 = vmatpush.bf16.msrb.mxu3 %v1133_v42  ;;  %v1089_v47 = vpack.c.bf16 %v992_v46, %v992_v46  ;;  %v1185_v46 = vpack.c.bf16 %v1956_v44, %v1955_v41 }
 0xbe6   :  { %v1113_v50 = vsel %vm429_vm12, %v1089_v47, 0 }
 0xbe7   :  { %1122 = vmatpush.bf16.msra.mxu2 %v1113_v50  ;;  %1940 = vmatmul.msk.bf16.vlgmr.msrb.gmra.mxu0 %vm332_vm11, %v995_v49 }
 0xbe8   :  { %1172 = vmatpush.bf16.msra.mxu0 %v1160_v58  ;;  %v1957_v58 = vld [vmem:[%s2312_s24 + $0x70] sm:$0xff] }
 0xbe9   :  { %v1186_v37 = vpack.c.bf16 %v1958_v36, %v1957_v58 }
 0xbeb   :  { %1198 = vmatpush.bf16.msrb.mxu1 %v1186_v37 }
 0xbec   :  { %1173 = vmatpush.bf16.msra.mxu0 %v1159_v45 }
 0xbef   :  { %1948 = vmatmul.msk.bf16.vlgmr.msrb.gmra.mxu3 %vm190_vm3, %v2619_v5  ;;  %1199 = vmatpush.bf16.msrb.mxu1 %v1185_v46 }
 0xbf7   :  { %1954 = vmatmul.msk.bf16.vlgmr.msra.gmra.mxu0 %vm190_vm3, %v2619_v5 }
 0xc62   :  { %v1013_v52 = vpop.f32.mrf.mxu3 }
 0xc63   :  { %v1036_v56 = vmul.f32 0.25, %v1013_v52 }
 0xc64   :  { %v1032_v53 = vpop.f32.mrf.mxu0 }
 0xc65   :  { %v1037_v54 = vmul.f32 0.25, %v1032_v53  ;;  %v1038_v59 = vsel %vm373_vm13, %v1036_v56, -inf }
 0xc67   :  { %v1041_v55 = vsel %vm373_vm13, %v1037_v54, -inf }
 0xc68   :  { %1042 = vmax.xlane.f32.xlu1 %v1041_v55 }
 0xc6a   :  { %v1015_v51 = vpop.f32.mrf.mxu3 }
 0xc6c   :  { %v1034_v60 = vpop.f32.mrf.mxu0 }
 0xc70   :  { %1039 = vmax.xlane.f32.xlu1 %v1038_v59 }
 0xc72   :  { %v1149_v63 = vpop.f32.mrf.mxu3 }
 0xc73   :  { %v2652_v0 = vadd.f32 %v2065_v61, %v1149_v63 }
 0xc74   :  { %v1175_v1 = vpop.f32.mrf.mxu0 }
 0xc75   :  { %v1176_v2 = vadd.f32 %v2066_v62, %v1175_v1 }
 0xc77   :  { %v1208_v8 = vpack.c.bf16 %v1176_v2, %v1176_v2 }
 0xc79   :  { %v1214_v9 = vsel %vm332_vm11, %v1208_v8, 0 }
 0xc7a   :  { %1223 = vmatpush.bf16.xpose.msrb.mxu2 %v1214_v9  ;;  %v1151_v14 = vpop.f32.mrf.mxu3 }
 0xc7b   :  { %v1152_v18 = vadd.f32 %v2065_v61, %v1151_v14  ;;  %v1206_v14 = vpack.c.bf16 %v2652_v0, %v2652_v0 }
 0xc7c   :  { %v1177_v10 = vpop.f32.mrf.mxu0 }
 0xc7d   :  { %v1178_v11 = vadd.f32 %v2066_v62, %v1177_v10  ;;  %v1207_v19 = vpack.c.bf16 %v1152_v18, %v1152_v18 }
 0xc7f   :  { %v1209_v12 = vpack.c.bf16 %v1178_v11, %v1178_v11 }
 0xc81   :  { %v1233_v15 = vsel %vm332_vm11, %v1209_v12, 0 }
 0xc82   :  { %1242 = vmatpush.bf16.xpose.msra.mxu3 %v1233_v15 }
 0xc89   :  { %1962 = vmatmul.msk.bf16.vlgmr.msra.gmra.mxu3 %vm332_vm11, %v1207_v19 }
 0xcdb   :  { %v1043_v21 = vpop.xlane.xlu1 %1042 }
 0xcdc   :  { %v1045_v22 = vsub.f32 %v1037_v54, %v1043_v21 }
 0xcde   :  { %v1048_v23 = vmul.f32 1.442695, %v1045_v22 }
 0xce0   :  { %2113 = vpow2.f32 %v1048_v23 }
 0xce3   :  { %v1040_v25 = vpop.xlane.xlu1 %1039 }
 0xce4   :  { %v1044_v27 = vsub.f32 %v1036_v56, %v1040_v25 }
 0xce6   :  { %v2114_v43 = vpop.eup %2113  ;;  %v1046_v42 = vmul.f32 1.442695, %v1044_v27 }
 0xce7   :  { %v1053_v28 = vsel %vm373_vm13, %v2114_v43, 0.0 }
 0xce8   :  { %2115 = vpow2.f32 %v1046_v42  ;;  %1054 = vadd.xlane.f32.xlu0 %v1053_v28  ;;  %v2067_v42 = vld [vmem:[%s2317_s30 + $0x3] ss:$0 sm:$0xff]  ;;  %s1828_s30 = sshll.u32 %s2397_s27, 4  ;;  %s1829_s30 = int_to_ptr.hbm [resolvable:$true] %s1828_s30 }
 0xcee   :  { %v2116_v30 = vpop.eup %2115 }
 0xcef   :  { %v1050_v31 = vsel %vm373_vm13, %v2116_v30, 0.0 }
 0xcf0   :  { %1051 = vadd.xlane.f32.xlu0 %v1050_v31 }
 0xd0c   :  { %v1244_v57 = vpop.f32.mrf.mxu3 }
 0xd0d   :  { %v1249_v32 = vmul.f32 0.25, %v1244_v57 }
 0xd0f   :  { %v1253_v33 = vsel %vm373_vm13, %v1249_v32, -inf }
 0xd10   :  { %1254 = vmax.xlane.f32.xlu0 %v1253_v33 }
 0xd14   :  { %v1246_v34 = vpop.f32.mrf.mxu3 }
 0xd5b   :  { %v1055_v35 = vpop.xlane.xlu0 %1054 }
 0xd5c   :  { %2117 = vrcp.f32 %v1055_v35  ;;  %v1082_v47 = vand.u32 2147483648, %v1055_v35  ;;  %v1080_v50 = vand.u32 2147483647, %v1055_v35  ;;  %vm1076_vm5 = vweird.f32 %v1055_v35 }
 0xd5e   :  { %v1083_v54 = vor.u32 1.1754944e-38, %v1082_v47  ;;  %vm1081_vm7 = vcmp.eq.f32.partialorder %v1080_v50, 8.507059e+37 }
 0xd62   :  { %v2118_v38 = vpop.eup %2117 }
 0xd63   :  { %v1072_v39 = vmul.f32 %v2118_v38, %v1055_v35  ;;  %v1052_v40 = vpop.xlane.xlu0 %1051  ;;  %vm1077_vm4 = vweird.f32 %v2118_v38 }
 0xd64   :  { %2119 = vrcp.f32 %v1052_v40  ;;  %vm1078_vm6 = vmor %vm1076_vm5, %vm1077_vm4  ;;  %v1067_v61 = vand.u32 2147483648, %v1052_v40  ;;  %v1065_v63 = vand.u32 2147483647, %v1052_v40  ;;  %vm1061_vm10 = vweird.f32 %v1052_v40 }
 0xd65   :  { %v1073_v45 = vsub.f32 1.0, %v1072_v39 }
 0xd66   :  { %v1068_v8 = vor.u32 1.1754944e-38, %v1067_v61  ;;  %vm1066_vm15 = vcmp.eq.f32.partialorder %v1065_v63, 8.507059e+37 }
 0xd67   :  { %v1074_v49 = vmul.f32 %v2118_v38, %v1073_v45 }
 0xd69   :  { %v1075_v52 = vadd.f32 %v2118_v38, %v1074_v49 }
 0xd6a   :  { %v2120_v53 = vpop.eup %2119 }
 0xd6b   :  { %v1079_v55 = vsel %vm1078_vm6, %v2118_v38, %v1075_v52  ;;  %v1057_v51 = vmul.f32 %v2120_v53, %v1052_v40  ;;  %vm1062_vm8 = vweird.f32 %v2120_v53 }
 0xd6c   :  { %v1084_v56 = vsel %vm1081_vm7, %v1083_v54, %v1079_v55  ;;  %vm1063_vm14 = vmor %vm1061_vm10, %vm1062_vm8 }
 0xd6d   :  { %v1085_v60 = vmul.f32 %v2114_v43, %v1084_v56  ;;  %v1058_v59 = vsub.f32 1.0, %v1057_v51 }
 0xd6f   :  { %v1059_v62 = vmul.f32 %v2120_v53, %v1058_v59  ;;  %v1087_v1 = vpack.c.bf16 %v1085_v60, %v1085_v60 }
 0xd71   :  { %v1060_v2 = vadd.f32 %v2120_v53, %v1059_v62  ;;  %1942 = vmatmul.msk.bf16.vlgmr.msra.gmra.mxu2 %vm373_vm13, %v1087_v1 }
 0xd73   :  { %v1064_v9 = vsel %vm1063_vm14, %v2120_v53, %v1060_v2 }
 0xd74   :  { %v1069_v10 = vsel %vm1066_vm15, %v1068_v8, %v1064_v9 }
 0xd75   :  { %v1070_v11 = vmul.f32 %v2116_v30, %v1069_v10 }
 0xd77   :  { %v1086_v12 = vpack.c.bf16 %v1070_v11, %v1070_v11 }
 0xd79   :  { %1941 = vmatmul.msk.bf16.vlgmr.msra.gmra.mxu1 %vm373_vm13, %v1086_v12 }
 0xd81   :  { %1961 = vmatmul.msk.bf16.vlgmr.msrb.gmra.mxu2 %vm332_vm11, %v1206_v14 }
 0xd83   :  { %v1255_v15 = vpop.xlane.xlu0 %1254 }
 0xd84   :  { %v1257_v18 = vsub.f32 %v1249_v32, %v1255_v15 }
 0xd86   :  { %v1260_v19 = vmul.f32 1.442695, %v1257_v18 }
 0xd88   :  { %2121 = vpow2.f32 %v1260_v19 }
 0xd89   :  { %1960 = vmatmul.msk.bf16.vlgmr.msrb.gmra.mxu1 %vm190_vm3, %v2619_v5 }
 0xd8e   :  { %v2122_v21 = vpop.eup %2121 }
 0xd8f   :  { %v1265_v22 = vsel %vm373_vm13, %v2122_v21, 0.0 }
 0xd90   :  { %1266 = vadd.xlane.f32.xlu2 %v1265_v22  ;;  %v1968_v22 = vld [vmem:[%s2322_s6 + $0x38] sm:$0xff] }
 0xdf4   :  { %v2672_v23 = vpop.f32.mrf.mxu2 }
 0xdf6   :  { %v2674_v25 = vpop.f32.mrf.mxu1 }
 0xdfc   :  { %v1126_v27 = vpop.f32.mrf.mxu2 }
 0xdfe   :  { %v1107_v43 = vpop.f32.mrf.mxu1 }
 0xe03   :  { %v1267_v0 = vpop.xlane.xlu2 %1266 }
 0xe04   :  { %2123 = vrcp.f32 %v1267_v0  ;;  %v1225_v28 = vpop.f32.mrf.mxu2  ;;  %v1294_v37 = vand.u32 2147483648, %v1267_v0  ;;  %v1292_v40 = vand.u32 2147483647, %v1267_v0  ;;  %vm1288_vm1 = vweird.f32 %v1267_v0 }
 0xe05   :  { %v1248_v30 = vmul.f32 0.25, %v1225_v28  ;;  %v1965_v28 = vld [vmem:[%s2322_s6 + $0x20] sm:$0xff] }
 0xe06   :  { %v1201_v31 = vpop.f32.mrf.mxu1  ;;  %v1295_v46 = vor.u32 1.1754944e-38, %v1294_v37  ;;  %vm1293_vm4 = vcmp.eq.f32.partialorder %v1292_v40, 8.507059e+37 }
 0xe07   :  { %v1202_v57 = vadd.f32 %v2067_v42, %v1201_v31  ;;  %v1250_v32 = vsel %vm373_vm13, %v1248_v30, -inf }
 0xe08   :  { %1251 = vmax.xlane.f32.xlu1 %v1250_v32 }
 0xe09   :  { %v1300_v5 = vpack.c.bf16 %v1202_v57, %v1202_v57 }
 0xe0a   :  { %v2124_v33 = vpop.eup %2123 }
 0xe0b   :  { %v1284_v34 = vmul.f32 %v2124_v33, %v1267_v0  ;;  %v1306_v35 = vsel %vm429_vm12, %v1300_v5, 0  ;;  %vm1289_vm0 = vweird.f32 %v2124_v33 }
 0xe0c   :  { %v1227_v58 = vpop.f32.mrf.mxu2  ;;  %1315 = vmatpush.bf16.msrb.mxu0 %v1306_v35  ;;  %vm1290_vm2 = vmor %vm1288_vm1, %vm1289_vm0 }
 0xe0d   :  { %v1285_v36 = vsub.f32 1.0, %v1284_v34  ;;  %v2068_v58 = vld [vmem:[%s2327_s12 + $0x1] ss:$0 sm:$0xff] }
 0xe0e   :  { %v1203_v38 = vpop.f32.mrf.mxu1 }
 0xe0f   :  { %v1286_v39 = vmul.f32 %v2124_v33, %v1285_v36  ;;  %v1204_v41 = vadd.f32 %v2067_v42, %v1203_v38 }
 0xe11   :  { %v1287_v44 = vadd.f32 %v2124_v33, %v1286_v39  ;;  %v1301_v45 = vpack.c.bf16 %v1204_v41, %v1204_v41 }
 0xe13   :  { %v1291_v47 = vsel %vm1290_vm2, %v2124_v33, %v1287_v44  ;;  %v1325_v49 = vsel %vm429_vm12, %v1301_v45, 0 }
 0xe14   :  { %v1296_v50 = vsel %vm1293_vm4, %v1295_v46, %v1291_v47  ;;  %1334 = vmatpush.bf16.msra.mxu1 %v1325_v49 }
 0xe15   :  { %v1297_v52 = vmul.f32 %v2122_v21, %v1296_v50  ;;  %v1967_v21 = vld [vmem:[%s2322_s6 + $0x30] sm:$0xff] }
 0xe16   :  { %v1357_v27 = vpack.c.bf16 %v1968_v22, %v1967_v21 }
 0xe17   :  { %v1299_v53 = vpack.c.bf16 %v1297_v52, %v1297_v52 }
 0xe18   :  { %1372 = vmatpush.bf16.msra.mxu2 %v1357_v27 }
 0xe19   :  { %1964 = vmatmul.msk.bf16.vlgmr.msra.gmra.mxu1 %vm373_vm13, %v1299_v53 }
 0xe7b   :  { %v1252_v54 = vpop.xlane.xlu1 %1251 }
 0xe7c   :  { %v1256_v55 = vsub.f32 %v1248_v30, %v1252_v54  ;;  %v1966_v30 = vld [vmem:[%s2322_s6 + $0x28] sm:$0xff]  ;;  %v1975_v54 = vld [vmem:[%s2809_s5 + $0x30] sm:$0xff]  ;;  %s2171_s6 = sshra.s32 %s1829_s30, 4  ;;  %s2172_s6 = int_to_ptr.hbm [resolvable:$true] %s2171_s6 }
 0xe7d   :  { %v1356_v31 = vpack.c.bf16 %v1966_v30, %v1965_v28  ;;  %s2173_s12 = scalar_lea.hbm %s2172_s6, 16  ;;  %p2176_p1 = scmp.lt.s32.totalorder %s2172_s6, %s2397_s27 }
 0xe7e   :  { %v1258_v51 = vmul.f32 1.442695, %v1256_v55  ;;  %v1976_v55 = vld [vmem:[%s2809_s5 + $0x38] sm:$0xff]  ;;  %p2174_p0 = scmp.ne.s32.totalorder %s2172_s6, %s2173_s12 }
 0xe7f   :  { %1373 = vmatpush.bf16.msra.mxu2 %v1356_v31  ;;  %v2070_v31 = vld [vmem:[%s2811_s17 + $0x1] ss:$0 sm:$0xff] }
 0xe80   :  { %2125 = vpow2.f32 %v1258_v51  ;;  %v1447_v51 = vpack.c.bf16 %v1976_v55, %v1975_v54 }
 0xe82   :  { %1462 = vmatpush.bf16.msrb.mxu3 %v1447_v51 }
 0xe86   :  { %v2126_v56 = vpop.eup %2125 }
 0xe87   :  { %v1262_v60 = vsel %vm373_vm13, %v2126_v56, 0.0 }
 0xe88   :  { %1263 = vadd.xlane.f32.xlu1 %v1262_v60 }
 0xe96   :  { %v1336_v59 = vpop.f32.mrf.mxu1 }
 0xe9e   :  { %v1338_v61 = vpop.f32.mrf.mxu1 }
 0xe9f   :  { %v1974_v61 = vld [vmem:[%s2809_s5 + $0x28] sm:$0xff] }
 0xefb   :  { %v1264_v62 = vpop.xlane.xlu1 %1263 }
 0xefc   :  { %2127 = vrcp.f32 %v1264_v62  ;;  %v1279_v8 = vand.u32 2147483648, %v1264_v62  ;;  %v1277_v10 = vand.u32 2147483647, %v1264_v62  ;;  %vm1273_vm5 = vweird.f32 %v1264_v62 }
 0xefe   :  { %v1280_v12 = vor.u32 1.1754944e-38, %v1279_v8  ;;  %vm1278_vm7 = vcmp.eq.f32.partialorder %v1277_v10, 8.507059e+37 }
 0xf02   :  { %v2128_v63 = vpop.eup %2127 }
 0xf03   :  { %v1269_v1 = vmul.f32 %v2128_v63, %v1264_v62  ;;  %vm1274_vm12 = vweird.f32 %v2128_v63 }
 0xf04   :  { %vm1275_vm6 = vmor %vm1273_vm5, %vm1274_vm12 }
 0xf05   :  { %v1270_v2 = vsub.f32 1.0, %v1269_v1 }
 0xf07   :  { %v1271_v9 = vmul.f32 %v2128_v63, %v1270_v2 }
 0xf09   :  { %v1272_v11 = vadd.f32 %v2128_v63, %v1271_v9 }
 0xf0b   :  { %v1276_v14 = vsel %vm1275_vm6, %v2128_v63, %v1272_v11 }
 0xf0c   :  { %v1281_v15 = vsel %vm1278_vm7, %v1280_v12, %v1276_v14 }
 0xf0d   :  { %v1282_v18 = vmul.f32 %v2126_v56, %v1281_v15 }
 0xf0f   :  { %v1298_v19 = vpack.c.bf16 %v1282_v18, %v1282_v18 }
 0xf11   :  { %1963 = vmatmul.msk.bf16.vlgmr.msrb.gmra.mxu0 %vm373_vm13, %v1298_v19 }
 0xf8e   :  { %v1317_v43 = vpop.f32.mrf.mxu0 }
 0xf8f   :  { %v2039_v0 = vpack.i.bf16 %v1336_v59, %v1317_v43  ;;  %v1973_v59 = vld [vmem:[%s2809_s5 + $0x20] sm:$0xff] }
 0xf90   :  { %v1446_v63 = vpack.c.bf16 %v1974_v61, %v1973_v59 }
 0xf91   :  { %2040 = vrot.lane.b32.xlu0 %v2039_v0, %s2243_s0  ;;  %v2069_v0 = vld [vmem:[%s2810_s13 + $0x1] ss:$0 sm:$0xff] }
 0xf92   :  { %1463 = vmatpush.bf16.msrb.mxu3 %v1446_v63 }
 0xf96   :  { %v1319_v42 = vpop.f32.mrf.mxu0 }
0x1003   :  { %v2041_v57 = vpop.permute.xlu0 %2040 }
0x1004   :  { %v2043_v32 = vunpack.i.h.bf16 %v2041_v57  ;;  %v2042_v5 = vunpack.i.l.bf16 %v2041_v57 }
0x1006   :  { %v1349_v33 = vsel %vm332_vm11, %v2672_v23, %v2043_v32  ;;  %v1348_v34 = vsel %vm332_vm11, %v2674_v25, %v2042_v5 }
0x1007   :  { %v1355_v35 = vpack.c.bf16 %v1349_v33, %v1348_v34 }
0x1009   :  { %1970 = vmatmul.msk.bf16.vlgmr.msra.gmra.mxu2 %vm190_vm3, %v1355_v35 }
0x108c   :  { %v1375_v36 = vpop.f32.mrf.mxu2 }
0x108d   :  { %v1376_v37 = vadd.f32 %v2068_v58, %v1375_v36  ;;  %v1986_v36 = vld [vmem:[%s2812_s21 + $0x78] sm:$0xff] }
0x108f   :  { %v1380_v38 = vadd.f32 %v1376_v37, %v2613_v3 }
0x1091   :  { %v1386_v39 = vsel %vm190_vm3, %v1380_v38, 0.0 }
0x1092   :  { %1387 = vadd.xlane.f32.xlu1 %v1386_v39  ;;  %v1984_v39 = vld [vmem:[%s2812_s21 + $0x68] sm:$0xff] }
0x1094   :  { %v1377_v40 = vpop.f32.mrf.mxu2 }
0x1095   :  { %v1378_v41 = vadd.f32 %v2068_v58, %v1377_v40  ;;  %v1985_v58 = vld [vmem:[%s2812_s21 + $0x70] sm:$0xff] }
0x1096   :  { %v1501_v37 = vpack.c.bf16 %v1986_v36, %v1985_v58  ;;  %v1586_v36 = vld [vmem:[%s2817_s3 + $0x10] sm:$0xff] }
0x1097   :  { %v1381_v44 = vadd.f32 %v1378_v41, %v2615_v4  ;;  %v1981_v41 = vld [vmem:[%s2812_s21 + $0x50] sm:$0xff] }
0x1098   :  { %1514 = vmatpush.bf16.msra.mxu0 %v1501_v37  ;;  %v1587_v37 = vld [vmem:[%s2817_s3 + $0x18] sm:$0xff] }
0x1099   :  { %v1389_v23 = vsel %vm190_vm3, %v1381_v44, 0.0 }
0x109a   :  { %1390 = vadd.xlane.f32.xlu2 %v1389_v23 }
0x1105   :  { %v1388_v25 = vpop.xlane.xlu1 %1387 }
0x1106   :  { %v1392_v45 = vmul.f32 %v1388_v25, %v2454_v48  ;;  %v1979_v25 = vld [vmem:[%s2812_s21 + $0x40] sm:$0xff] }
0x1108   :  { %v1394_v46 = vsub.f32 %v1380_v38, %v1392_v45  ;;  %v1983_v38 = vld [vmem:[%s2812_s21 + $0x60] sm:$0xff]  ;;  %v1980_v45 = vld [vmem:[%s2812_s21 + $0x48] sm:$0xff] }
0x1109   :  { %v1500_v40 = vpack.c.bf16 %v1984_v39, %v1983_v38  ;;  %v1590_v38 = vpack.c.bf16 %v1587_v37, %v1586_v36 }
0x110a   :  { %v1396_v47 = vmul.f32 %v1394_v46, %v1394_v46 }
0x110b   :  { %1515 = vmatpush.bf16.msra.mxu0 %v1500_v40  ;;  %1604 = vmatpush.bf16.msrb.mxu1 %v1590_v38 }
0x110c   :  { %v1398_v3 = vsel %vm190_vm3, %v1396_v47, 0.0  ;;  %v1498_v47 = vpack.c.bf16 %v1980_v45, %v1979_v25 }
0x110d   :  { %v1391_v49 = vpop.xlane.xlu2 %1390  ;;  %1399 = vadd.xlane.f32.xlu1 %v1398_v3 }
0x110e   :  { %v1393_v50 = vmul.f32 %v1391_v49, %v2454_v48 }
0x1110   :  { %v1395_v52 = vsub.f32 %v1381_v44, %v1393_v50  ;;  %v1982_v44 = vld [vmem:[%s2812_s21 + $0x58] sm:$0xff] }
0x1111   :  { %v1499_v23 = vpack.c.bf16 %v1982_v44, %v1981_v41  ;;  %v1584_v41 = vld [vmem:[%s2817_s3] sm:$0xff]  ;;  %v1585_v44 = vld [vmem:[%s2817_s3 + $0x8] sm:$0xff] }
0x1112   :  { %v1397_v53 = vmul.f32 %v1395_v52, %v1395_v52  ;;  %v1589_v25 = vpack.c.bf16 %v1585_v44, %v1584_v41  ;;  %v1716_v44 = vsel %vm190_vm3, %v2409_v6, 0 }
0x1113   :  { %1516 = vmatpush.bf16.msra.mxu0 %v1499_v23  ;;  %1718 = vmatpush.bf16.xpose.msrb.mxu2 %v1716_v44 }
0x1114   :  { %v1401_v4 = vsel %vm190_vm3, %v1397_v53, 0.0  ;;  %1605 = vmatpush.bf16.msrb.mxu1 %v1589_v25  ;;  %v1710_v25 = vsel %vm190_vm3, %v2420_v13, 0 }
0x1115   :  { %1402 = vadd.xlane.f32.xlu2 %v1401_v4 }
0x1117   :  { %1517 = vmatpush.bf16.msra.mxu0 %v1498_v47 }
0x1180   :  { %v1400_v56 = vpop.xlane.xlu1 %1399 }
0x1181   :  { %v1404_v60 = vmul.f32 %v1400_v56, %v2454_v48 }
0x1183   :  { %v1406_v62 = vadd.f32 1e-12, %v1404_v60 }
0x1185   :  { %2129 = vrsqrt.f32 %v1406_v62  ;;  %vm1414_vm13 = vweird.f32 %v1406_v62 }
0x1188   :  { %v1403_v1 = vpop.xlane.xlu2 %1402 }
0x1189   :  { %v1405_v2 = vmul.f32 %v1403_v1, %v2454_v48 }
0x118b   :  { %v2130_v8 = vpop.eup %2129  ;;  %v1407_v9 = vadd.f32 1e-12, %v1405_v2 }
0x118c   :  { %v1409_v10 = vmul.f32 %v2130_v8, %v1406_v62  ;;  %vm1415_vm11 = vweird.f32 %v2130_v8 }
0x118d   :  { %2131 = vrsqrt.f32 %v1407_v9  ;;  %vm1416_vm8 = vmor %vm1414_vm13, %vm1415_vm11  ;;  %vm1424_vm14 = vweird.f32 %v1407_v9 }
0x118e   :  { %v1410_v11 = vmul.f32 %v2130_v8, %v1409_v10 }
0x1190   :  { %v1411_v12 = vmul.f32 0.5, %v1410_v11 }
0x1192   :  { %v1412_v14 = vsub.f32 1.5, %v1411_v12 }
0x1193   :  { %v2132_v15 = vpop.eup %2131 }
0x1194   :  { %v1413_v18 = vmul.f32 %v2130_v8, %v1412_v14  ;;  %v1419_v19 = vmul.f32 %v2132_v15, %v1407_v9  ;;  %vm1425_vm10 = vweird.f32 %v2132_v15 }
0x1195   :  { %vm1426_vm15 = vmor %vm1424_vm14, %vm1425_vm10 }
0x1196   :  { %v1420_v21 = vmul.f32 %v2132_v15, %v1419_v19  ;;  %v1417_v22 = vsel %vm1416_vm8, %v2130_v8, %v1413_v18 }
0x1197   :  { %v1428_v42 = vmul.f32 %v1417_v22, %v1394_v46  ;;  %v2071_v46 = vld [vmem:[%s2813_s25 + $0x1] ss:$0 sm:$0xff] }
0x1198   :  { %v1421_v27 = vmul.f32 0.5, %v1420_v21 }
0x1199   :  { %v1433_v57 = vmul.f32 %v2069_v0, %v1428_v42 }
0x119a   :  { %v1422_v43 = vsub.f32 1.5, %v1421_v27 }
0x119b   :  { %v1438_v33 = vadd.f32 %v2070_v31, %v1433_v57 }
0x119c   :  { %v1423_v28 = vmul.f32 %v2132_v15, %v1422_v43 }
0x119e   :  { %v1427_v30 = vsel %vm1426_vm15, %v2132_v15, %v1423_v28  ;;  %v2072_v15 = vld [vmem:[%s2814_s29 + $0x1] ss:$0 sm:$0xff]  ;;  %vm1782_vm15 = vcmask 7168  }
0x119f   :  { %v1429_v32 = vmul.f32 %v1427_v30, %v1395_v52 }
0x11a1   :  { %v1434_v5 = vmul.f32 %v2069_v0, %v1429_v32 }
0x11a3   :  { %v1439_v34 = vadd.f32 %v2070_v31, %v1434_v5 }
0x11a5   :  { %v1445_v35 = vpack.c.bf16 %v1439_v34, %v1438_v33 }
0x11a7   :  { %1978 = vmatmul.msk.bf16.vlgmr.msrb.gmra.mxu3 %vm190_vm3, %v1445_v35 }
0x122a   :  { %v1465_v3 = vpop.f32.mrf.mxu3 }
0x122b   :  { %v1466_v49 = vadd.f32 %v2071_v46, %v1465_v3 }
0x122d   :  { %v1472_v50 = vmul.f32 0.044715, %v1466_v49  ;;  %v1470_v8 = vmul.f32 0.5, %v1466_v49 }
0x122f   :  { %v1474_v52 = vmul.f32 %v1472_v50, %v1466_v49 }
0x1231   :  { %v1476_v53 = vmul.f32 %v1474_v52, %v1466_v49 }
0x1232   :  { %v1467_v4 = vpop.f32.mrf.mxu3 }
0x1233   :  { %v1478_v54 = vadd.f32 %v1476_v53, %v1466_v49  ;;  %v1468_v55 = vadd.f32 %v2071_v46, %v1467_v4 }
0x1235   :  { %v1473_v51 = vmul.f32 0.044715, %v1468_v55  ;;  %v1480_v56 = vmul.f32 0.7978846, %v1478_v54  ;;  %v1471_v9 = vmul.f32 0.5, %v1468_v55 }
0x1237   :  { %v1475_v60 = vmul.f32 %v1473_v51, %v1468_v55  ;;  %2133 = vtanh.f32 %v1480_v56 }
0x1239   :  { %v1477_v59 = vmul.f32 %v1475_v60, %v1468_v55 }
0x123b   :  { %v1479_v61 = vadd.f32 %v1477_v59, %v1468_v55 }
0x123d   :  { %v1481_v62 = vmul.f32 0.7978846, %v1479_v61  ;;  %v2134_v63 = vpop.eup %2133  ;;  %v2073_v61 = vld [vmem:[%s2815_s7 + $0x1] ss:$0 sm:$0xff] }
0x123e   :  { %v1484_v1 = vadd.f32 1.0, %v2134_v63 }
0x123f   :  { %2135 = vtanh.f32 %v1481_v62 }
0x1240   :  { %v1486_v11 = vmul.f32 %v1484_v1, %v1470_v8 }
0x1245   :  { %v2136_v2 = vpop.eup %2135 }
0x1246   :  { %v1485_v10 = vadd.f32 1.0, %v2136_v2  ;;  %v2074_v2 = vld [vmem:[%s2816_s10 + $0x1] ss:$0 sm:$0xff] }
0x1248   :  { %v1487_v12 = vmul.f32 %v1485_v10, %v1471_v9 }
0x124a   :  { %v1497_v14 = vpack.c.bf16 %v1487_v12, %v1486_v11 }
0x124c   :  { %1988 = vmatmul.msk.bf16.vlgmr.msra.gmra.mxu0 %vm836_vm9, %v1497_v14 }
0x12c9   :  { %v1519_v18 = vpop.f32.mrf.mxu0 }
0x12ca   :  { %v1520_v19 = vadd.f32 %v2072_v15, %v1519_v18 }
0x12cc   :  { %v1524_v21 = vadd.f32 %v1520_v19, %v1438_v33 }
0x12ce   :  { %v1530_v22 = vsel %vm190_vm3, %v1524_v21, 0.0 }
0x12cf   :  { %1531 = vadd.xlane.f32.xlu0 %v1530_v22 }
0x12d1   :  { %v1521_v27 = vpop.f32.mrf.mxu0 }
0x12d2   :  { %v1522_v43 = vadd.f32 %v2072_v15, %v1521_v27  ;;  %v2075_v15 = vld [vmem:[%s2818_s8] ss:$0 sm:$0xff] }
0x12d4   :  { %v1525_v0 = vadd.f32 %v1522_v43, %v1439_v34 }
0x12d6   :  { %v1533_v42 = vsel %vm190_vm3, %v1525_v0, 0.0 }
0x12d7   :  { %1534 = vadd.xlane.f32.xlu1 %v1533_v42 }
0x1342   :  { %v1532_v28 = vpop.xlane.xlu0 %1531 }
0x1343   :  { %v1536_v30 = vmul.f32 %v1532_v28, %v2454_v48 }
0x1345   :  { %v1538_v31 = vsub.f32 %v1524_v21, %v1536_v30 }
0x1347   :  { %v1540_v57 = vmul.f32 %v1538_v31, %v1538_v31 }
0x1349   :  { %v1542_v32 = vsel %vm190_vm3, %v1540_v57, 0.0 }
0x134a   :  { %v1535_v5 = vpop.xlane.xlu1 %1534  ;;  %1543 = vadd.xlane.f32.xlu2 %v1542_v32 }
0x134b   :  { %v1537_v33 = vmul.f32 %v1535_v5, %v2454_v48 }
0x134d   :  { %v1539_v35 = vsub.f32 %v1525_v0, %v1537_v33 }
0x134f   :  { %v1541_v58 = vmul.f32 %v1539_v35, %v1539_v35 }
0x1351   :  { %v1545_v34 = vsel %vm190_vm3, %v1541_v58, 0.0 }
0x1352   :  { %1546 = vadd.xlane.f32.xlu1 %v1545_v34 }
0x13bd   :  { %v1544_v39 = vpop.xlane.xlu2 %1543 }
0x13be   :  { %v1548_v40 = vmul.f32 %v1544_v39, %v2454_v48 }
0x13c0   :  { %v1550_v23 = vadd.f32 1e-12, %v1548_v40 }
0x13c2   :  { %2137 = vrsqrt.f32 %v1550_v23  ;;  %vm1558_vm0 = vweird.f32 %v1550_v23 }
0x13c5   :  { %v1547_v45 = vpop.xlane.xlu1 %1546 }
0x13c6   :  { %v1549_v46 = vmul.f32 %v1547_v45, %v2454_v48 }
0x13c8   :  { %v2138_v47 = vpop.eup %2137  ;;  %v1551_v3 = vadd.f32 1e-12, %v1549_v46 }
0x13c9   :  { %v1553_v49 = vmul.f32 %v2138_v47, %v1550_v23  ;;  %vm1559_vm9 = vweird.f32 %v2138_v47  ;;  %v1713_v23 = vsel %vm190_vm3, %v2412_v7, 0 }
0x13ca   :  { %2139 = vrsqrt.f32 %v1551_v3  ;;  %vm1560_vm1 = vmor %vm1558_vm0, %vm1559_vm9  ;;  %vm1568_vm4 = vweird.f32 %v1551_v3  ;;  %1719 = vmatpush.bf16.xpose.msrb.mxu2 %v1713_v23 }
0x13cb   :  { %v1554_v50 = vmul.f32 %v2138_v47, %v1553_v49  ;;  %v1707_v49 = vsel %vm190_vm3, %v2425_v16, 0  ;;  %v1698_v16 = vsel %vm190_vm3, %v2439_v24, 0 }
0x13cd   :  { %v1555_v52 = vmul.f32 0.5, %v1554_v50 }
0x13cf   :  { %v1556_v53 = vsub.f32 1.5, %v1555_v52 }
0x13d0   :  { %v2140_v4 = vpop.eup %2139 }
0x13d1   :  { %v1557_v54 = vmul.f32 %v2138_v47, %v1556_v53  ;;  %v1563_v55 = vmul.f32 %v2140_v4, %v1551_v3  ;;  %vm1569_vm2 = vweird.f32 %v2140_v4 }
0x13d2   :  { %vm1570_vm12 = vmor %vm1568_vm4, %vm1569_vm2  ;;  %1720 = vmatpush.bf16.xpose.msrb.mxu2 %v1710_v25 }
0x13d3   :  { %v1564_v51 = vmul.f32 %v2140_v4, %v1563_v55  ;;  %v1561_v56 = vsel %vm1560_vm1, %v2138_v47, %v1557_v54  ;;  %v1701_v54 = vsel %vm190_vm3, %v2433_v20, 0 }
0x13d4   :  { %v1572_v62 = vmul.f32 %v1561_v56, %v1538_v31 }
0x13d5   :  { %v1565_v60 = vmul.f32 0.5, %v1564_v51  ;;  %v1695_v51 = vsel %vm190_vm3, %v2443_v26, 0 }
0x13d6   :  { %v1577_v8 = vmul.f32 %v2073_v61, %v1572_v62 }
0x13d7   :  { %v1566_v59 = vsub.f32 1.5, %v1565_v60 }
0x13d8   :  { %v1582_v11 = vadd.f32 %v2074_v2, %v1577_v8 }
0x13d9   :  { %v1567_v63 = vmul.f32 %v2140_v4, %v1566_v59 }
0x13da   :  { %1721 = vmatpush.bf16.xpose.msrb.mxu2 %v1707_v49 }
0x13db   :  { %v1571_v1 = vsel %vm1570_vm12, %v2140_v4, %v1567_v63  ;;  %v1704_v4 = vsel %vm190_vm3, %v2428_v17, 0 }
0x13dc   :  { %v1573_v9 = vmul.f32 %v1571_v1, %v1539_v35 }
0x13de   :  { %v1578_v10 = vmul.f32 %v2073_v61, %v1573_v9 }
0x13e0   :  { %v1583_v12 = vadd.f32 %v2074_v2, %v1578_v10 }
0x13e2   :  { %v1588_v14 = vpack.c.bf16 %v1583_v12, %v1582_v11  ;;  %1722 = vmatpush.bf16.xpose.msrb.mxu2 %v1704_v4 }
0x13e4   :  { %1991 = vmatmul.msk.bf16.vlgmr.msrb.gmra.mxu1 %vm190_vm3, %v1588_v14 }
0x13ea   :  { %1723 = vmatpush.bf16.xpose.msrb.mxu2 %v1701_v54 }
0x13f2   :  { %1724 = vmatpush.bf16.xpose.msrb.mxu2 %v1698_v16 }
0x13fa   :  { %1725 = vmatpush.bf16.xpose.msrb.mxu2 %v1695_v51 }
0x1461   :  { %v1607_v18 = vpop.f32.mrf.mxu1 }
0x1462   :  { %v1608_v19 = vadd.f32 %v2075_v15, %v1607_v18 }
0x1464   :  { %v1614_v21 = vmul.f32 0.044715, %v1608_v19  ;;  %v1612_v35 = vmul.f32 0.5, %v1608_v19 }
0x1466   :  { %v1616_v22 = vmul.f32 %v1614_v21, %v1608_v19 }
0x1468   :  { %v1618_v27 = vmul.f32 %v1616_v22, %v1608_v19 }
0x1469   :  { %v1609_v43 = vpop.f32.mrf.mxu1 }
0x146a   :  { %v1610_v0 = vadd.f32 %v2075_v15, %v1609_v43  ;;  %v1620_v42 = vadd.f32 %v1618_v27, %v1608_v19  ;;  %v2077_v19 = vld [vmem:[%s2387_s9] ss:$0 sm:$0xff]  ;;  %s2245_s9 = smov [#allocation2]  }
0x146b   :  { %s1826_s24 = sshll.u32 %s2245_s9, 4  ;;  %s1827_s24 = int_to_ptr.vmem [resolvable:$true] %s1826_s24 }
0x146c   :  { %v1615_v28 = vmul.f32 0.044715, %v1610_v0  ;;  %v1622_v30 = vmul.f32 0.7978846, %v1620_v42  ;;  %v1613_v38 = vmul.f32 0.5, %v1610_v0 }
0x146e   :  { %2141 = vtanh.f32 %v1622_v30  ;;  %v1617_v31 = vmul.f32 %v1615_v28, %v1610_v0  ;;  %v2078_v28 = vld [vmem:[%s2392_s20] ss:$0 sm:$0xff]  ;;  %s2175_s20 = scalar_lea.hbm %s2397_s27, 16 }
0x146f   :  { %p2177_p2 = scmp.lt.s32.totalorder %s2175_s20, %s2173_s12 }
0x1470   :  { %v1619_v57 = vmul.f32 %v1617_v31, %v1610_v0 }
0x1471   :  { %p2178_p3 = por %p2177_p2, %p2176_p1 }
0x1472   :  { %v1621_v32 = vadd.f32 %v1619_v57, %v1610_v0 }
0x1473   :  { %p2179_p4 = pnand %p2178_p3, %p2174_p0 }
0x1474   :  { %v2142_v5 = vpop.eup %2141  ;;  %v1623_v33 = vmul.f32 0.7978846, %v1621_v32 }
0x1475   :  { %v1626_v58 = vadd.f32 1.0, %v2142_v5  ;;  %v1756_v5 = vld [vmem:[%s2820_s19] sm:$0xff] }
0x1476   :  { %2143 = vtanh.f32 %v1623_v33  ;;  %vm1772_vm14 = vcmp.ge.s32.totalorder %v1756_v5, 0 }
0x1477   :  { %v1628_v34 = vmul.f32 %v1626_v58, %v1612_v35 }
0x1479   :  { %v1632_v36 = vsel %vm190_vm3, %v1628_v34, 0.0 }
0x147a   :  { %1633 = vadd.xlane.f32.xlu2 %v1632_v36 }
0x147c   :  { %v2144_v37 = vpop.eup %2143 }
0x147d   :  { %v1627_v39 = vadd.f32 1.0, %v2144_v37 }
0x147f   :  { %v1629_v40 = vmul.f32 %v1627_v39, %v1613_v38 }
0x1481   :  { %v1635_v41 = vsel %vm190_vm3, %v1629_v40, 0.0 }
0x1482   :  { %1636 = vadd.xlane.f32.xlu1 %v1635_v41 }
0x14ed   :  { %v1634_v45 = vpop.xlane.xlu2 %1633 }
0x14ee   :  { %v1638_v46 = vmul.f32 %v1634_v45, %v2454_v48 }
0x14f0   :  { %v1640_v47 = vsub.f32 %v1628_v34, %v1638_v46 }
0x14f2   :  { %v1642_v3 = vmul.f32 %v1640_v47, %v1640_v47 }
0x14f4   :  { %v1644_v50 = vsel %vm190_vm3, %v1642_v3, 0.0 }
0x14f5   :  { %v1637_v6 = vpop.xlane.xlu1 %1636  ;;  %1645 = vadd.xlane.f32.xlu2 %v1644_v50 }
0x14f6   :  { %v1639_v52 = vmul.f32 %v1637_v6, %v2454_v48 }
0x14f8   :  { %v1641_v7 = vsub.f32 %v1629_v40, %v1639_v52  ;;  %v1757_v40 = vld [vmem:[%s2820_s19 + $0x8] sm:$0xff] }
0x14f9   :  { %vm1773_vm9 = vcmp.ge.s32.totalorder %v1757_v40, 0 }
0x14fa   :  { %v1643_v53 = vmul.f32 %v1641_v7, %v1641_v7 }
0x14fc   :  { %v1647_v13 = vsel %vm190_vm3, %v1643_v53, 0.0 }
0x14fd   :  { %1648 = vadd.xlane.f32.xlu1 %v1647_v13  ;;  %v2244_v13 = vmov 0.0  }
0x14fe   :  { %v1993_v4 = vsel %vm1772_vm14, 1.0, %v2244_v13  ;;  %v1994_v16 = vsel %vm1773_vm9, 1.0, %v2244_v13 }
0x14ff   :  { %v1792_v54 = vsel %vm1782_vm15, %v1993_v4, 0.0 }
0x1568   :  { %v1646_v55 = vpop.xlane.xlu2 %1645 }
0x1569   :  { %v1650_v56 = vmul.f32 %v1646_v55, %v2454_v48  ;;  %v1793_v55 = vsel %vm1782_vm15, %v1994_v16, 0.0 }
0x156a   :  { %v1794_v51 = vadd.f32 %v1793_v55, %v1792_v54 }
0x156b   :  { %v1652_v60 = vadd.f32 1e-12, %v1650_v56 }
0x156c   :  { %v1795_v56 = vrot.slane %v1794_v51, 4 }
0x156d   :  { %2145 = vrsqrt.f32 %v1652_v60  ;;  %vm1660_vm6 = vweird.f32 %v1652_v60 }
0x1570   :  { %v1649_v59 = vpop.xlane.xlu1 %1648 }
0x1571   :  { %v1651_v17 = vmul.f32 %v1649_v59, %v2454_v48  ;;  %v2076_v48 = vld [vmem:[%s2819_s14] ss:$0 sm:$0xff] }
0x1573   :  { %v2146_v61 = vpop.eup %2145  ;;  %v1653_v62 = vadd.f32 1e-12, %v1651_v17 }
0x1574   :  { %v1655_v20 = vmul.f32 %v2146_v61, %v1652_v60  ;;  %vm1661_vm5 = vweird.f32 %v2146_v61  ;;  %v1796_v60 = vadd.f32 %v1795_v56, %v1794_v51 }
0x1575   :  { %2147 = vrsqrt.f32 %v1653_v62  ;;  %vm1662_vm7 = vmor %vm1660_vm6, %vm1661_vm5  ;;  %vm1670_vm13 = vweird.f32 %v1653_v62 }
0x1576   :  { %v1656_v63 = vmul.f32 %v2146_v61, %v1655_v20  ;;  %v1797_v59 = vrot.slane %v1796_v60, 2 }
0x1578   :  { %v1657_v24 = vmul.f32 0.5, %v1656_v63  ;;  %v1798_v17 = vadd.f32 %v1797_v59, %v1796_v60 }
0x157a   :  { %v1658_v1 = vsub.f32 1.5, %v1657_v24 }
0x157b   :  { %v2148_v2 = vpop.eup %2147 }
0x157c   :  { %v1659_v8 = vmul.f32 %v2146_v61, %v1658_v1  ;;  %v1665_v26 = vmul.f32 %v2148_v2, %v1653_v62  ;;  %vm1671_vm11 = vweird.f32 %v2148_v2 }
0x157d   :  { %vm1672_vm8 = vmor %vm1670_vm13, %vm1671_vm11 }
0x157e   :  { %v1666_v9 = vmul.f32 %v2148_v2, %v1665_v26  ;;  %v1663_v10 = vsel %vm1662_vm7, %v2146_v61, %v1659_v8  ;;  %v1799_v61 = vrot.slane %v1798_v17, 1 }
0x157f   :  { %v1674_v14 = vmul.f32 %v1663_v10, %v1640_v47 }
0x1580   :  { %v1667_v11 = vmul.f32 0.5, %v1666_v9 }
0x1581   :  { %v1679_v21 = vmul.f32 %v2076_v48, %v1674_v14 }
0x1582   :  { %v1668_v12 = vsub.f32 1.5, %v1667_v11 }
0x1583   :  { %v1684_v43 = vadd.f32 %v2077_v19, %v1679_v21 }
0x1584   :  { %v1669_v15 = vmul.f32 %v2148_v2, %v1668_v12 }
0x1586   :  { %v1673_v18 = vsel %vm1672_vm8, %v2148_v2, %v1669_v15 }
0x1587   :  { %v1675_v22 = vmul.f32 %v1673_v18, %v1641_v7 }
0x1589   :  { %v1680_v27 = vmul.f32 %v2076_v48, %v1675_v22 }
0x158b   :  { %v1685_v0 = vadd.f32 %v2077_v19, %v1680_v27 }
0x158d   :  { %v1686_v42 = vpack.c.bf16 %v1685_v0, %v1684_v43 }
0x158f   :  { %1992 = vmatmul.msk.bf16.vlgmr.msrb.gmra.mxu2 %vm190_vm3, %v1686_v42 }
0x1612   :  { %v1727_v30 = vpop.f32.mrf.mxu2 }
0x1613   :  { %v1728_v31 = vadd.f32 %v2078_v28, %v1727_v30 }
0x1615   :  { %1732 = vst [vmem:[#allocation2] sm:$0xff] %v1728_v31  ;;  %1734 = vmax.xlane.f32.xlu2 %v1728_v31 }
0x161a   :  { %v1729_v57 = vpop.f32.mrf.mxu2 }
0x161b   :  { %v1730_v32 = vadd.f32 %v2078_v28, %v1729_v57 }
0x161d   :  { %1733 = vst [vmem:[#allocation2 + $0x8] sm:$0xff] %v1730_v32  ;;  %1736 = vmax.xlane.f32.xlu1 %v1730_v32 }
0x1636   :  { %1759 = vperm.xlu1 %2044, %v1756_v5  }
0x1688   :  { %v1735_v33 = vpop.xlane.xlu2 %1734 }
0x1689   :  { %v1738_v35 = vsub.f32 %v1728_v31, %v1735_v33 }
0x168b   :  { %v1740_v58 = vmul.f32 1.442695, %v1738_v35 }
0x168d   :  { %2149 = vpow2.f32 %v1740_v58 }
0x1690   :  { %v1737_v34 = vpop.xlane.xlu1 %1736 }
0x1691   :  { %v1739_v36 = vsub.f32 %v1730_v32, %v1737_v34 }
0x1693   :  { %v2150_v37 = vpop.eup %2149  ;;  %v1742_v38 = vmul.f32 1.442695, %v1739_v36 }
0x1694   :  { %1744 = vadd.xlane.f32.xlu2 %v2150_v37 }
0x1695   :  { %2151 = vpow2.f32 %v1742_v38 }
0x169b   :  { %v2152_v39 = vpop.eup %2151 }
0x169c   :  { %1746 = vadd.xlane.f32.xlu0 %v2152_v39 }
0x16a8   :  { %v1760_v45 = vpop.permute.xlu1 %1759 }
0x16a9   :  { %vm1764_vm3 = vcmp.eq.s32.totalorder %v1760_v45, %v2446_v29 }
0x16ac   :  { %1762 = vperm.xlu2 %2045, %v1757_v40  }
0x1707   :  { %v1745_v41 = vpop.xlane.xlu2 %1744 }
0x1708   :  { %2153 = vlog2.f32 %v1745_v41 }
0x170e   :  { %v2154_v44 = vpop.eup %2153 }
0x170f   :  { %v1749_v23 = vmul.f32 0.6931472, %v2154_v44  ;;  %v1747_v25 = vpop.xlane.xlu0 %1746  ;;  %v1763_v6 = vpop.permute.xlu2 %1762 }
0x1710   :  { %2155 = vlog2.f32 %v1747_v25  ;;  %vm1765_vm10 = vcmp.eq.s32.totalorder %v1763_v6, %v2446_v29  ;;  %v1800_v29 = vadd.f32 %v1799_v61, %v1798_v17 }
0x1711   :  { %v1752_v46 = vadd.f32 %v1749_v23, %v1735_v33 }
0x1712   :  { %2157 = vrcp.f32 %v1800_v29  ;;  %vm1806_vm0 = vweird.f32 %v1800_v29  ;;  %v1812_v15 = vand.u32 2147483648, %v1800_v29  ;;  %v1810_v21 = vand.u32 2147483647, %v1800_v29 }
0x1713   :  { %v1754_v47 = vsub.f32 %v1728_v31, %v1752_v46 }
0x1715   :  { %v1766_v3 = vsel %vm1764_vm3, %v1754_v47, 0.0 }
0x1716   :  { %v2156_v49 = vpop.eup %2155  ;;  %1768 = vadd.xlane.f32.xlu0 %v1766_v3 }
0x1717   :  { %v1751_v50 = vmul.f32 0.6931472, %v2156_v49 }
0x1718   :  { %v2158_v20 = vpop.eup %2157 }
0x1719   :  { %v1753_v52 = vadd.f32 %v1751_v50, %v1737_v34  ;;  %v1802_v24 = vmul.f32 %v2158_v20, %v1800_v29  ;;  %vm1807_vm1 = vweird.f32 %v2158_v20 }
0x171a   :  { %vm2775_vm2 = vmor %vm1806_vm0, %vm1807_vm1 }
0x171b   :  { %v1755_v7 = vsub.f32 %v1730_v32, %v1753_v52  ;;  %v1803_v26 = vsub.f32 1.0, %v1802_v24 }
0x171d   :  { %v1767_v53 = vsel %vm1765_vm10, %v1755_v7, 0.0  ;;  %v1804_v48 = vmul.f32 %v2158_v20, %v1803_v26 }
0x171e   :  { %1770 = vadd.xlane.f32.xlu0 %v1767_v53 }
0x171f   :  { %v1805_v19 = vadd.f32 %v2158_v20, %v1804_v48 }
0x1789   :  { %v1769_v62 = vpop.xlane.xlu0 %1768 }
0x178a   :  { %v1778_v63 = vsub.f32 0.0, %v1769_v62 }
0x178c   :  { %v1780_v2 = vmul.f32 %v1993_v4, %v1778_v63 }
0x178e   :  { %v1783_v10 = vsel %vm1782_vm15, %v1780_v2, 0.0 }
0x1791   :  { %v1771_v1 = vpop.xlane.xlu0 %1770 }
0x1792   :  { %v1779_v8 = vsub.f32 0.0, %v1771_v1 }
0x1794   :  { %v1781_v9 = vmul.f32 %v1994_v16, %v1779_v8 }
0x1796   :  { %v1784_v11 = vsel %vm1782_vm15, %v1781_v9, 0.0 }
0x1797   :  { %v1785_v12 = vadd.f32 %v1784_v11, %v1783_v10 }
0x1799   :  { %v1786_v14 = vrot.slane %v1785_v12, 4 }
0x179b   :  { %v1787_v18 = vadd.f32 %v1786_v14, %v1785_v12 }
0x179d   :  { %v1788_v27 = vrot.slane %v1787_v18, 2 }
0x179e   :  { %2182 = shalt.err (!%p2179_p4)
}
0x179f   :  { %s2246_s11 = smov 128   ;;  %s2247_s15 = smov 8   ;;  %v1813_v43 = vor.u32 1.1754944e-38, %v1812_v15  ;;  %v1789_v0 = vadd.f32 %v1788_v27, %v1787_v18  ;;  %v1809_v42 = vsel %vm2775_vm2, %v2158_v20, %v1805_v19  ;;  %vm1811_vm4 = vcmp.eq.f32.partialorder %v1810_v21, 8.507059e+37 }
0x17a0   :  { %1834 = dma.vmem_to_hbm [thread:$0]  %s1827_s24, 256, %s1829_s30, [#allocation3], %s2246_s11, %s2246_s11, %s2247_s15  }
0x17a1   :  { %v1790_v28 = vrot.slane %v1789_v0, 1  ;;  %v1814_v30 = vsel %vm1811_vm4, %v1813_v43, %v1809_v42  ;;  %s2248_s27 = smov [#allocation4]   ;;  %s1842_s18 = sshll.u32 %s2402_s4, 4  ;;  %s1843_s18 = int_to_ptr.hbm [resolvable:$true] %s1842_s18 }
0x17a2   :  { %s1840_s16 = sshll.u32 %s2248_s27, 4  ;;  %s2195_s22 = sshra.s32 %s1843_s18, 4  ;;  %s1841_s16 = int_to_ptr.vmem [resolvable:$true] %s1840_s16  ;;  %s2196_s22 = int_to_ptr.hbm [resolvable:$true] %s2195_s22 }
0x17a3   :  { %v1791_v31 = vadd.f32 %v1790_v28, %v1789_v0  ;;  %s2197_s23 = scalar_lea.hbm %s2196_s22, 1  ;;  %s2199_s26 = scalar_lea.hbm %s2402_s4, 1 }
0x17a4   :  { %p2198_p5 = scmp.ne.s32.totalorder %s2196_s22, %s2197_s23  ;;  %p2200_p6 = scmp.lt.s32.totalorder %s2196_s22, %s2402_s4 }
0x17a5   :  { %v1815_v57 = vmul.f32 %v1814_v30, %v1791_v31  ;;  %p2201_p7 = scmp.lt.s32.totalorder %s2199_s26, %s2197_s23 }
0x17a7   :  { %1818 = vperm.xlu0 %2033, %v1815_v57   ;;  %p2202_p8 = por %p2201_p7, %p2200_p6 }
0x17a9   :  { %p2203_p9 = pnand %p2202_p8, %p2198_p5 }
0x1819   :  { %v1819_v32 = vpop.permute.xlu0 %1818 }
0x181a   :  { %1821 = vst [vmem:[#allocation4] sm:$0x1] %v1819_v32 }
0x181b   :  { %2206 = shalt.err (!%p2203_p9)
}
0x181c   :  { %1845 = dma.vmem_to_hbm [thread:$0]  %s1841_s16, 16, %s1843_s18, [#allocation5]  }
0x181d   :  { %2207 = dma.done.wait [#allocation3], 256  }
0x181e   :  { %2208 = vsyncadd [#allocation3], 4294967040 }
0x181f   :  { %2209 = dma.done.wait [#allocation5], 16  }
0x1820   :  { %2210 = vsyncadd [#allocation5], 4294967280 }
0x1821   :  { %1854 = vsyncpa [#allocation3], 1 }
0x1822   :  { %1855 = vsyncpa [#allocation5], 1 }

</bundles_post_ra>
